<compile_context>
chip_gen: v7x
topology: tpu7x:2x2x1
jax: 0.10.0
libtpu: 0.0.40
codegen_flags: <defaults>
</compile_context>

<pallas_src>
import math
import functools

import jax
import jax.numpy as jnp
from jax.experimental import pallas as pl
from jax.experimental.pallas import tpu as pltpu

LN_EPS = 1e-5


def _layernorm(x, g, b):
    mu = jnp.mean(x, axis=-1, keepdims=True)
    var = jnp.mean((x - mu) ** 2, axis=-1, keepdims=True)
    return (x - mu) * jax.lax.rsqrt(var + LN_EPS) * g + b


def _gelu_exact(x):
    # nn.GELU default is the exact erf formulation (kept for numerics parity;
    # the tanh approximation would route to the EUP and off-load the VALU).
    return 0.5 * x * (1.0 + jax.lax.erf(x / jnp.sqrt(jnp.float32(2.0))))


def encoder_block_kernel(x_ref,
                         g1_ref, b1_ref,
                         wqkv_ref, bqkv_ref,
                         wo_ref, bo_ref,
                         g2_ref, b2_ref,
                         w1_ref, bb1_ref,
                         w2_ref, bb2_ref,
                         o_ref,
                         acc_ref,                       # VMEM scratch (N, C) f32
                         *, num_heads, mlp_chunk, approx_recip):
    f32 = jnp.float32
    cdt = wqkv_ref.dtype                                # compute dtype for MXU operands
    N, C = x_ref.shape
    H = num_heads
    D = C // H
    hidden = w1_ref.shape[1]

    x = x_ref[...].astype(f32)                          # (N, C) residual stream, f32

    # ---------------- attention branch ----------------
    h1 = _layernorm(x, g1_ref[...], b1_ref[...]).astype(cdt)
    # Q columns of wqkv/bqkv were pre-scaled by 1/sqrt(D) on the host.
    qkv = (jnp.dot(h1, wqkv_ref[...], preferred_element_type=f32)
           + bqkv_ref[...]).astype(cdt)                 # (N, 3C), downcast once

    for h in range(H):                                  # short static loop (heads only)
        c0 = h * D
        q_h = qkv[:, c0:c0 + D]                         # (N, D)
        k_h = qkv[:, C + c0:C + c0 + D]
        v_h = qkv[:, 2 * C + c0:2 * C + c0 + D]

        # scores: contract over D without materialising k^T
        s = jax.lax.dot_general(
            q_h, k_h,
            dimension_numbers=(((1,), (1,)), ((), ())),
            preferred_element_type=f32)                 # (N, N) f32
        s = s - jnp.max(s, axis=-1, keepdims=True)
        p = jnp.exp(s)
        p = p * pl.reciprocal(jnp.sum(p, axis=-1, keepdims=True),
                              approx=approx_recip)

        ctx_h = jnp.dot(p.astype(cdt), v_h, preferred_element_type=f32)   # (N, D)
        # Fold head-merge into the output projection: per-head row-block of wo.
        head_out = jnp.dot(ctx_h.astype(cdt), wo_ref[c0:c0 + D, :],
                           preferred_element_type=f32)                    # (N, C) lane-dense
        if h == 0:
            acc_ref[...] = head_out
        else:
            acc_ref[...] += head_out

    x = x + acc_ref[...] + bo_ref[...]                  # residual 1 (dropout = 0.0)

    # ---------------- MLP branch (hidden-dim chunked) ----------------
    h2 = _layernorm(x, g2_ref[...], b2_ref[...]).astype(cdt)
    for j0 in range(0, hidden, mlp_chunk):
        m = (jnp.dot(h2, w1_ref[:, j0:j0 + mlp_chunk], preferred_element_type=f32)
             + bb1_ref[:, j0:j0 + mlp_chunk])           # (N, chunk) f32
        m = _gelu_exact(m).astype(cdt)
        contrib = jnp.dot(m, w2_ref[j0:j0 + mlp_chunk, :],
                          preferred_element_type=f32)   # (N, C) f32
        if j0 == 0:
            acc_ref[...] = contrib
        else:
            acc_ref[...] += contrib

    o_ref[...] = (x + acc_ref[...] + bb2_ref[...]).astype(o_ref.dtype)    # residual 2


def _pick_mlp_chunk(hidden, cap=1024):
    if hidden <= cap:
        return hidden
    for c in range(cap, 127, -1):                       # prefer 128-aligned divisors
        if hidden % c == 0 and c % 128 == 0:
            return c
    for c in range(cap, 0, -1):
        if hidden % c == 0:
            return c
    return hidden


def encoder_block(x, params, num_heads, *, compute_dtype=jnp.bfloat16):
    B, N, C = x.shape
    assert C % num_heads == 0
    D = C // num_heads
    hidden = params["w1"].shape[1]
    mlp_chunk = _pick_mlp_chunk(hidden)

    # ---- host-side weight prep (free at runtime) ----
    scale = 1.0 / math.sqrt(D)
    wqkv = jnp.concatenate([params["wqkv"][:, :C] * scale,
                            params["wqkv"][:, C:]], axis=1)
    bqkv = jnp.concatenate([params["bqkv"][:C] * scale,
                            params["bqkv"][C:]], axis=0)

    cdt = compute_dtype
    f32 = jnp.float32
    row = lambda v: v.reshape(1, -1).astype(f32)        # 1-D params -> (1, L) lane layout
    ordered = [
        row(params["g1"]), row(params["b1"]),
        wqkv.astype(cdt), row(bqkv),
        params["wo"].astype(cdt), row(params["bo"]),
        row(params["g2"]), row(params["b2"]),
        params["w1"].astype(cdt), row(params["bb1"]),
        params["w2"].astype(cdt), row(params["bb2"]),
    ]

    # Generation-aware VMEM budget: ~96 MiB on v5e/v6e (128 MiB), 48 MiB on v7x (64 MiB).
    try:
        vmem_cap = pltpu.get_tpu_info().vmem_capacity_bytes
    except Exception:
        vmem_cap = 128 * 1024 * 1024
    vmem_limit = max(min(vmem_cap * 3 // 4, 100 * 1024 * 1024), 32 * 1024 * 1024)

    kernel = functools.partial(
        encoder_block_kernel,
        num_heads=num_heads, mlp_chunk=mlp_chunk,
        approx_recip=(cdt != jnp.float32))

    io_spec = pl.BlockSpec((None, N, C), lambda i: (i, 0, 0))

    def _run(single_buffer_weights):
        def w_spec(p):
            zeros = (0,) * p.ndim
            kw = {}
            if single_buffer_weights:
                # Weights never change across grid steps: one buffer is enough.
                kw["pipeline_mode"] = pl.Buffered(1)
            return pl.BlockSpec(p.shape, lambda i, _z=zeros: _z, **kw)

        in_specs = [io_spec] + [w_spec(p) for p in ordered]
        return pl.pallas_call(
            kernel,
            out_shape=jax.ShapeDtypeStruct((B, N, C), x.dtype),
            grid=(B,),
            in_specs=in_specs,
            out_specs=io_spec,
            scratch_shapes=[pltpu.VMEM((N, C), jnp.float32)],
            compiler_params=pltpu.CompilerParams(
                dimension_semantics=("parallel",),
                vmem_limit_bytes=vmem_limit),
        )(x, *ordered)

    try:
        return _run(True)
    except Exception:
        # Compatibility guard: Pallas versions without BlockSpec(pipeline_mode=...)
        # support fall back to default double-buffered weights (identical math).
        return _run(False)


def encoder_block_reference(x, params, num_heads):
    B, N, C = x.shape
    H = num_heads
    D = C // H

    def ln(y, g, b):
        mu = jnp.mean(y, axis=-1, keepdims=True)
        var = jnp.mean((y - mu) ** 2, axis=-1, keepdims=True)
        return (y - mu) / jnp.sqrt(var + LN_EPS) * g + b

    h = ln(x, params["g1"], params["b1"])
    qkv = h @ params["wqkv"] + params["bqkv"]                    # (B, N, 3C)
    qkv = qkv.reshape(B, N, 3, H, D).transpose(2, 0, 3, 1, 4)    # (3, B, H, N, D)
    q, k, v = qkv[0], qkv[1], qkv[2]
    attn = (q @ jnp.swapaxes(k, -2, -1)) / math.sqrt(D)
    attn = jax.nn.softmax(attn, axis=-1)
    ctx = (attn @ v).transpose(0, 2, 1, 3).reshape(B, N, C)
    x = x + (ctx @ params["wo"] + params["bo"])

    h2 = ln(x, params["g2"], params["b2"])
    m = h2 @ params["w1"] + params["bb1"]
    m = jax.nn.gelu(m, approximate=False)
    m = m @ params["w2"] + params["bb2"]
    return x + m


def init_params(key, embed_dim, hidden):
    ks = jax.random.split(key, 4)
    std = 0.02
    return {
        "g1": jnp.ones((embed_dim,), jnp.float32),
        "b1": jnp.zeros((embed_dim,), jnp.float32),
        "wqkv": std * jax.random.normal(ks[0], (embed_dim, 3 * embed_dim), jnp.float32),
        "bqkv": jnp.zeros((3 * embed_dim,), jnp.float32),
        "wo": std * jax.random.normal(ks[1], (embed_dim, embed_dim), jnp.float32),
        "bo": jnp.zeros((embed_dim,), jnp.float32),
        "g2": jnp.ones((embed_dim,), jnp.float32),
        "b2": jnp.zeros((embed_dim,), jnp.float32),
        "w1": std * jax.random.normal(ks[2], (embed_dim, hidden), jnp.float32),
        "bb1": jnp.zeros((hidden,), jnp.float32),
        "w2": std * jax.random.normal(ks[3], (hidden, embed_dim), jnp.float32),
        "bb2": jnp.zeros((embed_dim,), jnp.float32),
    }


if __name__ == "__main__":
    B, N, C = 2, 8, 32        # batch, tokens, embed_dim
    num_heads = 4
    hidden = 4 * C            # MLP hidden_features = 4 * embed_dim

    key = jax.random.PRNGKey(0)
    kx, kp = jax.random.split(key)
    x = jax.random.normal(kx, (B, N, C), jnp.float32)
    params = init_params(kp, C, hidden)

    ref = encoder_block_reference(x, params, num_heads)

    # Full-precision compute path: must match the PyTorch-equivalent reference tightly.
    out_f32 = jax.block_until_ready(
        encoder_block(x, params, num_heads, compute_dtype=jnp.float32))
    assert out_f32.shape == (B, N, C)
    assert jnp.allclose(out_f32, ref, atol=1e-4, rtol=1e-4), "f32 mismatch vs reference"

    # bf16-operand / f32-accumulation path (the perf-recommended configuration).
    out_bf16 = jax.block_until_ready(
        encoder_block(x, params, num_heads, compute_dtype=jnp.bfloat16))
    assert out_bf16.shape == (B, N, C)
    assert jnp.allclose(out_bf16, ref, atol=2e-2, rtol=2e-2), "bf16 mismatch vs reference"

    print("KERNEL_OK")
</pallas_src>

<mosaic_0001>
module attributes {stable_mosaic.version = 11 : i64} {
  func.func @encoder_block_kernel(%arg0: i32, %arg1: memref<1x8x32xf32, #tpu.memory_space<vmem>>, %arg2: memref<1x32xf32, #tpu.memory_space<vmem>>, %arg3: memref<1x32xf32, #tpu.memory_space<vmem>>, %arg4: memref<32x96xf32, #tpu.memory_space<vmem>>, %arg5: memref<1x96xf32, #tpu.memory_space<vmem>>, %arg6: memref<32x32xf32, #tpu.memory_space<vmem>>, %arg7: memref<1x32xf32, #tpu.memory_space<vmem>>, %arg8: memref<1x32xf32, #tpu.memory_space<vmem>>, %arg9: memref<1x32xf32, #tpu.memory_space<vmem>>, %arg10: memref<32x128xf32, #tpu.memory_space<vmem>>, %arg11: memref<1x128xf32, #tpu.memory_space<vmem>>, %arg12: memref<128x32xf32, #tpu.memory_space<vmem>>, %arg13: memref<1x32xf32, #tpu.memory_space<vmem>>, %arg14: memref<1x8x32xf32, #tpu.memory_space<vmem>>, %arg15: memref<8x32xf32, #tpu.memory_space<vmem>>) attributes {dimension_semantics = [#tpu.dimension_semantics<parallel>], iteration_bounds = array<i64: 2>, scalar_prefetch = 0 : i64, scratch_operands = 1 : i64, tpu.core_type = #tpu.core_type<tc>, window_params = [{transform_indices = @transform_0, window_bounds = array<i64: 1, 8, 32>}, {pipeline_mode = #tpu.pipeline_mode<synchronous>, transform_indices = @transform_1, window_bounds = array<i64: 1, 32>}, {pipeline_mode = #tpu.pipeline_mode<synchronous>, transform_indices = @transform_2, window_bounds = array<i64: 1, 32>}, {pipeline_mode = #tpu.pipeline_mode<synchronous>, transform_indices = @transform_3, window_bounds = array<i64: 32, 96>}, {pipeline_mode = #tpu.pipeline_mode<synchronous>, transform_indices = @transform_4, window_bounds = array<i64: 1, 96>}, {pipeline_mode = #tpu.pipeline_mode<synchronous>, transform_indices = @transform_5, window_bounds = array<i64: 32, 32>}, {pipeline_mode = #tpu.pipeline_mode<synchronous>, transform_indices = @transform_6, window_bounds = array<i64: 1, 32>}, {pipeline_mode = #tpu.pipeline_mode<synchronous>, transform_indices = @transform_7, window_bounds = array<i64: 1, 32>}, {pipeline_mode = #tpu.pipeline_mode<synchronous>, transform_indices = @transform_8, window_bounds = array<i64: 1, 32>}, {pipeline_mode = #tpu.pipeline_mode<synchronous>, transform_indices = @transform_9, window_bounds = array<i64: 32, 128>}, {pipeline_mode = #tpu.pipeline_mode<synchronous>, transform_indices = @transform_10, window_bounds = array<i64: 1, 128>}, {pipeline_mode = #tpu.pipeline_mode<synchronous>, transform_indices = @transform_11, window_bounds = array<i64: 128, 32>}, {pipeline_mode = #tpu.pipeline_mode<synchronous>, transform_indices = @transform_12, window_bounds = array<i64: 1, 32>}, {transform_indices = @transform_13, window_bounds = array<i64: 1, 8, 32>}]} {
    %c0 = arith.constant 0 : index
    %c0_0 = arith.constant 0 : index
    %c0_1 = arith.constant 0 : index
    %0 = vector.load %arg1[%c0, %c0_0, %c0_1] : memref<1x8x32xf32, #tpu.memory_space<vmem>>, vector<1x8x32xf32>
    %1 = vector.shape_cast %0 : vector<1x8x32xf32> to vector<8x32xf32>
    %c0_2 = arith.constant 0 : index
    %c0_3 = arith.constant 0 : index
    %2 = vector.load %arg2[%c0_2, %c0_3] : memref<1x32xf32, #tpu.memory_space<vmem>>, vector<1x32xf32>
    %c0_4 = arith.constant 0 : index
    %c0_5 = arith.constant 0 : index
    %3 = vector.load %arg3[%c0_4, %c0_5] : memref<1x32xf32, #tpu.memory_space<vmem>>, vector<1x32xf32>
    %cst = arith.constant dense<0.000000e+00> : vector<8xf32>
    %4 = vector.multi_reduction <add>, %1, %cst [1] : vector<8x32xf32> to vector<8xf32>
    %5 = vector.shape_cast %4 : vector<8xf32> to vector<8x1xf32>
    %cst_6 = arith.constant 3.200000e+01 : f32
    %6 = vector.broadcast %cst_6 : f32 to vector<8x1xf32>
    %7 = arith.divf %5, %6 : vector<8x1xf32>
    %8 = vector.broadcast %7 : vector<8x1xf32> to vector<8x32xf32>
    %9 = arith.subf %1, %8 : vector<8x32xf32>
    %10 = arith.mulf %9, %9 : vector<8x32xf32>
    %cst_7 = arith.constant dense<0.000000e+00> : vector<8xf32>
    %11 = vector.multi_reduction <add>, %10, %cst_7 [1] : vector<8x32xf32> to vector<8xf32>
    %12 = vector.shape_cast %11 : vector<8xf32> to vector<8x1xf32>
    %cst_8 = arith.constant 3.200000e+01 : f32
    %13 = vector.broadcast %cst_8 : f32 to vector<8x1xf32>
    %14 = arith.divf %12, %13 : vector<8x1xf32>
    %15 = vector.broadcast %7 : vector<8x1xf32> to vector<8x32xf32>
    %16 = arith.subf %1, %15 : vector<8x32xf32>
    %cst_9 = arith.constant 9.99999974E-6 : f32
    %17 = vector.broadcast %cst_9 : f32 to vector<8x1xf32>
    %18 = arith.addf %14, %17 : vector<8x1xf32>
    %19 = math.rsqrt %18 : vector<8x1xf32>
    %20 = vector.broadcast %19 : vector<8x1xf32> to vector<8x32xf32>
    %21 = arith.mulf %16, %20 : vector<8x32xf32>
    %22 = vector.broadcast %2 : vector<1x32xf32> to vector<8x32xf32>
    %23 = arith.mulf %21, %22 : vector<8x32xf32>
    %24 = vector.broadcast %3 : vector<1x32xf32> to vector<8x32xf32>
    %25 = arith.addf %23, %24 : vector<8x32xf32>
    %c0_10 = arith.constant 0 : index
    %c0_11 = arith.constant 0 : index
    %26 = vector.load %arg4[%c0_10, %c0_11] : memref<32x96xf32, #tpu.memory_space<vmem>>, vector<32x96xf32>
    %cst_12 = arith.constant dense<0.000000e+00> : vector<8x96xf32>
    %27 = tpu.matmul %25, %26, %cst_12 {dimension_numbers = #tpu.dot_dimension_numbers<[1], [0], [0], [1], [0, 0, 1, 1], [], []>} : vector<8x32xf32>, vector<32x96xf32>, vector<8x96xf32> -> vector<8x96xf32>
    %c0_13 = arith.constant 0 : index
    %c0_14 = arith.constant 0 : index
    %28 = vector.load %arg5[%c0_13, %c0_14] : memref<1x96xf32, #tpu.memory_space<vmem>>, vector<1x96xf32>
    %29 = vector.broadcast %28 : vector<1x96xf32> to vector<8x96xf32>
    %30 = arith.addf %27, %29 : vector<8x96xf32>
    %31 = vector.extract_strided_slice %30 {offsets = [0, 0], sizes = [8, 8], strides = [1, 1]} : vector<8x96xf32> to vector<8x8xf32>
    %32 = vector.extract_strided_slice %30 {offsets = [0, 32], sizes = [8, 8], strides = [1, 1]} : vector<8x96xf32> to vector<8x8xf32>
    %33 = vector.extract_strided_slice %30 {offsets = [0, 64], sizes = [8, 8], strides = [1, 1]} : vector<8x96xf32> to vector<8x8xf32>
    %cst_15 = arith.constant dense<0.000000e+00> : vector<8x8xf32>
    %34 = tpu.matmul %31, %32, %cst_15 {dimension_numbers = #tpu.dot_dimension_numbers<[1], [1], [0], [0], [0, 0, 1, 0], [], []>} : vector<8x8xf32>, vector<8x8xf32>, vector<8x8xf32> -> vector<8x8xf32>
    %cst_16 = arith.constant dense<0xFF800000> : vector<8xf32>
    %35 = vector.multi_reduction <maximumf>, %34, %cst_16 [1] : vector<8x8xf32> to vector<8xf32>
    %36 = vector.shape_cast %35 : vector<8xf32> to vector<8x1xf32>
    %37 = vector.broadcast %36 : vector<8x1xf32> to vector<8x8xf32>
    %38 = arith.subf %34, %37 : vector<8x8xf32>
    %39 = math.exp %38 : vector<8x8xf32>
    %cst_17 = arith.constant dense<0.000000e+00> : vector<8xf32>
    %40 = vector.multi_reduction <add>, %39, %cst_17 [1] : vector<8x8xf32> to vector<8xf32>
    %41 = vector.shape_cast %40 : vector<8xf32> to vector<8x1xf32>
    %42 = tpu.reciprocal %41 : vector<8x1xf32> -> vector<8x1xf32>
    %43 = vector.broadcast %42 : vector<8x1xf32> to vector<8x8xf32>
    %44 = arith.mulf %39, %43 : vector<8x8xf32>
    %cst_18 = arith.constant dense<0.000000e+00> : vector<8x8xf32>
    %45 = tpu.matmul %44, %33, %cst_18 {dimension_numbers = #tpu.dot_dimension_numbers<[1], [0], [0], [1], [0, 0, 1, 1], [], []>} : vector<8x8xf32>, vector<8x8xf32>, vector<8x8xf32> -> vector<8x8xf32>
    %c0_19 = arith.constant 0 : index
    %c0_20 = arith.constant 0 : index
    %46 = vector.load %arg6[%c0_19, %c0_20] : memref<32x32xf32, #tpu.memory_space<vmem>>, vector<8x32xf32>
    %cst_21 = arith.constant dense<0.000000e+00> : vector<8x32xf32>
    %47 = tpu.matmul %45, %46, %cst_21 {dimension_numbers = #tpu.dot_dimension_numbers<[1], [0], [0], [1], [0, 0, 1, 1], [], []>} : vector<8x8xf32>, vector<8x32xf32>, vector<8x32xf32> -> vector<8x32xf32>
    %c0_22 = arith.constant 0 : index
    %c0_23 = arith.constant 0 : index
    %48 = vector.load %arg15[%c0_22, %c0_23] : memref<8x32xf32, #tpu.memory_space<vmem>>, vector<8x32xf32>
    tpu.vector_store %arg15[%c0_22, %c0_23], %47 {strides = array<i32>} : memref<8x32xf32, #tpu.memory_space<vmem>>, vector<8x32xf32>,
    %49 = vector.extract_strided_slice %30 {offsets = [0, 8], sizes = [8, 8], strides = [1, 1]} : vector<8x96xf32> to vector<8x8xf32>
    %50 = vector.extract_strided_slice %30 {offsets = [0, 40], sizes = [8, 8], strides = [1, 1]} : vector<8x96xf32> to vector<8x8xf32>
    %51 = vector.extract_strided_slice %30 {offsets = [0, 72], sizes = [8, 8], strides = [1, 1]} : vector<8x96xf32> to vector<8x8xf32>
    %cst_24 = arith.constant dense<0.000000e+00> : vector<8x8xf32>
    %52 = tpu.matmul %49, %50, %cst_24 {dimension_numbers = #tpu.dot_dimension_numbers<[1], [1], [0], [0], [0, 0, 1, 0], [], []>} : vector<8x8xf32>, vector<8x8xf32>, vector<8x8xf32> -> vector<8x8xf32>
    %cst_25 = arith.constant dense<0xFF800000> : vector<8xf32>
    %53 = vector.multi_reduction <maximumf>, %52, %cst_25 [1] : vector<8x8xf32> to vector<8xf32>
    %54 = vector.shape_cast %53 : vector<8xf32> to vector<8x1xf32>
    %55 = vector.broadcast %54 : vector<8x1xf32> to vector<8x8xf32>
    %56 = arith.subf %52, %55 : vector<8x8xf32>
    %57 = math.exp %56 : vector<8x8xf32>
    %cst_26 = arith.constant dense<0.000000e+00> : vector<8xf32>
    %58 = vector.multi_reduction <add>, %57, %cst_26 [1] : vector<8x8xf32> to vector<8xf32>
    %59 = vector.shape_cast %58 : vector<8xf32> to vector<8x1xf32>
    %60 = tpu.reciprocal %59 : vector<8x1xf32> -> vector<8x1xf32>
    %61 = vector.broadcast %60 : vector<8x1xf32> to vector<8x8xf32>
    %62 = arith.mulf %57, %61 : vector<8x8xf32>
    %cst_27 = arith.constant dense<0.000000e+00> : vector<8x8xf32>
    %63 = tpu.matmul %62, %51, %cst_27 {dimension_numbers = #tpu.dot_dimension_numbers<[1], [0], [0], [1], [0, 0, 1, 1], [], []>} : vector<8x8xf32>, vector<8x8xf32>, vector<8x8xf32> -> vector<8x8xf32>
    %c8 = arith.constant 8 : index
    %c0_28 = arith.constant 0 : index
    %64 = vector.load %arg6[%c8, %c0_28] : memref<32x32xf32, #tpu.memory_space<vmem>>, vector<8x32xf32>
    %cst_29 = arith.constant dense<0.000000e+00> : vector<8x32xf32>
    %65 = tpu.matmul %63, %64, %cst_29 {dimension_numbers = #tpu.dot_dimension_numbers<[1], [0], [0], [1], [0, 0, 1, 1], [], []>} : vector<8x8xf32>, vector<8x32xf32>, vector<8x32xf32> -> vector<8x32xf32>
    %c0_30 = arith.constant 0 : index
    %c0_31 = arith.constant 0 : index
    %66 = vector.load %arg15[%c0_30, %c0_31] : memref<8x32xf32, #tpu.memory_space<vmem>>, vector<8x32xf32>
    %67 = arith.addf %66, %65 : vector<8x32xf32>
    %c0_32 = arith.constant 0 : index
    %c0_33 = arith.constant 0 : index
    %68 = vector.load %arg15[%c0_32, %c0_33] : memref<8x32xf32, #tpu.memory_space<vmem>>, vector<8x32xf32>
    tpu.vector_store %arg15[%c0_32, %c0_33], %67 {strides = array<i32>} : memref<8x32xf32, #tpu.memory_space<vmem>>, vector<8x32xf32>,
    %69 = vector.extract_strided_slice %30 {offsets = [0, 16], sizes = [8, 8], strides = [1, 1]} : vector<8x96xf32> to vector<8x8xf32>
    %70 = vector.extract_strided_slice %30 {offsets = [0, 48], sizes = [8, 8], strides = [1, 1]} : vector<8x96xf32> to vector<8x8xf32>
    %71 = vector.extract_strided_slice %30 {offsets = [0, 80], sizes = [8, 8], strides = [1, 1]} : vector<8x96xf32> to vector<8x8xf32>
    %cst_34 = arith.constant dense<0.000000e+00> : vector<8x8xf32>
    %72 = tpu.matmul %69, %70, %cst_34 {dimension_numbers = #tpu.dot_dimension_numbers<[1], [1], [0], [0], [0, 0, 1, 0], [], []>} : vector<8x8xf32>, vector<8x8xf32>, vector<8x8xf32> -> vector<8x8xf32>
    %cst_35 = arith.constant dense<0xFF800000> : vector<8xf32>
    %73 = vector.multi_reduction <maximumf>, %72, %cst_35 [1] : vector<8x8xf32> to vector<8xf32>
    %74 = vector.shape_cast %73 : vector<8xf32> to vector<8x1xf32>
    %75 = vector.broadcast %74 : vector<8x1xf32> to vector<8x8xf32>
    %76 = arith.subf %72, %75 : vector<8x8xf32>
    %77 = math.exp %76 : vector<8x8xf32>
    %cst_36 = arith.constant dense<0.000000e+00> : vector<8xf32>
    %78 = vector.multi_reduction <add>, %77, %cst_36 [1] : vector<8x8xf32> to vector<8xf32>
    %79 = vector.shape_cast %78 : vector<8xf32> to vector<8x1xf32>
    %80 = tpu.reciprocal %79 : vector<8x1xf32> -> vector<8x1xf32>
    %81 = vector.broadcast %80 : vector<8x1xf32> to vector<8x8xf32>
    %82 = arith.mulf %77, %81 : vector<8x8xf32>
    %cst_37 = arith.constant dense<0.000000e+00> : vector<8x8xf32>
    %83 = tpu.matmul %82, %71, %cst_37 {dimension_numbers = #tpu.dot_dimension_numbers<[1], [0], [0], [1], [0, 0, 1, 1], [], []>} : vector<8x8xf32>, vector<8x8xf32>, vector<8x8xf32> -> vector<8x8xf32>
    %c16 = arith.constant 16 : index
    %c0_38 = arith.constant 0 : index
    %84 = vector.load %arg6[%c16, %c0_38] : memref<32x32xf32, #tpu.memory_space<vmem>>, vector<8x32xf32>
    %cst_39 = arith.constant dense<0.000000e+00> : vector<8x32xf32>
    %85 = tpu.matmul %83, %84, %cst_39 {dimension_numbers = #tpu.dot_dimension_numbers<[1], [0], [0], [1], [0, 0, 1, 1], [], []>} : vector<8x8xf32>, vector<8x32xf32>, vector<8x32xf32> -> vector<8x32xf32>
    %c0_40 = arith.constant 0 : index
    %c0_41 = arith.constant 0 : index
    %86 = vector.load %arg15[%c0_40, %c0_41] : memref<8x32xf32, #tpu.memory_space<vmem>>, vector<8x32xf32>
    %87 = arith.addf %86, %85 : vector<8x32xf32>
    %c0_42 = arith.constant 0 : index
    %c0_43 = arith.constant 0 : index
    %88 = vector.load %arg15[%c0_42, %c0_43] : memref<8x32xf32, #tpu.memory_space<vmem>>, vector<8x32xf32>
    tpu.vector_store %arg15[%c0_42, %c0_43], %87 {strides = array<i32>} : memref<8x32xf32, #tpu.memory_space<vmem>>, vector<8x32xf32>,
    %89 = vector.extract_strided_slice %30 {offsets = [0, 24], sizes = [8, 8], strides = [1, 1]} : vector<8x96xf32> to vector<8x8xf32>
    %90 = vector.extract_strided_slice %30 {offsets = [0, 56], sizes = [8, 8], strides = [1, 1]} : vector<8x96xf32> to vector<8x8xf32>
    %91 = vector.extract_strided_slice %30 {offsets = [0, 88], sizes = [8, 8], strides = [1, 1]} : vector<8x96xf32> to vector<8x8xf32>
    %cst_44 = arith.constant dense<0.000000e+00> : vector<8x8xf32>
    %92 = tpu.matmul %89, %90, %cst_44 {dimension_numbers = #tpu.dot_dimension_numbers<[1], [1], [0], [0], [0, 0, 1, 0], [], []>} : vector<8x8xf32>, vector<8x8xf32>, vector<8x8xf32> -> vector<8x8xf32>
    %cst_45 = arith.constant dense<0xFF800000> : vector<8xf32>
    %93 = vector.multi_reduction <maximumf>, %92, %cst_45 [1] : vector<8x8xf32> to vector<8xf32>
    %94 = vector.shape_cast %93 : vector<8xf32> to vector<8x1xf32>
    %95 = vector.broadcast %94 : vector<8x1xf32> to vector<8x8xf32>
    %96 = arith.subf %92, %95 : vector<8x8xf32>
    %97 = math.exp %96 : vector<8x8xf32>
    %cst_46 = arith.constant dense<0.000000e+00> : vector<8xf32>
    %98 = vector.multi_reduction <add>, %97, %cst_46 [1] : vector<8x8xf32> to vector<8xf32>
    %99 = vector.shape_cast %98 : vector<8xf32> to vector<8x1xf32>
    %100 = tpu.reciprocal %99 : vector<8x1xf32> -> vector<8x1xf32>
    %101 = vector.broadcast %100 : vector<8x1xf32> to vector<8x8xf32>
    %102 = arith.mulf %97, %101 : vector<8x8xf32>
    %cst_47 = arith.constant dense<0.000000e+00> : vector<8x8xf32>
    %103 = tpu.matmul %102, %91, %cst_47 {dimension_numbers = #tpu.dot_dimension_numbers<[1], [0], [0], [1], [0, 0, 1, 1], [], []>} : vector<8x8xf32>, vector<8x8xf32>, vector<8x8xf32> -> vector<8x8xf32>
    %c24 = arith.constant 24 : index
    %c0_48 = arith.constant 0 : index
    %104 = vector.load %arg6[%c24, %c0_48] : memref<32x32xf32, #tpu.memory_space<vmem>>, vector<8x32xf32>
    %cst_49 = arith.constant dense<0.000000e+00> : vector<8x32xf32>
    %105 = tpu.matmul %103, %104, %cst_49 {dimension_numbers = #tpu.dot_dimension_numbers<[1], [0], [0], [1], [0, 0, 1, 1], [], []>} : vector<8x8xf32>, vector<8x32xf32>, vector<8x32xf32> -> vector<8x32xf32>
    %c0_50 = arith.constant 0 : index
    %c0_51 = arith.constant 0 : index
    %106 = vector.load %arg15[%c0_50, %c0_51] : memref<8x32xf32, #tpu.memory_space<vmem>>, vector<8x32xf32>
    %107 = arith.addf %106, %105 : vector<8x32xf32>
    %c0_52 = arith.constant 0 : index
    %c0_53 = arith.constant 0 : index
    %108 = vector.load %arg15[%c0_52, %c0_53] : memref<8x32xf32, #tpu.memory_space<vmem>>, vector<8x32xf32>
    tpu.vector_store %arg15[%c0_52, %c0_53], %107 {strides = array<i32>} : memref<8x32xf32, #tpu.memory_space<vmem>>, vector<8x32xf32>,
    %c0_54 = arith.constant 0 : index
    %c0_55 = arith.constant 0 : index
    %109 = vector.load %arg15[%c0_54, %c0_55] : memref<8x32xf32, #tpu.memory_space<vmem>>, vector<8x32xf32>
    %110 = arith.addf %1, %109 : vector<8x32xf32>
    %c0_56 = arith.constant 0 : index
    %c0_57 = arith.constant 0 : index
    %111 = vector.load %arg7[%c0_56, %c0_57] : memref<1x32xf32, #tpu.memory_space<vmem>>, vector<1x32xf32>
    %112 = vector.broadcast %111 : vector<1x32xf32> to vector<8x32xf32>
    %113 = arith.addf %110, %112 : vector<8x32xf32>
    %c0_58 = arith.constant 0 : index
    %c0_59 = arith.constant 0 : index
    %114 = vector.load %arg8[%c0_58, %c0_59] : memref<1x32xf32, #tpu.memory_space<vmem>>, vector<1x32xf32>
    %c0_60 = arith.constant 0 : index
    %c0_61 = arith.constant 0 : index
    %115 = vector.load %arg9[%c0_60, %c0_61] : memref<1x32xf32, #tpu.memory_space<vmem>>, vector<1x32xf32>
    %cst_62 = arith.constant dense<0.000000e+00> : vector<8xf32>
    %116 = vector.multi_reduction <add>, %113, %cst_62 [1] : vector<8x32xf32> to vector<8xf32>
    %117 = vector.shape_cast %116 : vector<8xf32> to vector<8x1xf32>
    %cst_63 = arith.constant 3.200000e+01 : f32
    %118 = vector.broadcast %cst_63 : f32 to vector<8x1xf32>
    %119 = arith.divf %117, %118 : vector<8x1xf32>
    %120 = vector.broadcast %119 : vector<8x1xf32> to vector<8x32xf32>
    %121 = arith.subf %113, %120 : vector<8x32xf32>
    %122 = arith.mulf %121, %121 : vector<8x32xf32>
    %cst_64 = arith.constant dense<0.000000e+00> : vector<8xf32>
    %123 = vector.multi_reduction <add>, %122, %cst_64 [1] : vector<8x32xf32> to vector<8xf32>
    %124 = vector.shape_cast %123 : vector<8xf32> to vector<8x1xf32>
    %cst_65 = arith.constant 3.200000e+01 : f32
    %125 = vector.broadcast %cst_65 : f32 to vector<8x1xf32>
    %126 = arith.divf %124, %125 : vector<8x1xf32>
    %127 = vector.broadcast %119 : vector<8x1xf32> to vector<8x32xf32>
    %128 = arith.subf %113, %127 : vector<8x32xf32>
    %cst_66 = arith.constant 9.99999974E-6 : f32
    %129 = vector.broadcast %cst_66 : f32 to vector<8x1xf32>
    %130 = arith.addf %126, %129 : vector<8x1xf32>
    %131 = math.rsqrt %130 : vector<8x1xf32>
    %132 = vector.broadcast %131 : vector<8x1xf32> to vector<8x32xf32>
    %133 = arith.mulf %128, %132 : vector<8x32xf32>
    %134 = vector.broadcast %114 : vector<1x32xf32> to vector<8x32xf32>
    %135 = arith.mulf %133, %134 : vector<8x32xf32>
    %136 = vector.broadcast %115 : vector<1x32xf32> to vector<8x32xf32>
    %137 = arith.addf %135, %136 : vector<8x32xf32>
    %c0_67 = arith.constant 0 : index
    %c0_68 = arith.constant 0 : index
    %138 = vector.load %arg10[%c0_67, %c0_68] : memref<32x128xf32, #tpu.memory_space<vmem>>, vector<32x128xf32>
    %cst_69 = arith.constant dense<0.000000e+00> : vector<8x128xf32>
    %139 = tpu.matmul %137, %138, %cst_69 {dimension_numbers = #tpu.dot_dimension_numbers<[1], [0], [0], [1], [0, 0, 1, 1], [], []>} : vector<8x32xf32>, vector<32x128xf32>, vector<8x128xf32> -> vector<8x128xf32>
    %c0_70 = arith.constant 0 : index
    %c0_71 = arith.constant 0 : index
    %140 = vector.load %arg11[%c0_70, %c0_71] : memref<1x128xf32, #tpu.memory_space<vmem>>, vector<1x128xf32>
    %141 = vector.broadcast %140 : vector<1x128xf32> to vector<8x128xf32>
    %142 = arith.addf %139, %141 : vector<8x128xf32>
    %cst_72 = arith.constant 5.000000e-01 : f32
    %143 = vector.broadcast %cst_72 : f32 to vector<8x128xf32>
    %144 = arith.mulf %143, %142 : vector<8x128xf32>
    %cst_73 = arith.constant 2.000000e+00 : f32
    %145 = math.sqrt %cst_73 : f32
    %146 = vector.broadcast %145 : f32 to vector<8x128xf32>
    %147 = arith.divf %142, %146 : vector<8x128xf32>
    %148 = math.erf %147 : vector<8x128xf32>
    %cst_74 = arith.constant 1.000000e+00 : f32
    %149 = vector.broadcast %cst_74 : f32 to vector<8x128xf32>
    %150 = arith.addf %149, %148 : vector<8x128xf32>
    %151 = arith.mulf %144, %150 : vector<8x128xf32>
    %c0_75 = arith.constant 0 : index
    %c0_76 = arith.constant 0 : index
    %152 = vector.load %arg12[%c0_75, %c0_76] : memref<128x32xf32, #tpu.memory_space<vmem>>, vector<128x32xf32>
    %cst_77 = arith.constant dense<0.000000e+00> : vector<8x32xf32>
    %153 = tpu.matmul %151, %152, %cst_77 {dimension_numbers = #tpu.dot_dimension_numbers<[1], [0], [0], [1], [0, 0, 1, 1], [], []>} : vector<8x128xf32>, vector<128x32xf32>, vector<8x32xf32> -> vector<8x32xf32>
    %c0_78 = arith.constant 0 : index
    %c0_79 = arith.constant 0 : index
    %154 = vector.load %arg15[%c0_78, %c0_79] : memref<8x32xf32, #tpu.memory_space<vmem>>, vector<8x32xf32>
    tpu.vector_store %arg15[%c0_78, %c0_79], %153 {strides = array<i32>} : memref<8x32xf32, #tpu.memory_space<vmem>>, vector<8x32xf32>,
    %c0_80 = arith.constant 0 : index
    %c0_81 = arith.constant 0 : index
    %155 = vector.load %arg15[%c0_80, %c0_81] : memref<8x32xf32, #tpu.memory_space<vmem>>, vector<8x32xf32>
    %156 = arith.addf %113, %155 : vector<8x32xf32>
    %c0_82 = arith.constant 0 : index
    %c0_83 = arith.constant 0 : index
    %157 = vector.load %arg13[%c0_82, %c0_83] : memref<1x32xf32, #tpu.memory_space<vmem>>, vector<1x32xf32>
    %158 = vector.broadcast %157 : vector<1x32xf32> to vector<8x32xf32>
    %159 = arith.addf %156, %158 : vector<8x32xf32>
    %c0_84 = arith.constant 0 : index
    %c0_85 = arith.constant 0 : index
    %c0_86 = arith.constant 0 : index
    %160 = vector.load %arg14[%c0_84, %c0_85, %c0_86] : memref<1x8x32xf32, #tpu.memory_space<vmem>>, vector<1x8x32xf32>
    %161 = vector.shape_cast %160 : vector<1x8x32xf32> to vector<8x32xf32>
    %162 = vector.shape_cast %159 : vector<8x32xf32> to vector<1x8x32xf32>
    tpu.vector_store %arg14[%c0_84, %c0_85, %c0_86], %162 {strides = array<i32>} : memref<1x8x32xf32, #tpu.memory_space<vmem>>, vector<1x8x32xf32>,
    return
  }
  func.func @transform_0(%arg0: i32) -> (i32, i32, i32) {
    %c0_i32 = arith.constant 0 : i32
    %c0_i32_0 = arith.constant 0 : i32
    %c0_i32_1 = arith.constant 0 : i32
    return %arg0, %c0_i32, %c0_i32_0 : i32, i32, i32
  }
  func.func @transform_1(%arg0: i32) -> (i32, i32) {
    %c0_i32 = arith.constant 0 : i32
    %c0_i32_0 = arith.constant 0 : i32
    %c0_i32_1 = arith.constant 0 : i32
    return %c0_i32, %c0_i32_0 : i32, i32
  }
  func.func @transform_2(%arg0: i32) -> (i32, i32) {
    %c0_i32 = arith.constant 0 : i32
    %c0_i32_0 = arith.constant 0 : i32
    %c0_i32_1 = arith.constant 0 : i32
    return %c0_i32, %c0_i32_0 : i32, i32
  }
  func.func @transform_3(%arg0: i32) -> (i32, i32) {
    %c0_i32 = arith.constant 0 : i32
    %c0_i32_0 = arith.constant 0 : i32
    %c0_i32_1 = arith.constant 0 : i32
    return %c0_i32, %c0_i32_0 : i32, i32
  }
  func.func @transform_4(%arg0: i32) -> (i32, i32) {
    %c0_i32 = arith.constant 0 : i32
    %c0_i32_0 = arith.constant 0 : i32
    %c0_i32_1 = arith.constant 0 : i32
    return %c0_i32, %c0_i32_0 : i32, i32
  }
  func.func @transform_5(%arg0: i32) -> (i32, i32) {
    %c0_i32 = arith.constant 0 : i32
    %c0_i32_0 = arith.constant 0 : i32
    %c0_i32_1 = arith.constant 0 : i32
    return %c0_i32, %c0_i32_0 : i32, i32
  }
  func.func @transform_6(%arg0: i32) -> (i32, i32) {
    %c0_i32 = arith.constant 0 : i32
    %c0_i32_0 = arith.constant 0 : i32
    %c0_i32_1 = arith.constant 0 : i32
    return %c0_i32, %c0_i32_0 : i32, i32
  }
  func.func @transform_7(%arg0: i32) -> (i32, i32) {
    %c0_i32 = arith.constant 0 : i32
    %c0_i32_0 = arith.constant 0 : i32
    %c0_i32_1 = arith.constant 0 : i32
    return %c0_i32, %c0_i32_0 : i32, i32
  }
  func.func @transform_8(%arg0: i32) -> (i32, i32) {
    %c0_i32 = arith.constant 0 : i32
    %c0_i32_0 = arith.constant 0 : i32
    %c0_i32_1 = arith.constant 0 : i32
    return %c0_i32, %c0_i32_0 : i32, i32
  }
  func.func @transform_9(%arg0: i32) -> (i32, i32) {
    %c0_i32 = arith.constant 0 : i32
    %c0_i32_0 = arith.constant 0 : i32
    %c0_i32_1 = arith.constant 0 : i32
    return %c0_i32, %c0_i32_0 : i32, i32
  }
  func.func @transform_10(%arg0: i32) -> (i32, i32) {
    %c0_i32 = arith.constant 0 : i32
    %c0_i32_0 = arith.constant 0 : i32
    %c0_i32_1 = arith.constant 0 : i32
    return %c0_i32, %c0_i32_0 : i32, i32
  }
  func.func @transform_11(%arg0: i32) -> (i32, i32) {
    %c0_i32 = arith.constant 0 : i32
    %c0_i32_0 = arith.constant 0 : i32
    %c0_i32_1 = arith.constant 0 : i32
    return %c0_i32, %c0_i32_0 : i32, i32
  }
  func.func @transform_12(%arg0: i32) -> (i32, i32) {
    %c0_i32 = arith.constant 0 : i32
    %c0_i32_0 = arith.constant 0 : i32
    %c0_i32_1 = arith.constant 0 : i32
    return %c0_i32, %c0_i32_0 : i32, i32
  }
  func.func @transform_13(%arg0: i32) -> (i32, i32, i32) {
    %c0_i32 = arith.constant 0 : i32
    %c0_i32_0 = arith.constant 0 : i32
    %c0_i32_1 = arith.constant 0 : i32
    return %arg0, %c0_i32, %c0_i32_0 : i32, i32, i32
  }
}

module attributes {stable_mosaic.version = 11 : i64} {
  func.func @encoder_block_kernel(%arg0: i32, %arg1: memref<1x8x32xf32, #tpu.memory_space<vmem>>, %arg2: memref<1x32xf32, #tpu.memory_space<vmem>>, %arg3: memref<1x32xf32, #tpu.memory_space<vmem>>, %arg4: memref<32x96xf32, #tpu.memory_space<vmem>>, %arg5: memref<1x96xf32, #tpu.memory_space<vmem>>, %arg6: memref<32x32xf32, #tpu.memory_space<vmem>>, %arg7: memref<1x32xf32, #tpu.memory_space<vmem>>, %arg8: memref<1x32xf32, #tpu.memory_space<vmem>>, %arg9: memref<1x32xf32, #tpu.memory_space<vmem>>, %arg10: memref<32x128xf32, #tpu.memory_space<vmem>>, %arg11: memref<1x128xf32, #tpu.memory_space<vmem>>, %arg12: memref<128x32xf32, #tpu.memory_space<vmem>>, %arg13: memref<1x32xf32, #tpu.memory_space<vmem>>, %arg14: memref<1x8x32xf32, #tpu.memory_space<vmem>>, %arg15: memref<8x32xf32, #tpu.memory_space<vmem>>) attributes {dimension_semantics = [#tpu.dimension_semantics<parallel>], iteration_bounds = array<i64: 2>, scalar_prefetch = 0 : i64, scratch_operands = 1 : i64, tpu.core_type = #tpu.core_type<tc>, window_params = [{transform_indices = @transform_0, window_bounds = array<i64: 1, 8, 32>}, {pipeline_mode = #tpu.pipeline_mode<synchronous>, transform_indices = @transform_1, window_bounds = array<i64: 1, 32>}, {pipeline_mode = #tpu.pipeline_mode<synchronous>, transform_indices = @transform_2, window_bounds = array<i64: 1, 32>}, {pipeline_mode = #tpu.pipeline_mode<synchronous>, transform_indices = @transform_3, window_bounds = array<i64: 32, 96>}, {pipeline_mode = #tpu.pipeline_mode<synchronous>, transform_indices = @transform_4, window_bounds = array<i64: 1, 96>}, {pipeline_mode = #tpu.pipeline_mode<synchronous>, transform_indices = @transform_5, window_bounds = array<i64: 32, 32>}, {pipeline_mode = #tpu.pipeline_mode<synchronous>, transform_indices = @transform_6, window_bounds = array<i64: 1, 32>}, {pipeline_mode = #tpu.pipeline_mode<synchronous>, transform_indices = @transform_7, window_bounds = array<i64: 1, 32>}, {pipeline_mode = #tpu.pipeline_mode<synchronous>, transform_indices = @transform_8, window_bounds = array<i64: 1, 32>}, {pipeline_mode = #tpu.pipeline_mode<synchronous>, transform_indices = @transform_9, window_bounds = array<i64: 32, 128>}, {pipeline_mode = #tpu.pipeline_mode<synchronous>, transform_indices = @transform_10, window_bounds = array<i64: 1, 128>}, {pipeline_mode = #tpu.pipeline_mode<synchronous>, transform_indices = @transform_11, window_bounds = array<i64: 128, 32>}, {pipeline_mode = #tpu.pipeline_mode<synchronous>, transform_indices = @transform_12, window_bounds = array<i64: 1, 32>}, {transform_indices = @transform_13, window_bounds = array<i64: 1, 8, 32>}]} {
    %c0 = arith.constant 0 : index
    %c0_0 = arith.constant 0 : index
    %c0_1 = arith.constant 0 : index
    %0 = vector.load %arg1[%c0, %c0_0, %c0_1] : memref<1x8x32xf32, #tpu.memory_space<vmem>>, vector<1x8x32xf32>
    %1 = vector.shape_cast %0 : vector<1x8x32xf32> to vector<8x32xf32>
    %c0_2 = arith.constant 0 : index
    %c0_3 = arith.constant 0 : index
    %2 = vector.load %arg2[%c0_2, %c0_3] : memref<1x32xf32, #tpu.memory_space<vmem>>, vector<1x32xf32>
    %c0_4 = arith.constant 0 : index
    %c0_5 = arith.constant 0 : index
    %3 = vector.load %arg3[%c0_4, %c0_5] : memref<1x32xf32, #tpu.memory_space<vmem>>, vector<1x32xf32>
    %cst = arith.constant dense<0.000000e+00> : vector<8xf32>
    %4 = vector.multi_reduction <add>, %1, %cst [1] : vector<8x32xf32> to vector<8xf32>
    %5 = vector.shape_cast %4 : vector<8xf32> to vector<8x1xf32>
    %cst_6 = arith.constant 3.200000e+01 : f32
    %6 = vector.broadcast %cst_6 : f32 to vector<8x1xf32>
    %7 = arith.divf %5, %6 : vector<8x1xf32>
    %8 = vector.broadcast %7 : vector<8x1xf32> to vector<8x32xf32>
    %9 = arith.subf %1, %8 : vector<8x32xf32>
    %10 = arith.mulf %9, %9 : vector<8x32xf32>
    %cst_7 = arith.constant dense<0.000000e+00> : vector<8xf32>
    %11 = vector.multi_reduction <add>, %10, %cst_7 [1] : vector<8x32xf32> to vector<8xf32>
    %12 = vector.shape_cast %11 : vector<8xf32> to vector<8x1xf32>
    %cst_8 = arith.constant 3.200000e+01 : f32
    %13 = vector.broadcast %cst_8 : f32 to vector<8x1xf32>
    %14 = arith.divf %12, %13 : vector<8x1xf32>
    %15 = vector.broadcast %7 : vector<8x1xf32> to vector<8x32xf32>
    %16 = arith.subf %1, %15 : vector<8x32xf32>
    %cst_9 = arith.constant 9.99999974E-6 : f32
    %17 = vector.broadcast %cst_9 : f32 to vector<8x1xf32>
    %18 = arith.addf %14, %17 : vector<8x1xf32>
    %19 = math.rsqrt %18 : vector<8x1xf32>
    %20 = vector.broadcast %19 : vector<8x1xf32> to vector<8x32xf32>
    %21 = arith.mulf %16, %20 : vector<8x32xf32>
    %22 = vector.broadcast %2 : vector<1x32xf32> to vector<8x32xf32>
    %23 = arith.mulf %21, %22 : vector<8x32xf32>
    %24 = vector.broadcast %3 : vector<1x32xf32> to vector<8x32xf32>
    %25 = arith.addf %23, %24 : vector<8x32xf32>
    %c0_10 = arith.constant 0 : index
    %c0_11 = arith.constant 0 : index
    %26 = vector.load %arg4[%c0_10, %c0_11] : memref<32x96xf32, #tpu.memory_space<vmem>>, vector<32x96xf32>
    %cst_12 = arith.constant dense<0.000000e+00> : vector<8x96xf32>
    %27 = tpu.matmul %25, %26, %cst_12 {dimension_numbers = #tpu.dot_dimension_numbers<[1], [0], [0], [1], [0, 0, 1, 1], [], []>} : vector<8x32xf32>, vector<32x96xf32>, vector<8x96xf32> -> vector<8x96xf32>
    %c0_13 = arith.constant 0 : index
    %c0_14 = arith.constant 0 : index
    %28 = vector.load %arg5[%c0_13, %c0_14] : memref<1x96xf32, #tpu.memory_space<vmem>>, vector<1x96xf32>
    %29 = vector.broadcast %28 : vector<1x96xf32> to vector<8x96xf32>
    %30 = arith.addf %27, %29 : vector<8x96xf32>
    %31 = vector.extract_strided_slice %30 {offsets = [0, 0], sizes = [8, 8], strides = [1, 1]} : vector<8x96xf32> to vector<8x8xf32>
    %32 = vector.extract_strided_slice %30 {offsets = [0, 32], sizes = [8, 8], strides = [1, 1]} : vector<8x96xf32> to vector<8x8xf32>
    %33 = vector.extract_strided_slice %30 {offsets = [0, 64], sizes = [8, 8], strides = [1, 1]} : vector<8x96xf32> to vector<8x8xf32>
    %cst_15 = arith.constant dense<0.000000e+00> : vector<8x8xf32>
    %34 = tpu.matmul %31, %32, %cst_15 {dimension_numbers = #tpu.dot_dimension_numbers<[1], [1], [0], [0], [0, 0, 1, 0], [], []>} : vector<8x8xf32>, vector<8x8xf32>, vector<8x8xf32> -> vector<8x8xf32>
    %cst_16 = arith.constant dense<0xFF800000> : vector<8xf32>
    %35 = vector.multi_reduction <maximumf>, %34, %cst_16 [1] : vector<8x8xf32> to vector<8xf32>
    %36 = vector.shape_cast %35 : vector<8xf32> to vector<8x1xf32>
    %37 = vector.broadcast %36 : vector<8x1xf32> to vector<8x8xf32>
    %38 = arith.subf %34, %37 : vector<8x8xf32>
    %39 = math.exp %38 : vector<8x8xf32>
    %cst_17 = arith.constant dense<0.000000e+00> : vector<8xf32>
    %40 = vector.multi_reduction <add>, %39, %cst_17 [1] : vector<8x8xf32> to vector<8xf32>
    %41 = vector.shape_cast %40 : vector<8xf32> to vector<8x1xf32>
    %42 = tpu.reciprocal %41 : vector<8x1xf32> -> vector<8x1xf32>
    %43 = vector.broadcast %42 : vector<8x1xf32> to vector<8x8xf32>
    %44 = arith.mulf %39, %43 : vector<8x8xf32>
    %cst_18 = arith.constant dense<0.000000e+00> : vector<8x8xf32>
    %45 = tpu.matmul %44, %33, %cst_18 {dimension_numbers = #tpu.dot_dimension_numbers<[1], [0], [0], [1], [0, 0, 1, 1], [], []>} : vector<8x8xf32>, vector<8x8xf32>, vector<8x8xf32> -> vector<8x8xf32>
    %c0_19 = arith.constant 0 : index
    %c0_20 = arith.constant 0 : index
    %46 = vector.load %arg6[%c0_19, %c0_20] : memref<32x32xf32, #tpu.memory_space<vmem>>, vector<8x32xf32>
    %cst_21 = arith.constant dense<0.000000e+00> : vector<8x32xf32>
    %47 = tpu.matmul %45, %46, %cst_21 {dimension_numbers = #tpu.dot_dimension_numbers<[1], [0], [0], [1], [0, 0, 1, 1], [], []>} : vector<8x8xf32>, vector<8x32xf32>, vector<8x32xf32> -> vector<8x32xf32>
    %c0_22 = arith.constant 0 : index
    %c0_23 = arith.constant 0 : index
    %48 = vector.load %arg15[%c0_22, %c0_23] : memref<8x32xf32, #tpu.memory_space<vmem>>, vector<8x32xf32>
    tpu.vector_store %arg15[%c0_22, %c0_23], %47 {strides = array<i32>} : memref<8x32xf32, #tpu.memory_space<vmem>>, vector<8x32xf32>,
    %49 = vector.extract_strided_slice %30 {offsets = [0, 8], sizes = [8, 8], strides = [1, 1]} : vector<8x96xf32> to vector<8x8xf32>
    %50 = vector.extract_strided_slice %30 {offsets = [0, 40], sizes = [8, 8], strides = [1, 1]} : vector<8x96xf32> to vector<8x8xf32>
    %51 = vector.extract_strided_slice %30 {offsets = [0, 72], sizes = [8, 8], strides = [1, 1]} : vector<8x96xf32> to vector<8x8xf32>
    %cst_24 = arith.constant dense<0.000000e+00> : vector<8x8xf32>
    %52 = tpu.matmul %49, %50, %cst_24 {dimension_numbers = #tpu.dot_dimension_numbers<[1], [1], [0], [0], [0, 0, 1, 0], [], []>} : vector<8x8xf32>, vector<8x8xf32>, vector<8x8xf32> -> vector<8x8xf32>
    %cst_25 = arith.constant dense<0xFF800000> : vector<8xf32>
    %53 = vector.multi_reduction <maximumf>, %52, %cst_25 [1] : vector<8x8xf32> to vector<8xf32>
    %54 = vector.shape_cast %53 : vector<8xf32> to vector<8x1xf32>
    %55 = vector.broadcast %54 : vector<8x1xf32> to vector<8x8xf32>
    %56 = arith.subf %52, %55 : vector<8x8xf32>
    %57 = math.exp %56 : vector<8x8xf32>
    %cst_26 = arith.constant dense<0.000000e+00> : vector<8xf32>
    %58 = vector.multi_reduction <add>, %57, %cst_26 [1] : vector<8x8xf32> to vector<8xf32>
    %59 = vector.shape_cast %58 : vector<8xf32> to vector<8x1xf32>
    %60 = tpu.reciprocal %59 : vector<8x1xf32> -> vector<8x1xf32>
    %61 = vector.broadcast %60 : vector<8x1xf32> to vector<8x8xf32>
    %62 = arith.mulf %57, %61 : vector<8x8xf32>
    %cst_27 = arith.constant dense<0.000000e+00> : vector<8x8xf32>
    %63 = tpu.matmul %62, %51, %cst_27 {dimension_numbers = #tpu.dot_dimension_numbers<[1], [0], [0], [1], [0, 0, 1, 1], [], []>} : vector<8x8xf32>, vector<8x8xf32>, vector<8x8xf32> -> vector<8x8xf32>
    %c8 = arith.constant 8 : index
    %c0_28 = arith.constant 0 : index
    %64 = vector.load %arg6[%c8, %c0_28] : memref<32x32xf32, #tpu.memory_space<vmem>>, vector<8x32xf32>
    %cst_29 = arith.constant dense<0.000000e+00> : vector<8x32xf32>
    %65 = tpu.matmul %63, %64, %cst_29 {dimension_numbers = #tpu.dot_dimension_numbers<[1], [0], [0], [1], [0, 0, 1, 1], [], []>} : vector<8x8xf32>, vector<8x32xf32>, vector<8x32xf32> -> vector<8x32xf32>
    %c0_30 = arith.constant 0 : index
    %c0_31 = arith.constant 0 : index
    %66 = vector.load %arg15[%c0_30, %c0_31] : memref<8x32xf32, #tpu.memory_space<vmem>>, vector<8x32xf32>
    %67 = arith.addf %66, %65 : vector<8x32xf32>
    %c0_32 = arith.constant 0 : index
    %c0_33 = arith.constant 0 : index
    %68 = vector.load %arg15[%c0_32, %c0_33] : memref<8x32xf32, #tpu.memory_space<vmem>>, vector<8x32xf32>
    tpu.vector_store %arg15[%c0_32, %c0_33], %67 {strides = array<i32>} : memref<8x32xf32, #tpu.memory_space<vmem>>, vector<8x32xf32>,
    %69 = vector.extract_strided_slice %30 {offsets = [0, 16], sizes = [8, 8], strides = [1, 1]} : vector<8x96xf32> to vector<8x8xf32>
    %70 = vector.extract_strided_slice %30 {offsets = [0, 48], sizes = [8, 8], strides = [1, 1]} : vector<8x96xf32> to vector<8x8xf32>
    %71 = vector.extract_strided_slice %30 {offsets = [0, 80], sizes = [8, 8], strides = [1, 1]} : vector<8x96xf32> to vector<8x8xf32>
    %cst_34 = arith.constant dense<0.000000e+00> : vector<8x8xf32>
    %72 = tpu.matmul %69, %70, %cst_34 {dimension_numbers = #tpu.dot_dimension_numbers<[1], [1], [0], [0], [0, 0, 1, 0], [], []>} : vector<8x8xf32>, vector<8x8xf32>, vector<8x8xf32> -> vector<8x8xf32>
    %cst_35 = arith.constant dense<0xFF800000> : vector<8xf32>
    %73 = vector.multi_reduction <maximumf>, %72, %cst_35 [1] : vector<8x8xf32> to vector<8xf32>
    %74 = vector.shape_cast %73 : vector<8xf32> to vector<8x1xf32>
    %75 = vector.broadcast %74 : vector<8x1xf32> to vector<8x8xf32>
    %76 = arith.subf %72, %75 : vector<8x8xf32>
    %77 = math.exp %76 : vector<8x8xf32>
    %cst_36 = arith.constant dense<0.000000e+00> : vector<8xf32>
    %78 = vector.multi_reduction <add>, %77, %cst_36 [1] : vector<8x8xf32> to vector<8xf32>
    %79 = vector.shape_cast %78 : vector<8xf32> to vector<8x1xf32>
    %80 = tpu.reciprocal %79 : vector<8x1xf32> -> vector<8x1xf32>
    %81 = vector.broadcast %80 : vector<8x1xf32> to vector<8x8xf32>
    %82 = arith.mulf %77, %81 : vector<8x8xf32>
    %cst_37 = arith.constant dense<0.000000e+00> : vector<8x8xf32>
    %83 = tpu.matmul %82, %71, %cst_37 {dimension_numbers = #tpu.dot_dimension_numbers<[1], [0], [0], [1], [0, 0, 1, 1], [], []>} : vector<8x8xf32>, vector<8x8xf32>, vector<8x8xf32> -> vector<8x8xf32>
    %c16 = arith.constant 16 : index
    %c0_38 = arith.constant 0 : index
    %84 = vector.load %arg6[%c16, %c0_38] : memref<32x32xf32, #tpu.memory_space<vmem>>, vector<8x32xf32>
    %cst_39 = arith.constant dense<0.000000e+00> : vector<8x32xf32>
    %85 = tpu.matmul %83, %84, %cst_39 {dimension_numbers = #tpu.dot_dimension_numbers<[1], [0], [0], [1], [0, 0, 1, 1], [], []>} : vector<8x8xf32>, vector<8x32xf32>, vector<8x32xf32> -> vector<8x32xf32>
    %c0_40 = arith.constant 0 : index
    %c0_41 = arith.constant 0 : index
    %86 = vector.load %arg15[%c0_40, %c0_41] : memref<8x32xf32, #tpu.memory_space<vmem>>, vector<8x32xf32>
    %87 = arith.addf %86, %85 : vector<8x32xf32>
    %c0_42 = arith.constant 0 : index
    %c0_43 = arith.constant 0 : index
    %88 = vector.load %arg15[%c0_42, %c0_43] : memref<8x32xf32, #tpu.memory_space<vmem>>, vector<8x32xf32>
    tpu.vector_store %arg15[%c0_42, %c0_43], %87 {strides = array<i32>} : memref<8x32xf32, #tpu.memory_space<vmem>>, vector<8x32xf32>,
    %89 = vector.extract_strided_slice %30 {offsets = [0, 24], sizes = [8, 8], strides = [1, 1]} : vector<8x96xf32> to vector<8x8xf32>
    %90 = vector.extract_strided_slice %30 {offsets = [0, 56], sizes = [8, 8], strides = [1, 1]} : vector<8x96xf32> to vector<8x8xf32>
    %91 = vector.extract_strided_slice %30 {offsets = [0, 88], sizes = [8, 8], strides = [1, 1]} : vector<8x96xf32> to vector<8x8xf32>
    %cst_44 = arith.constant dense<0.000000e+00> : vector<8x8xf32>
    %92 = tpu.matmul %89, %90, %cst_44 {dimension_numbers = #tpu.dot_dimension_numbers<[1], [1], [0], [0], [0, 0, 1, 0], [], []>} : vector<8x8xf32>, vector<8x8xf32>, vector<8x8xf32> -> vector<8x8xf32>
    %cst_45 = arith.constant dense<0xFF800000> : vector<8xf32>
    %93 = vector.multi_reduction <maximumf>, %92, %cst_45 [1] : vector<8x8xf32> to vector<8xf32>
    %94 = vector.shape_cast %93 : vector<8xf32> to vector<8x1xf32>
    %95 = vector.broadcast %94 : vector<8x1xf32> to vector<8x8xf32>
    %96 = arith.subf %92, %95 : vector<8x8xf32>
    %97 = math.exp %96 : vector<8x8xf32>
    %cst_46 = arith.constant dense<0.000000e+00> : vector<8xf32>
    %98 = vector.multi_reduction <add>, %97, %cst_46 [1] : vector<8x8xf32> to vector<8xf32>
    %99 = vector.shape_cast %98 : vector<8xf32> to vector<8x1xf32>
    %100 = tpu.reciprocal %99 : vector<8x1xf32> -> vector<8x1xf32>
    %101 = vector.broadcast %100 : vector<8x1xf32> to vector<8x8xf32>
    %102 = arith.mulf %97, %101 : vector<8x8xf32>
    %cst_47 = arith.constant dense<0.000000e+00> : vector<8x8xf32>
    %103 = tpu.matmul %102, %91, %cst_47 {dimension_numbers = #tpu.dot_dimension_numbers<[1], [0], [0], [1], [0, 0, 1, 1], [], []>} : vector<8x8xf32>, vector<8x8xf32>, vector<8x8xf32> -> vector<8x8xf32>
    %c24 = arith.constant 24 : index
    %c0_48 = arith.constant 0 : index
    %104 = vector.load %arg6[%c24, %c0_48] : memref<32x32xf32, #tpu.memory_space<vmem>>, vector<8x32xf32>
    %cst_49 = arith.constant dense<0.000000e+00> : vector<8x32xf32>
    %105 = tpu.matmul %103, %104, %cst_49 {dimension_numbers = #tpu.dot_dimension_numbers<[1], [0], [0], [1], [0, 0, 1, 1], [], []>} : vector<8x8xf32>, vector<8x32xf32>, vector<8x32xf32> -> vector<8x32xf32>
    %c0_50 = arith.constant 0 : index
    %c0_51 = arith.constant 0 : index
    %106 = vector.load %arg15[%c0_50, %c0_51] : memref<8x32xf32, #tpu.memory_space<vmem>>, vector<8x32xf32>
    %107 = arith.addf %106, %105 : vector<8x32xf32>
    %c0_52 = arith.constant 0 : index
    %c0_53 = arith.constant 0 : index
    %108 = vector.load %arg15[%c0_52, %c0_53] : memref<8x32xf32, #tpu.memory_space<vmem>>, vector<8x32xf32>
    tpu.vector_store %arg15[%c0_52, %c0_53], %107 {strides = array<i32>} : memref<8x32xf32, #tpu.memory_space<vmem>>, vector<8x32xf32>,
    %c0_54 = arith.constant 0 : index
    %c0_55 = arith.constant 0 : index
    %109 = vector.load %arg15[%c0_54, %c0_55] : memref<8x32xf32, #tpu.memory_space<vmem>>, vector<8x32xf32>
    %110 = arith.addf %1, %109 : vector<8x32xf32>
    %c0_56 = arith.constant 0 : index
    %c0_57 = arith.constant 0 : index
    %111 = vector.load %arg7[%c0_56, %c0_57] : memref<1x32xf32, #tpu.memory_space<vmem>>, vector<1x32xf32>
    %112 = vector.broadcast %111 : vector<1x32xf32> to vector<8x32xf32>
    %113 = arith.addf %110, %112 : vector<8x32xf32>
    %c0_58 = arith.constant 0 : index
    %c0_59 = arith.constant 0 : index
    %114 = vector.load %arg8[%c0_58, %c0_59] : memref<1x32xf32, #tpu.memory_space<vmem>>, vector<1x32xf32>
    %c0_60 = arith.constant 0 : index
    %c0_61 = arith.constant 0 : index
    %115 = vector.load %arg9[%c0_60, %c0_61] : memref<1x32xf32, #tpu.memory_space<vmem>>, vector<1x32xf32>
    %cst_62 = arith.constant dense<0.000000e+00> : vector<8xf32>
    %116 = vector.multi_reduction <add>, %113, %cst_62 [1] : vector<8x32xf32> to vector<8xf32>
    %117 = vector.shape_cast %116 : vector<8xf32> to vector<8x1xf32>
    %cst_63 = arith.constant 3.200000e+01 : f32
    %118 = vector.broadcast %cst_63 : f32 to vector<8x1xf32>
    %119 = arith.divf %117, %118 : vector<8x1xf32>
    %120 = vector.broadcast %119 : vector<8x1xf32> to vector<8x32xf32>
    %121 = arith.subf %113, %120 : vector<8x32xf32>
    %122 = arith.mulf %121, %121 : vector<8x32xf32>
    %cst_64 = arith.constant dense<0.000000e+00> : vector<8xf32>
    %123 = vector.multi_reduction <add>, %122, %cst_64 [1] : vector<8x32xf32> to vector<8xf32>
    %124 = vector.shape_cast %123 : vector<8xf32> to vector<8x1xf32>
    %cst_65 = arith.constant 3.200000e+01 : f32
    %125 = vector.broadcast %cst_65 : f32 to vector<8x1xf32>
    %126 = arith.divf %124, %125 : vector<8x1xf32>
    %127 = vector.broadcast %119 : vector<8x1xf32> to vector<8x32xf32>
    %128 = arith.subf %113, %127 : vector<8x32xf32>
    %cst_66 = arith.constant 9.99999974E-6 : f32
    %129 = vector.broadcast %cst_66 : f32 to vector<8x1xf32>
    %130 = arith.addf %126, %129 : vector<8x1xf32>
    %131 = math.rsqrt %130 : vector<8x1xf32>
    %132 = vector.broadcast %131 : vector<8x1xf32> to vector<8x32xf32>
    %133 = arith.mulf %128, %132 : vector<8x32xf32>
    %134 = vector.broadcast %114 : vector<1x32xf32> to vector<8x32xf32>
    %135 = arith.mulf %133, %134 : vector<8x32xf32>
    %136 = vector.broadcast %115 : vector<1x32xf32> to vector<8x32xf32>
    %137 = arith.addf %135, %136 : vector<8x32xf32>
    %c0_67 = arith.constant 0 : index
    %c0_68 = arith.constant 0 : index
    %138 = vector.load %arg10[%c0_67, %c0_68] : memref<32x128xf32, #tpu.memory_space<vmem>>, vector<32x128xf32>
    %cst_69 = arith.constant dense<0.000000e+00> : vector<8x128xf32>
    %139 = tpu.matmul %137, %138, %cst_69 {dimension_numbers = #tpu.dot_dimension_numbers<[1], [0], [0], [1], [0, 0, 1, 1], [], []>} : vector<8x32xf32>, vector<32x128xf32>, vector<8x128xf32> -> vector<8x128xf32>
    %c0_70 = arith.constant 0 : index
    %c0_71 = arith.constant 0 : index
    %140 = vector.load %arg11[%c0_70, %c0_71] : memref<1x128xf32, #tpu.memory_space<vmem>>, vector<1x128xf32>
    %141 = vector.broadcast %140 : vector<1x128xf32> to vector<8x128xf32>
    %142 = arith.addf %139, %141 : vector<8x128xf32>
    %cst_72 = arith.constant 5.000000e-01 : f32
    %143 = vector.broadcast %cst_72 : f32 to vector<8x128xf32>
    %144 = arith.mulf %143, %142 : vector<8x128xf32>
    %cst_73 = arith.constant 2.000000e+00 : f32
    %145 = math.sqrt %cst_73 : f32
    %146 = vector.broadcast %145 : f32 to vector<8x128xf32>
    %147 = arith.divf %142, %146 : vector<8x128xf32>
    %148 = math.erf %147 : vector<8x128xf32>
    %cst_74 = arith.constant 1.000000e+00 : f32
    %149 = vector.broadcast %cst_74 : f32 to vector<8x128xf32>
    %150 = arith.addf %149, %148 : vector<8x128xf32>
    %151 = arith.mulf %144, %150 : vector<8x128xf32>
    %c0_75 = arith.constant 0 : index
    %c0_76 = arith.constant 0 : index
    %152 = vector.load %arg12[%c0_75, %c0_76] : memref<128x32xf32, #tpu.memory_space<vmem>>, vector<128x32xf32>
    %cst_77 = arith.constant dense<0.000000e+00> : vector<8x32xf32>
    %153 = tpu.matmul %151, %152, %cst_77 {dimension_numbers = #tpu.dot_dimension_numbers<[1], [0], [0], [1], [0, 0, 1, 1], [], []>} : vector<8x128xf32>, vector<128x32xf32>, vector<8x32xf32> -> vector<8x32xf32>
    %c0_78 = arith.constant 0 : index
    %c0_79 = arith.constant 0 : index
    %154 = vector.load %arg15[%c0_78, %c0_79] : memref<8x32xf32, #tpu.memory_space<vmem>>, vector<8x32xf32>
    tpu.vector_store %arg15[%c0_78, %c0_79], %153 {strides = array<i32>} : memref<8x32xf32, #tpu.memory_space<vmem>>, vector<8x32xf32>,
    %c0_80 = arith.constant 0 : index
    %c0_81 = arith.constant 0 : index
    %155 = vector.load %arg15[%c0_80, %c0_81] : memref<8x32xf32, #tpu.memory_space<vmem>>, vector<8x32xf32>
    %156 = arith.addf %113, %155 : vector<8x32xf32>
    %c0_82 = arith.constant 0 : index
    %c0_83 = arith.constant 0 : index
    %157 = vector.load %arg13[%c0_82, %c0_83] : memref<1x32xf32, #tpu.memory_space<vmem>>, vector<1x32xf32>
    %158 = vector.broadcast %157 : vector<1x32xf32> to vector<8x32xf32>
    %159 = arith.addf %156, %158 : vector<8x32xf32>
    %c0_84 = arith.constant 0 : index
    %c0_85 = arith.constant 0 : index
    %c0_86 = arith.constant 0 : index
    %160 = vector.load %arg14[%c0_84, %c0_85, %c0_86] : memref<1x8x32xf32, #tpu.memory_space<vmem>>, vector<1x8x32xf32>
    %161 = vector.shape_cast %160 : vector<1x8x32xf32> to vector<8x32xf32>
    %162 = vector.shape_cast %159 : vector<8x32xf32> to vector<1x8x32xf32>
    tpu.vector_store %arg14[%c0_84, %c0_85, %c0_86], %162 {strides = array<i32>} : memref<1x8x32xf32, #tpu.memory_space<vmem>>, vector<1x8x32xf32>,
    return
  }
  func.func @transform_0(%arg0: i32) -> (i32, i32, i32) {
    %c0_i32 = arith.constant 0 : i32
    %c0_i32_0 = arith.constant 0 : i32
    %c0_i32_1 = arith.constant 0 : i32
    return %arg0, %c0_i32, %c0_i32_0 : i32, i32, i32
  }
  func.func @transform_1(%arg0: i32) -> (i32, i32) {
    %c0_i32 = arith.constant 0 : i32
    %c0_i32_0 = arith.constant 0 : i32
    %c0_i32_1 = arith.constant 0 : i32
    return %c0_i32, %c0_i32_0 : i32, i32
  }
  func.func @transform_2(%arg0: i32) -> (i32, i32) {
    %c0_i32 = arith.constant 0 : i32
    %c0_i32_0 = arith.constant 0 : i32
    %c0_i32_1 = arith.constant 0 : i32
    return %c0_i32, %c0_i32_0 : i32, i32
  }
  func.func @transform_3(%arg0: i32) -> (i32, i32) {
    %c0_i32 = arith.constant 0 : i32
    %c0_i32_0 = arith.constant 0 : i32
    %c0_i32_1 = arith.constant 0 : i32
    return %c0_i32, %c0_i32_0 : i32, i32
  }
  func.func @transform_4(%arg0: i32) -> (i32, i32) {
    %c0_i32 = arith.constant 0 : i32
    %c0_i32_0 = arith.constant 0 : i32
    %c0_i32_1 = arith.constant 0 : i32
    return %c0_i32, %c0_i32_0 : i32, i32
  }
  func.func @transform_5(%arg0: i32) -> (i32, i32) {
    %c0_i32 = arith.constant 0 : i32
    %c0_i32_0 = arith.constant 0 : i32
    %c0_i32_1 = arith.constant 0 : i32
    return %c0_i32, %c0_i32_0 : i32, i32
  }
  func.func @transform_6(%arg0: i32) -> (i32, i32) {
    %c0_i32 = arith.constant 0 : i32
    %c0_i32_0 = arith.constant 0 : i32
    %c0_i32_1 = arith.constant 0 : i32
    return %c0_i32, %c0_i32_0 : i32, i32
  }
  func.func @transform_7(%arg0: i32) -> (i32, i32) {
    %c0_i32 = arith.constant 0 : i32
    %c0_i32_0 = arith.constant 0 : i32
    %c0_i32_1 = arith.constant 0 : i32
    return %c0_i32, %c0_i32_0 : i32, i32
  }
  func.func @transform_8(%arg0: i32) -> (i32, i32) {
    %c0_i32 = arith.constant 0 : i32
    %c0_i32_0 = arith.constant 0 : i32
    %c0_i32_1 = arith.constant 0 : i32
    return %c0_i32, %c0_i32_0 : i32, i32
  }
  func.func @transform_9(%arg0: i32) -> (i32, i32) {
    %c0_i32 = arith.constant 0 : i32
    %c0_i32_0 = arith.constant 0 : i32
    %c0_i32_1 = arith.constant 0 : i32
    return %c0_i32, %c0_i32_0 : i32, i32
  }
  func.func @transform_10(%arg0: i32) -> (i32, i32) {
    %c0_i32 = arith.constant 0 : i32
    %c0_i32_0 = arith.constant 0 : i32
    %c0_i32_1 = arith.constant 0 : i32
    return %c0_i32, %c0_i32_0 : i32, i32
  }
  func.func @transform_11(%arg0: i32) -> (i32, i32) {
    %c0_i32 = arith.constant 0 : i32
    %c0_i32_0 = arith.constant 0 : i32
    %c0_i32_1 = arith.constant 0 : i32
    return %c0_i32, %c0_i32_0 : i32, i32
  }
  func.func @transform_12(%arg0: i32) -> (i32, i32) {
    %c0_i32 = arith.constant 0 : i32
    %c0_i32_0 = arith.constant 0 : i32
    %c0_i32_1 = arith.constant 0 : i32
    return %c0_i32, %c0_i32_0 : i32, i32
  }
  func.func @transform_13(%arg0: i32) -> (i32, i32, i32) {
    %c0_i32 = arith.constant 0 : i32
    %c0_i32_0 = arith.constant 0 : i32
    %c0_i32_1 = arith.constant 0 : i32
    return %arg0, %c0_i32, %c0_i32_0 : i32, i32, i32
  }
}

</mosaic_0001>

<bundles_post_ra>
// kernel: tpu_custom_call.1
= control target key start
LH: loop header
LB: loop body
LE: loop exit
PB: predicated region body
PF: predicated region fallthrough
CT: control target
= control target key end

     0   :  { %s3721_s0 = inlined_call_operand.hbm [shape: f32[2,8,32], index: 0, kind: input, shape index: {}]   ;;  %s3722_s1 = inlined_call_operand.hbm [shape: f32[1,32], index: 1, kind: input, shape index: {}]   ;;  %s3723_s2 = inlined_call_operand.hbm [shape: f32[1,32], index: 2, kind: input, shape index: {}]   ;;  %s3724_s3 = inlined_call_operand.hbm [shape: f32[32,96], index: 3, kind: input, shape index: {}]   ;;  %s3725_s4 = inlined_call_operand.hbm [shape: f32[1,96], index: 4, kind: input, shape index: {}]   ;;  %s3726_s5 = inlined_call_operand.hbm [shape: f32[32,32], index: 5, kind: input, shape index: {}]   ;;  %s3727_s6 = inlined_call_operand.hbm [shape: f32[1,32], index: 6, kind: input, shape index: {}]   ;;  %s3728_s7 = inlined_call_operand.hbm [shape: f32[1,32], index: 7, kind: input, shape index: {}]   ;;  %s3729_s8 = inlined_call_operand.hbm [shape: f32[1,32], index: 8, kind: input, shape index: {}]   ;;  %s3730_s9 = inlined_call_operand.hbm [shape: f32[32,128], index: 9, kind: input, shape index: {}]   ;;  %s3731_s10 = inlined_call_operand.hbm [shape: f32[1,128], index: 10, kind: input, shape index: {}]   ;;  %s3732_s11 = inlined_call_operand.hbm [shape: f32[128,32], index: 11, kind: input, shape index: {}]   ;;  %s3733_s12 = inlined_call_operand.hbm [shape: f32[1,32], index: 12, kind: input, shape index: {}]   ;;  %s3734_s13 = inlined_call_operand.hbm [shape: f32[2,8,32], index: 13, kind: output, shape index: {}]  }
   0x1   :  { %3744 = sst [smem:[#allocation35_spill]] %s3721_s0 }
   0x2   :  { %3745 = sst [smem:[#allocation36_spill]] %s3722_s1 }
   0x3   :  { %3746 = sst [smem:[#allocation37_spill]] %s3723_s2 }
   0x4   :  { %3747 = sst [smem:[#allocation38_spill]] %s3724_s3 }
   0x5   :  { %3748 = sst [smem:[#allocation39_spill]] %s3734_s13 }
   0x6   :  { %18 = vsyncpa [#allocation4], 0 }
   0x7   :  { %20 = vsyncpa [#allocation4 + $0x1], 0 }
   0x8   :  { %21 = vsyncpa [#allocation7], 0 }
   0x9   :  { %22 = vsyncpa [#allocation10], 0 }
   0xa   :  { %23 = vsyncpa [#allocation13], 0 }
   0xb   :  { %24 = vsyncpa [#allocation16], 0 }
   0xc   :  { %25 = vsyncpa [#allocation19], 0 }
   0xd   :  { %26 = vsyncpa [#allocation22], 0 }
   0xe   :  { %27 = vsyncpa [#allocation5], 0 }
   0xf   :  { %29 = vsyncpa [#allocation5 + $0x1], 0  ;;  %s3150_s25 = smov 0   ;;  %s3152_s26 = smov 0  }
  0x10   :  { %s3154_s27 = smov 0   ;;  %s3156_s28 = smov 0  }
  0x11 LB: > { %s3050_s29 = smov [#allocation6]   ;;  %s3171_s14 = sadd.s32 4294967295, %s3048_s28   ;;  %s3048_s28 = sphi %s3156_s28, %s3787_s28   ;;  %s3044_s27 = sphi %s3154_s27, %s3786_s27   ;;  %s3040_s26 = sphi %s3152_s26, %s3785_s26   ;;  %s3036_s25 = sphi %s3150_s25, %s3784_s25  }
  0x12   : > { %s357_s30 = sshll.u32 %s3050_s29, 4  ;;  %3749 = sst [smem:[#allocation33_spill]] %s3171_s14  ;;  %s3176_s30 = int_to_ptr.vmem [resolvable:$true] %s357_s30 }
  0x13   : > { %p2122_p0 = scmp.ge.s32.totalorder %s3048_s28, 1  ;;  %p3741_p1 = scmp.eq.s32.totalorder %s3171_s14, 0 }
  0x14   : > { %p344_p2 = scmp.lt.s32.totalorder %s3048_s28, 3  ;;  %s3051_s16 = smov [#allocation9]  }
  0x15   : > { %s378_s17 = sshll.u32 %s3051_s16, 4  ;;  %s3052_s19 = smov [#allocation12]   ;;  %s3185_s17 = int_to_ptr.vmem [resolvable:$true] %s378_s17 }
  0x16   : > { %p3178_p3 = pnand %p2122_p0, %p344_p2  ;;  %s402_s20 = sshll.u32 %s3052_s19, 4  ;;  %s3193_s20 = int_to_ptr.vmem [resolvable:$true] %s402_s20 }
  0x17   : > { %s3753_s1 = sld [smem:[#allocation36_spill]] }
  0x18   : > { %s3750_s15 = scalar_select %p3178_p3, 1, 0 }
  0x19   : > { %p2439_p5 = pneg %p3178_p3 }
  0x1a   : > { %3751 = sst [smem:[#allocation34_spill]] %s3750_s15 }
  0x1b   : > { %p3189_p6 = pnand %p2439_p5, %p3741_p1 }
  0x1d   : > { %s2592_s23 = scalar_lea.hbm %s3753_s1, 16  ;;  %p3203_p8 = pneg %p3189_p6 }
  0x1e   : > { %p2593_p7 = scmp.ne.s32.totalorder %s3753_s1, %s2592_s23  ;;  %p2599_p11 = scmp.lt.u32.totalorder %s2592_s23, %s3753_s1 }
  0x20   : > { %p2595_p9 = pnand %p3203_p8, %p2593_p7 }
  0x22   : > { %p2596_p10 = pneg %p2595_p9 }
  0x24   : > { %p2601_p12 = pnand %p2599_p11, %p2596_p10 }
  0x26   : > { %2604 = shalt.err (!%p2601_p12)
}
  0x27   : > { %s2605_s21 = scalar_lea.vmem %s3176_s30, 16  ;;  %s2612_s22 = scalar_lea.vmem %s3176_s30, 32 }
  0x28   : > { %p2606_p13 = scmp.ne.s32.totalorder %s3176_s30, %s2605_s21  ;;  %p2613_p5 = scmp.lt.s32.totalorder %s3176_s30, %s3176_s30 }
  0x29   : > { %p2614_p7 = scmp.lt.s32.totalorder %s2612_s22, %s2605_s21 }
  0x2a   : > { %p2608_p0 = pnand %p2606_p13, %p3203_p8 }
  0x2b   : > { %p2615_p9 = por %p2614_p7, %p2613_p5 }
  0x2c   : > { %p2609_p2 = pneg %p2608_p0 }
  0x2e   : > { %p2616_p4 = pnand %p2615_p9, %p2609_p2 }
  0x30   : > { %2619 = shalt.err (!%p2616_p4)
}
  0x31   : > { %2442 = dma.hbm_to_vmem [thread:$0]  (!%p3189_p6), %s3753_s1, 16, %s3176_s30, [#allocation7]  }
  0x32   : > { %s3755_s3 = sld [smem:[#allocation38_spill]] }
  0x38   : > { %s2620_s19 = scalar_lea.hbm %s3755_s3, 512 }
  0x39   : > { %p2621_p10 = scmp.ne.s32.totalorder %s3755_s3, %s2620_s19  ;;  %p2627_p4 = scmp.lt.u32.totalorder %s2620_s19, %s3755_s3 }
  0x3b   : > { %p2623_p11 = pnand %p2621_p10, %p3203_p8 }
  0x3d   : > { %p2624_p12 = pneg %p2623_p11 }
  0x3f   : > { %p2629_p13 = pnand %p2627_p4, %p2624_p12 }
  0x41   : > { %2632 = shalt.err (!%p2629_p13)
}
  0x42   : > { %s2633_s30 = scalar_lea.vmem %s3185_s17, 512  ;;  %p2641_p7 = scmp.lt.s32.totalorder %s3185_s17, %s3185_s17 }
  0x43   : > { %p2634_p0 = scmp.ne.s32.totalorder %s3185_s17, %s2633_s30  ;;  %p2642_p9 = scmp.lt.s32.totalorder %s2633_s30, %s2633_s30 }
  0x45   : > { %p2636_p2 = pnand %p2634_p0, %p3203_p8  ;;  %p2643_p10 = por %p2642_p9, %p2641_p7 }
  0x47   : > { %p2637_p5 = pneg %p2636_p2 }
  0x49   : > { %p2644_p11 = pnand %p2643_p10, %p2637_p5 }
  0x4b   : > { %2647 = shalt.err (!%p2644_p11)
}
  0x4c   : > { %s3053_s0 = smov 128   ;;  %s3054_s15 = smov 8  }
  0x4d   : > { %2448 = dma.hbm_to_vmem [thread:$0]  (!%p3189_p6), %s3755_s3, 512, %s3185_s17, [#allocation10], %s3053_s0, %s3053_s0, %s3054_s15  }
  0x4e   : > { %s2648_s19 = scalar_lea.hbm %s3726_s5, 512 }
  0x4f   : > { %p2649_p12 = scmp.ne.s32.totalorder %s3726_s5, %s2648_s19  ;;  %p2655_p0 = scmp.lt.u32.totalorder %s2648_s19, %s3726_s5 }
  0x51   : > { %p2651_p4 = pnand %p2649_p12, %p3203_p8 }
  0x53   : > { %p2652_p13 = pneg %p2651_p4 }
  0x55   : > { %p2657_p2 = pnand %p2655_p0, %p2652_p13 }
  0x57   : > { %2660 = shalt.err (!%p2657_p2)
}
  0x58   : > { %s2661_s17 = scalar_lea.vmem %s3193_s20, 512  ;;  %p2669_p10 = scmp.lt.s32.totalorder %s3193_s20, %s3193_s20 }
  0x59   : > { %p2662_p5 = scmp.ne.s32.totalorder %s3193_s20, %s2661_s17  ;;  %p2670_p11 = scmp.lt.s32.totalorder %s2661_s17, %s2661_s17 }
  0x5b   : > { %p2664_p7 = pnand %p2662_p5, %p3203_p8  ;;  %p2671_p12 = por %p2670_p11, %p2669_p10 }
  0x5d   : > { %p2665_p9 = pneg %p2664_p7 }
  0x5f   : > { %p2672_p4 = pnand %p2671_p12, %p2665_p9 }
  0x61   : > { %2675 = shalt.err (!%p2672_p4)
}
  0x62   : > { %2454 = dma.hbm_to_vmem [thread:$0]  (!%p3189_p6), %s3726_s5, 512, %s3193_s20, [#allocation13], %s3053_s0, %s3053_s0, %s3054_s15  }
  0x63   : > { %s3055_s23 = smov [#allocation15]   ;;  %s3056_s29 = smov [#allocation18]  }
  0x64   : > { %s427_s24 = sshll.u32 %s3055_s23, 4  ;;  %s448_s19 = sshll.u32 %s3056_s29, 4  ;;  %s428_s24 = int_to_ptr.vmem [resolvable:$true] %s427_s24  ;;  %s449_s19 = int_to_ptr.vmem [resolvable:$true] %s448_s19 }
  0x65   : > { %s2676_s30 = scalar_lea.hbm %s3728_s7, 16 }
  0x66   : > { %p2677_p13 = scmp.ne.s32.totalorder %s3728_s7, %s2676_s30  ;;  %p2683_p5 = scmp.lt.u32.totalorder %s2676_s30, %s3728_s7 }
  0x68   : > { %p2679_p0 = pnand %p2677_p13, %p3203_p8 }
  0x6a   : > { %p2680_p2 = pneg %p2679_p0 }
  0x6c   : > { %p2685_p7 = pnand %p2683_p5, %p2680_p2 }
  0x6e   : > { %2688 = shalt.err (!%p2685_p7)
}
  0x6f   : > { %s2689_s20 = scalar_lea.vmem %s428_s24, 16  ;;  %s2696_s13 = scalar_lea.vmem %s428_s24, 32 }
  0x70   : > { %p2690_p9 = scmp.ne.s32.totalorder %s428_s24, %s2689_s20  ;;  %p2697_p12 = scmp.lt.s32.totalorder %s428_s24, %s428_s24 }
  0x71   : > { %p2698_p4 = scmp.lt.s32.totalorder %s2696_s13, %s2689_s20 }
  0x72   : > { %p2692_p10 = pnand %p2690_p9, %p3203_p8 }
  0x73   : > { %p2699_p1 = por %p2698_p4, %p2697_p12 }
  0x74   : > { %p2693_p11 = pneg %p2692_p10 }
  0x76   : > { %p2700_p3 = pnand %p2699_p1, %p2693_p11 }
  0x78   : > { %2703 = shalt.err (!%p2700_p3)
}
  0x79   : > { %2460 = dma.hbm_to_vmem [thread:$0]  (!%p3189_p6), %s3728_s7, 16, %s428_s24, [#allocation16]  }
  0x7a   : > { %s2704_s21 = scalar_lea.hbm %s3730_s9, 512 }
  0x7b   : > { %p2705_p13 = scmp.ne.s32.totalorder %s3730_s9, %s2704_s21  ;;  %p2711_p3 = scmp.lt.u32.totalorder %s2704_s21, %s3730_s9 }
  0x7d   : > { %p2707_p0 = pnand %p2705_p13, %p3203_p8 }
  0x7f   : > { %p2708_p1 = pneg %p2707_p0 }
  0x81   : > { %p2713_p2 = pnand %p2711_p3, %p2708_p1 }
  0x83   : > { %2716 = shalt.err (!%p2713_p2)
}
  0x84   : > { %s2717_s20 = scalar_lea.vmem %s449_s19, 512  ;;  %p2725_p10 = scmp.lt.s32.totalorder %s449_s19, %s449_s19 }
  0x85   : > { %p2718_p5 = scmp.ne.s32.totalorder %s449_s19, %s2717_s20  ;;  %p2726_p11 = scmp.lt.s32.totalorder %s2717_s20, %s2717_s20 }
  0x87   : > { %p2720_p7 = pnand %p2718_p5, %p3203_p8  ;;  %p2727_p12 = por %p2726_p11, %p2725_p10 }
  0x89   : > { %p2721_p9 = pneg %p2720_p7 }
  0x8b   : > { %p2728_p4 = pnand %p2727_p12, %p2721_p9 }
  0x8d   : > { %2731 = shalt.err (!%p2728_p4)
}
  0x8e   : > { %2466 = dma.hbm_to_vmem [thread:$0]  (!%p3189_p6), %s3730_s9, 512, %s449_s19, [#allocation19], %s3053_s0, %s3053_s0, %s3054_s15  }
  0x8f   : > { %s3057_s3 = smov [#allocation21]   ;;  %s3058_s14 = smov [#allocation8]  }
  0x90   : > { %s472_s23 = sshll.u32 %s3057_s3, 4  ;;  %s368_s29 = sshll.u32 %s3058_s14, 4  ;;  %s473_s23 = int_to_ptr.vmem [resolvable:$true] %s472_s23  ;;  %s369_s29 = int_to_ptr.vmem [resolvable:$true] %s368_s29 }
  0x91   : > { %s2732_s30 = scalar_lea.hbm %s3732_s11, 2048 }
  0x92   : > { %p2733_p13 = scmp.ne.s32.totalorder %s3732_s11, %s2732_s30  ;;  %p2739_p3 = scmp.lt.u32.totalorder %s2732_s30, %s3732_s11 }
  0x94   : > { %p2735_p0 = pnand %p2733_p13, %p3203_p8 }
  0x96   : > { %p2736_p1 = pneg %p2735_p0 }
  0x98   : > { %p2741_p2 = pnand %p2739_p3, %p2736_p1 }
  0x9a   : > { %2744 = shalt.err (!%p2741_p2)
}
  0x9b   : > { %s2745_s19 = scalar_lea.vmem %s473_s23, 2048  ;;  %p2753_p10 = scmp.lt.s32.totalorder %s473_s23, %s473_s23 }
  0x9c   : > { %p2746_p5 = scmp.ne.s32.totalorder %s473_s23, %s2745_s19  ;;  %p2754_p11 = scmp.lt.s32.totalorder %s2745_s19, %s2745_s19 }
  0x9e   : > { %p2748_p7 = pnand %p2746_p5, %p3203_p8  ;;  %p2755_p12 = por %p2754_p11, %p2753_p10 }
  0xa0   : > { %p2749_p9 = pneg %p2748_p7 }
  0xa2   : > { %p2756_p4 = pnand %p2755_p12, %p2749_p9 }
  0xa4   : > { %2759 = shalt.err (!%p2756_p4)
}
  0xa5   : > { %2472 = dma.hbm_to_vmem [thread:$0]  (!%p3189_p6), %s3732_s11, 2048, %s473_s23, [#allocation22], %s3053_s0, %s3053_s0, %s3054_s15  }
  0xa6   : > { %s3756_s2 = sld [smem:[#allocation37_spill]] }
  0xac   : > { %s2760_s22 = scalar_lea.hbm %s3756_s2, 16 }
  0xad   : > { %p2761_p13 = scmp.ne.s32.totalorder %s3756_s2, %s2760_s22  ;;  %p2767_p3 = scmp.lt.u32.totalorder %s2760_s22, %s3756_s2 }
  0xaf   : > { %p2763_p0 = pnand %p2761_p13, %p3203_p8 }
  0xb1   : > { %p2764_p1 = pneg %p2763_p0 }
  0xb3   : > { %p2769_p2 = pnand %p2767_p3, %p2764_p1 }
  0xb5   : > { %2772 = shalt.err (!%p2769_p2)
}
  0xb6   : > { %s2773_s24 = scalar_lea.vmem %s369_s29, 16  ;;  %s2780_s0 = scalar_lea.vmem %s369_s29, 32 }
  0xb7   : > { %p2774_p5 = scmp.ne.s32.totalorder %s369_s29, %s2773_s24  ;;  %p2781_p10 = scmp.lt.s32.totalorder %s369_s29, %s369_s29 }
  0xb8   : > { %p2782_p11 = scmp.lt.s32.totalorder %s2780_s0, %s2773_s24 }
  0xb9   : > { %p2776_p7 = pnand %p2774_p5, %p3203_p8 }
  0xba   : > { %p2783_p12 = por %p2782_p11, %p2781_p10 }
  0xbb   : > { %p2777_p9 = pneg %p2776_p7 }
  0xbd   : > { %p2784_p4 = pnand %p2783_p12, %p2777_p9 }
  0xbf   : > { %2787 = shalt.err (!%p2784_p4)
}
  0xc0   : > { %2445 = dma.hbm_to_vmem [thread:$0]  (!%p3189_p6), %s3756_s2, 16, %s369_s29, [#allocation7]  }
  0xc1   : > { %s3059_s19 = smov [#allocation11]   ;;  %s3060_s3 = smov [#allocation14]  }
  0xc2   : > { %s392_s13 = sshll.u32 %s3059_s19, 4  ;;  %s416_s14 = sshll.u32 %s3060_s3, 4  ;;  %s393_s13 = int_to_ptr.vmem [resolvable:$true] %s392_s13  ;;  %s417_s14 = int_to_ptr.vmem [resolvable:$true] %s416_s14 }
  0xc3   : > { %s2788_s30 = scalar_lea.hbm %s3725_s4, 16 }
  0xc4   : > { %p2789_p13 = scmp.ne.s32.totalorder %s3725_s4, %s2788_s30  ;;  %p2795_p3 = scmp.lt.u32.totalorder %s2788_s30, %s3725_s4 }
  0xc6   : > { %p2791_p0 = pnand %p2789_p13, %p3203_p8 }
  0xc8   : > { %p2792_p1 = pneg %p2791_p0 }
  0xca   : > { %p2797_p2 = pnand %p2795_p3, %p2792_p1 }
  0xcc   : > { %2800 = shalt.err (!%p2797_p2)
}
  0xcd   : > { %s2801_s29 = scalar_lea.vmem %s393_s13, 16  ;;  %s2808_s0 = scalar_lea.vmem %s393_s13, 32 }
  0xce   : > { %p2802_p5 = scmp.ne.s32.totalorder %s393_s13, %s2801_s29  ;;  %p2809_p10 = scmp.lt.s32.totalorder %s393_s13, %s393_s13 }
  0xcf   : > { %p2810_p11 = scmp.lt.s32.totalorder %s2808_s0, %s2801_s29 }
  0xd0   : > { %p2804_p7 = pnand %p2802_p5, %p3203_p8 }
  0xd1   : > { %p2811_p12 = por %p2810_p11, %p2809_p10 }
  0xd2   : > { %p2805_p9 = pneg %p2804_p7 }
  0xd4   : > { %p2812_p4 = pnand %p2811_p12, %p2805_p9 }
  0xd6   : > { %2815 = shalt.err (!%p2812_p4)
}
  0xd7   : > { %2451 = dma.hbm_to_vmem [thread:$0]  (!%p3189_p6), %s3725_s4, 16, %s393_s13, [#allocation10]  }
  0xd8   : > { %s2816_s21 = scalar_lea.hbm %s3727_s6, 16 }
  0xd9   : > { %p2817_p13 = scmp.ne.s32.totalorder %s3727_s6, %s2816_s21  ;;  %p2823_p3 = scmp.lt.u32.totalorder %s2816_s21, %s3727_s6 }
  0xdb   : > { %p2819_p0 = pnand %p2817_p13, %p3203_p8 }
  0xdd   : > { %p2820_p1 = pneg %p2819_p0 }
  0xdf   : > { %p2825_p2 = pnand %p2823_p3, %p2820_p1 }
  0xe1   : > { %2828 = shalt.err (!%p2825_p2)
}
  0xe2   : > { %s2829_s20 = scalar_lea.vmem %s417_s14, 16  ;;  %s2836_s13 = scalar_lea.vmem %s417_s14, 32 }
  0xe3   : > { %p2830_p5 = scmp.ne.s32.totalorder %s417_s14, %s2829_s20  ;;  %p2837_p10 = scmp.lt.s32.totalorder %s417_s14, %s417_s14 }
  0xe4   : > { %p2838_p11 = scmp.lt.s32.totalorder %s2836_s13, %s2829_s20 }
  0xe5   : > { %p2832_p7 = pnand %p2830_p5, %p3203_p8 }
  0xe6   : > { %p2839_p12 = por %p2838_p11, %p2837_p10 }
  0xe7   : > { %p2833_p9 = pneg %p2832_p7 }
  0xe9   : > { %p2840_p4 = pnand %p2839_p12, %p2833_p9 }
  0xeb   : > { %2843 = shalt.err (!%p2840_p4)
}
  0xec   : > { %2457 = dma.hbm_to_vmem [thread:$0]  (!%p3189_p6), %s3727_s6, 16, %s417_s14, [#allocation13]  }
  0xed   : > { %s3061_s0 = smov [#allocation17]   ;;  %s3062_s23 = smov [#allocation20]  }
  0xee   : > { %s438_s15 = sshll.u32 %s3061_s0, 4  ;;  %s462_s19 = sshll.u32 %s3062_s23, 4  ;;  %s439_s15 = int_to_ptr.vmem [resolvable:$true] %s438_s15  ;;  %s463_s19 = int_to_ptr.vmem [resolvable:$true] %s462_s19 }
  0xef   : > { %s2844_s22 = scalar_lea.hbm %s3729_s8, 16 }
  0xf0   : > { %p2845_p13 = scmp.ne.s32.totalorder %s3729_s8, %s2844_s22  ;;  %p2851_p3 = scmp.lt.u32.totalorder %s2844_s22, %s3729_s8 }
  0xf2   : > { %p2847_p0 = pnand %p2845_p13, %p3203_p8 }
  0xf4   : > { %p2848_p1 = pneg %p2847_p0 }
  0xf6   : > { %p2853_p2 = pnand %p2851_p3, %p2848_p1 }
  0xf8   : > { %2856 = shalt.err (!%p2853_p2)
}
  0xf9   : > { %s2857_s14 = scalar_lea.vmem %s439_s15, 16  ;;  %s2864_s13 = scalar_lea.vmem %s439_s15, 32 }
  0xfa   : > { %p2858_p5 = scmp.ne.s32.totalorder %s439_s15, %s2857_s14  ;;  %p2865_p10 = scmp.lt.s32.totalorder %s439_s15, %s439_s15 }
  0xfb   : > { %p2866_p11 = scmp.lt.s32.totalorder %s2864_s13, %s2857_s14 }
  0xfc   : > { %p2860_p7 = pnand %p2858_p5, %p3203_p8 }
  0xfd   : > { %p2867_p12 = por %p2866_p11, %p2865_p10 }
  0xfe   : > { %p2861_p9 = pneg %p2860_p7 }
 0x100   : > { %p2868_p4 = pnand %p2867_p12, %p2861_p9 }
 0x102   : > { %2871 = shalt.err (!%p2868_p4)
}
 0x103   : > { %2463 = dma.hbm_to_vmem [thread:$0]  (!%p3189_p6), %s3729_s8, 16, %s439_s15, [#allocation16]  }
 0x104   : > { %s2872_s3 = scalar_lea.hbm %s3731_s10, 16 }
 0x105   : > { %p2873_p13 = scmp.ne.s32.totalorder %s3731_s10, %s2872_s3  ;;  %p2879_p3 = scmp.lt.u32.totalorder %s2872_s3, %s3731_s10 }
 0x107   : > { %p2875_p0 = pnand %p2873_p13, %p3203_p8 }
 0x109   : > { %p2876_p1 = pneg %p2875_p0 }
 0x10b   : > { %p2881_p2 = pnand %p2879_p3, %p2876_p1 }
 0x10d   : > { %2884 = shalt.err (!%p2881_p2)
}
 0x10e   : > { %s2885_s1 = scalar_lea.vmem %s463_s19, 16  ;;  %s2892_s15 = scalar_lea.vmem %s463_s19, 32 }
 0x10f   : > { %p2886_p5 = scmp.ne.s32.totalorder %s463_s19, %s2885_s1  ;;  %p2893_p10 = scmp.lt.s32.totalorder %s463_s19, %s463_s19 }
 0x110   : > { %p2894_p11 = scmp.lt.s32.totalorder %s2892_s15, %s2885_s1 }
 0x111   : > { %p2888_p7 = pnand %p2886_p5, %p3203_p8 }
 0x112   : > { %p2895_p12 = por %p2894_p11, %p2893_p10 }
 0x113   : > { %p2889_p9 = pneg %p2888_p7 }
 0x115   : > { %p2896_p4 = pnand %p2895_p12, %p2889_p9 }
 0x117   : > { %2899 = shalt.err (!%p2896_p4)
}
 0x118   : > { %2469 = dma.hbm_to_vmem [thread:$0]  (!%p3189_p6), %s3731_s10, 16, %s463_s19, [#allocation19]  }
 0x119   : > { %s3063_s13 = smov [#allocation23]   ;;  %s2900_s23 = scalar_lea.hbm %s3733_s12, 16 }
 0x11a   : > { %s486_s24 = sshll.u32 %s3063_s13, 4  ;;  %p2901_p13 = scmp.ne.s32.totalorder %s3733_s12, %s2900_s23  ;;  %s487_s24 = int_to_ptr.vmem [resolvable:$true] %s486_s24 }
 0x11b   : > { %p2907_p3 = scmp.lt.u32.totalorder %s2900_s23, %s3733_s12 }
 0x11c   : > { %p2903_p0 = pnand %p2901_p13, %p3203_p8 }
 0x11e   : > { %p2904_p1 = pneg %p2903_p0 }
 0x120   : > { %p2909_p2 = pnand %p2907_p3, %p2904_p1 }
 0x122   : > { %2912 = shalt.err (!%p2909_p2)
}
 0x123   : > { %s2913_s19 = scalar_lea.vmem %s487_s24, 16  ;;  %s2920_s17 = scalar_lea.vmem %s487_s24, 32 }
 0x124   : > { %p2914_p5 = scmp.ne.s32.totalorder %s487_s24, %s2913_s19  ;;  %p2921_p10 = scmp.lt.s32.totalorder %s487_s24, %s487_s24 }
 0x125   : > { %p2922_p11 = scmp.lt.s32.totalorder %s2920_s17, %s2913_s19 }
 0x126   : > { %p2916_p7 = pnand %p2914_p5, %p3203_p8 }
 0x127   : > { %p2923_p12 = por %p2922_p11, %p2921_p10 }
 0x128   : > { %p2917_p9 = pneg %p2916_p7 }
 0x12a   : > { %p2924_p4 = pnand %p2923_p12, %p2917_p9 }
 0x12c   : > { %2927 = shalt.err (!%p2924_p4)
}
 0x12d   : > { %s3757_s16 = sld [smem:[#allocation33_spill]]  ;;  %s2121_s20 = sadd.s32 4294967294, %s3048_s28  }
 0x12e   : > { %2475 = dma.hbm_to_vmem [thread:$0]  (!%p3189_p6), %s3733_s12, 16, %s487_s24, [#allocation22]  }
 0x12f   : > { %s3447_s18 = sadd.s32 1, %s3048_s28   ;;  %s42_s13 = sadd.s32 1, %s3044_s27 }
 0x130   : > { %s39_s14 = ssub.s32 %s3048_s28, %s3447_s18  ;;  %p49_p13 = scmp.ne.s32.totalorder %s3044_s27, %s3040_s26 }
 0x131   : > { %p40_p8 = scmp.eq.s32.totalorder %s39_s14, 0  ;;  %p50_p0 = scmp.eq.s32.totalorder %s3048_s28, 0 }
 0x132   : > { %p55_p1 = scmp.ne.s32.totalorder %s3040_s26, %s3036_s25  ;;  %p337_p7 = scmp.eq.s32.totalorder %s2121_s20, 1 }
 0x133   : > { %s3458_s29 = scalar_select %p40_p8, %s3044_s27, %s42_s13  }
 0x134   : > { %p3460_p3 = por %p50_p0, %p49_p13  ;;  %p3759_p2 = scmp.eq.s32.totalorder %s3757_s16, 0 }
 0x135   : > { %p331_p5 = scmp.eq.s32.totalorder %s3757_s16, 1  ;;  %p2496_p9 = scmp.lt.s32.totalorder %s3048_s28, 2 }
 0x136   : > { %p3466_p6 = por %p3759_p2, %p55_p1  ;;  %s497_s23 = sand.u32 1, %s3044_s27  }
 0x137   : > { %p3473_p10 = por %p331_p5, %p49_p13  ;;  %p3477_p11 = por %p337_p7, %p55_p1 }
 0x138   : > { %s2136_s22 = sshll.u32 %s497_s23, 3  ;;  %s2137_s30 = sshll.u32 %s3048_s28, 7 }
 0x139   : > { %s3761_s3 = scalar_select %p3473_p10, 1, 0 }
 0x13a   : > { %s3762_s21 = scalar_select %p3477_p11, 1, 0 }
 0x13b   : > { %s3763_s1 = sld [smem:[#allocation35_spill]]  ;;  %s501_s16 = scalar_lea.vmem [#allocation3], %s2136_s22 }
 0x13c   : > { %s508_s20 = sshll.u32 %s501_s16, 4  ;;  %p3491_p12 = pnand %p2496_p9, %p3460_p3  ;;  %s3487_s20 = int_to_ptr.vmem [resolvable:$true] %s508_s20 }
 0x13d   : > { %s498_s13 = scalar_lea.sflag [#allocation4], %s497_s23 }
 0x13e   : > { %p2930_p8 = pneg %p3491_p12 }
 0x141   : > { %s3485_s15 = scalar_lea.hbm %s3763_s1, %s2137_s30  ;;  %s2933_s19 = scalar_lea.hbm %s3763_s1, 256 }
 0x142   : > { %s2928_s2 = scalar_lea.hbm %s3485_s15, 128  ;;  %p2934_p1 = scmp.lt.u32.totalorder %s3485_s15, %s3763_s1 }
 0x143   : > { %p2929_p4 = scmp.ne.s32.totalorder %s3485_s15, %s2928_s2  ;;  %p2935_p3 = scmp.lt.u32.totalorder %s2933_s19, %s2928_s2 }
 0x144   : > { %p2937_p5 = scmp.lt.u32.totalorder %s2928_s2, %s3485_s15 }
 0x145   : > { %p2931_p13 = pnand %p2930_p8, %p2929_p4  ;;  %p2936_p2 = por %p2935_p3, %p2934_p1 }
 0x147   : > { %p2932_p0 = pneg %p2931_p13  ;;  %p2938_p7 = por %p2937_p5, %p2936_p2 }
 0x149   : > { %p2939_p9 = pnand %p2938_p7, %p2932_p0 }
 0x14b   : > { %2942 = shalt.err (!%p2939_p9)
}
 0x14c   : > { %s2943_s23 = scalar_lea.vmem %s3487_s20, 128  ;;  %s3064_s16 = smov [#allocation3]  }
 0x14d   : > { %p2944_p4 = scmp.ne.s32.totalorder %s3487_s20, %s2943_s23  ;;  %s2948_s22 = sshll.u32 %s3064_s16, 4  ;;  %s2949_s22 = int_to_ptr.vmem [resolvable:$false] %s2948_s22 }
 0x14e   : > { %s2950_s30 = scalar_lea.vmem %s2949_s22, 256  ;;  %p2951_p10 = scmp.lt.s32.totalorder %s3487_s20, %s2949_s22 }
 0x14f   : > { %p2946_p13 = pnand %p2944_p4, %p2930_p8  ;;  %p2952_p1 = scmp.lt.s32.totalorder %s2950_s30, %s2943_s23 }
 0x151   : > { %p2947_p11 = pneg %p2946_p13  ;;  %p2953_p3 = por %p2952_p1, %p2951_p10 }
 0x153   : > { %p2954_p2 = pnand %p2953_p3, %p2947_p11 }
 0x155   : > { %2957 = shalt.err (!%p2954_p2)
}
 0x156   : > { %2479 = dma.hbm_to_vmem [thread:$0]  (!%p3491_p12), %s3485_s15, 128, %s3487_s20, %s498_s13  }
 0x157   : > { %s3765_s2 = sld [smem:[#allocation34_spill]] }
 0x15d   : > { %p3766_p0 = scmp.ne.s32.totalorder %s3765_s2, 0 }
 0x15e   : > { %s3523_s19 = sand.u32 (!%p3766_p0), 1, %s3040_s26  }
 0x15f   : > { %517 = sbr.rel (%p3766_p0) target bundleno = 4578 (0x11e2), region = 72  ;;  %s2139_s0 = sshll.u32 (!%p3766_p0), %s3523_s19, 3 }
 0x160   : > { %s520_s17 = scalar_lea.sflag (!%p3766_p0), [#allocation4], %s3523_s19  ;;  %s523_s23 = scalar_lea.vmem (!%p3766_p0), [#allocation3], %s2139_s0 }
 0x166   : > { %3003 = dma.done.wait (%p3466_p6), %s520_s17, 128  }
 0x167   : > { %3005 = vsyncadd (%p3466_p6), %s520_s17, 4294967168  ;;  %s3767_s15 = sld [smem:[#allocation33_spill]] }
 0x16d   : > { %p3768_p10 = scmp.eq.s32.totalorder %s3767_s15, 0 }
 0x16f   : > { %3007 = dma.done.wait (%p3768_p10), [#allocation7], 32   ;;  %p3769_p11 = pmov %p3768_p10 }
 0x170   : > { %p3770_p12 = pmov %p3768_p10 }
 0x171   : > { %3009 = vsyncadd (%p3769_p11), [#allocation7], 4294967264 }
 0x172   : > { %3011 = dma.done.wait (%p3770_p12), [#allocation10], 528   ;;  %p3771_p8 = pmov %p3768_p10 }
 0x174   : > { %3013 = vsyncadd (%p3771_p8), [#allocation10], 4294966768  ;;  %p3772_p5 = pmov %p3771_p8 }
 0x176   : > { %3015 = dma.done.wait (%p3772_p5), [#allocation13], 528   ;;  %p3773_p7 = pmov %p3772_p5 }
 0x177   : > { %p3774_p6 = pmov %p3772_p5 }
 0x178   : > { %3017 = vsyncadd (%p3773_p7), [#allocation13], 4294966768 }
 0x179   : > { %3019 = dma.done.wait (%p3774_p6), [#allocation16], 32   ;;  %p3775_p9 = pmov %p3772_p5 }
 0x17a   : > { %p3776_p4 = pmov %p3772_p5 }
 0x17b   : > { %3021 = vsyncadd (%p3775_p9), [#allocation16], 4294967264 }
 0x17c   : > { %3023 = dma.done.wait (%p3776_p4), [#allocation19], 528   ;;  %p3777_p13 = pmov %p3776_p4 }
 0x17d   : > { %p3778_p1 = pmov %p3776_p4 }
 0x17e   : > { %3025 = vsyncadd (%p3777_p13), [#allocation19], 4294966768 }
 0x17f   : > { %3027 = dma.done.wait (%p3778_p1), [#allocation22], 2064   ;;  %p3779_p3 = pmov %p3778_p1 }
 0x180   : > { %vm617_vm0 = vcmask 261120   ;;  %v3557_v0 = vld [vmem:[%s523_s23] sm:$0xff]  ;;  %v646_v7 = vld [vmem:[#allocation9] sm:$0xff]  ;;  %v3065_v10 = vmov 0.0|0.0   ;;  %vm3066_vm1 = vmmov 0   ;;  %v3067_v13 = vmov 0.0  }
 0x181   : > { %3029 = vsyncadd (%p3779_p3), [#allocation22], 4294965232  ;;  %v618_v1 = vsel %vm617_vm0, %v3557_v0, 0.0  ;;  %v647_v8 = vld [vmem:[#allocation9 + $0x8] sm:$0xff]  ;;  %v648_v9 = vld [vmem:[#allocation9 + $0x10] sm:$0xff]  ;;  %2351 = vmatprep.subr.bf16.mxu0 %v3065_v10  ;;  %2242 = vmatprep.mubr.msk.f32.mxu0 %vm3066_vm1, %v3067_v13  ;;  %s3068_s24 = smov 96  }
 0x182   : > { %619 = vadd.xlane.f32.xlu0 %v618_v1  ;;  %v2352_v11 = vpack.c.bf16 %v647_v8, %v646_v7  ;;  %v649_v12 = vld [vmem:[#allocation9 + $0x18] sm:$0xff]  ;;  %2270 = vmatprep.subr.mxu1 %v3067_v13  ;;  %v2155_v24 = vld [vmem:[#allocation11] ss:$0 sm:$0xff]  ;;  %vm733_vm2 = vcmask 64512   ;;  %s3069_s20 = smov 64   ;;  %s3070_s14 = smov 88  }
 0x183   : > { %2272 = vmatprep.mubr.msk.f32.mxu1 %vm3066_vm1, %v3067_v13  ;;  %v2355_v14 = vpack.c.bf16 %v649_v12, %v648_v9  ;;  %v2153_v19 = vld [vmem:[#allocation6] ss:$0 sm:$0xff]  ;;  %v2154_v21 = vld [vmem:[#allocation8] ss:$0 sm:$0xff]  ;;  %s3071_s13 = smov 120   ;;  %v895_v41 = vld [vmem:[#allocation12] sm:$0xff] }
 0x184   : > { %2353 = vmatpush3.bf16.msra.mxu0 %v2352_v11  ;;  %s3072_s16 = smov 56   ;;  %s3073_s22 = smov 80   ;;  %v1135_v57 = vld [vmem:[#allocation12 + $0x8] sm:$0xff] }
 0x185   : > { %2354 = vmatprep.subr.bf16.mxu0 %v3065_v10  ;;  %s3074_s30 = smov 112   ;;  %s3075_s2 = smov 48   ;;  %2271 = vmatpush3.msra.mxu1 %v1135_v57  ;;  %v1735_v57 = vld [vmem:[#allocation18] sm:$0xff] }
 0x186   : > { %s3076_s17 = smov 72   ;;  %2280 = vmatprep.subr.mxu1 %v3067_v13  ;;  %s3077_s23 = smov 104  }
 0x187   : > { %p3781_p0 = scmp.ne.s32.totalorder %s3761_s3, 0 }
 0x188   : > { %2356 = vmatpush3.bf16.msra.mxu0 %v2355_v14 }
 0x189   : > { %2245 = vmatprep.subr.mxu0 %v3067_v13 }
 0x20f   : > { %v620_v2 = vpop.xlane.xlu0 %619 }
 0x210   : > { %v622_v3 = vmul.f32 0.03125, %v620_v2 }
 0x212   : > { %v623_v4 = vsub.f32 %v3557_v0, %v622_v3 }
 0x214   : > { %v624_v5 = vmul.f32 %v623_v4, %v623_v4 }
 0x216   : > { %v625_v6 = vsel %vm617_vm0, %v624_v5, 0.0 }
 0x217   : > { %626 = vadd.xlane.f32.xlu0 %v625_v6 }
 0x2a4   : > { %v627_v15 = vpop.xlane.xlu0 %626 }
 0x2a5   : > { %v628_v16 = vmul.f32 0.03125, %v627_v15 }
 0x2a7   : > { %v629_v17 = vadd.f32 1e-05, %v628_v16 }
 0x2a9   : > { %2570 = vrsqrt.f32 %v629_v17 }
 0x2b3   : > { %v2571_v18 = vpop.eup %2570 }
 0x2b4   : > { %v631_v20 = vmul.f32 %v2571_v18, %v623_v4 }
 0x2b6   : > { %v638_v22 = vmul.f32 %v2153_v19, %v631_v20 }
 0x2b8   : > { %v645_v23 = vadd.f32 %v2154_v21, %v638_v22  ;;  %v1377_v22 = vld [vmem:[#allocation12 + $0x10] sm:$0xff] }
 0x2ba   : > { %2243 = vmatmul.mubr.msk.f32.vlgmr.msra.gmra.mrb[0].mxu0 %vm617_vm0, %v645_v23 }
 0x2bb   : > { %2247 = vmatprep.mubr.msk.f32.mxu0 %vm3066_vm1, %v3067_v13 }
 0x38d   : > { %v726_v25 = vpop.f32.mrb[0].mxu0 }
 0x38e   : > { %v3574_v26 = vadd.f32 %v2155_v24, %v726_v25  ;;  %v2244_v27 = vpop.f32.mrb[1].mxu0 }
 0x390   : > { %731 = vrot.lane.b32.xlu1 %v3574_v26, %s3068_s24  ;;  %s3078_s24 = smov 40  }
 0x402   : > { %v732_v28 = vpop.permute.xlu1 %731 }
 0x403   : > { %2246 = vmatpush3.xpose.msk.msra.mxu0 %vm733_vm2, %v732_v28 }
 0x404   : > { %2250 = vmatprep.subr.mxu0 %v3067_v13 }
 0x406   : > { %2248 = vmatmul.mubr.msk.f32.vlgmr.msra.gmra.mrb[2].mxu0 %vm733_vm2, %v3574_v26 }
 0x407   : > { %2252 = vmatprep.mubr.msk.f32.mxu0 %vm3066_vm1, %v3067_v13 }
 0x4d9   : > { %v804_v29 = vpop.f32.mrb[2].mxu0 }
 0x4da   : > { %v2249_v30 = vpop.f32.mrb[3].mxu0  ;;  %v808_v31 = vsel %vm733_vm2, %v804_v29, -inf }
 0x4db   : > { %809 = vmax.xlane.f32.xlu1 %v808_v31 }
 0x568   : > { %v810_v32 = vpop.xlane.xlu1 %809 }
 0x569   : > { %v811_v33 = vsub.f32 %v804_v29, %v810_v32 }
 0x56b   : > { %v812_v34 = vmul.f32 1.442695, %v811_v33 }
 0x56d   : > { %2572 = vpow2.f32 %v812_v34 }
 0x577   : > { %v2573_v35 = vpop.eup %2572 }
 0x578   : > { %v814_v36 = vsel %vm733_vm2, %v2573_v35, 0.0 }
 0x579   : > { %815 = vadd.xlane.f32.xlu0 %v814_v36 }
 0x58f   : > { %819 = vrot.lane.b32.xlu0 %v3574_v26, %s3069_s20  ;;  %s2180_s20 = sshll.u32 %s3767_s15, 7 }
 0x593   : > { %972 = vrot.lane.b32.xlu0 %v3574_v26, %s3070_s14  ;;  %s613_s14 = scalar_lea.vmem [#allocation24], %s2139_s0  ;;  %s3079_s0 = smov [#allocation24]  }
 0x597   : > { %970 = vrot.lane.b32.xlu0 %v3574_v26, %s3071_s13  ;;  %s1937_s13 = sshll.u32 %s613_s14, 4  ;;  %s3678_s13 = int_to_ptr.vmem [resolvable:$true] %s1937_s13 }
 0x598   : > { %s2958_s15 = scalar_lea.vmem %s3678_s13, 128 }
 0x599   : > { %p2959_p2 = scmp.ne.s32.totalorder %s3678_s13, %s2958_s15 }
 0x59b   : > { %p2960_p10 = pnand %p2959_p2, %p3781_p0 }
 0x59d   : > { %p2961_p11 = pneg %p2960_p10 }
 0x606   : > { %v816_v37 = vpop.xlane.xlu0 %815 }
 0x607   : > { %2574 = vrcp.f32 %v816_v37 }
 0x60a   : > { %v820_v38 = vpop.permute.xlu0 %819 }
 0x60b   : > { %2251 = vmatpush3.msra.mxu0 %v820_v38 }
 0x60c   : > { %2255 = vmatprep.subr.mxu0 %v3067_v13 }
 0x60e   : > { %v973_v42 = vpop.permute.xlu0 %972 }
 0x611   : > { %v2575_v39 = vpop.eup %2574 }
 0x612   : > { %v818_v40 = vmul.f32 %v2575_v39, %v2573_v35  ;;  %v971_v45 = vpop.permute.xlu0 %970  ;;  %v1619_v35 = vld [vmem:[#allocation12 + $0x18] sm:$0xff] }
 0x614   : > { %2253 = vmatmul.mubr.msk.f32.vlgmr.msra.gmra.mrb[4].mxu0 %vm733_vm2, %v818_v40 }
 0x615   : > { %2256 = vmatpush3.msra.mxu0 %v895_v41  ;;  %2257 = vmatprep.mubr.msk.f32.mxu0 %vm3066_vm1, %v3067_v13 }
 0x616   : > { %2260 = vmatprep.subr.mxu0 %v3067_v13 }
 0x6e7   : > { %v891_v43 = vpop.f32.mrb[4].mxu0 }
 0x6e8   : > { %v2254_v44 = vpop.f32.mrb[5].mxu0  ;;  %2258 = vmatmul.mubr.msk.f32.vlgmr.msra.gmra.mrb[6].mxu0 %vm733_vm2, %v891_v43 }
 0x6e9   : > { %2261 = vmatpush3.xpose.msk.msra.mxu0 %vm733_vm2, %v973_v42  ;;  %2262 = vmatprep.mubr.msk.f32.mxu0 %vm3066_vm1, %v3067_v13 }
 0x6ea   : > { %2265 = vmatprep.subr.mxu0 %v3067_v13 }
 0x6ec   : > { %2263 = vmatmul.mubr.msk.f32.vlgmr.msra.gmra.mrb[8].mxu0 %vm733_vm2, %v971_v45 }
 0x6ed   : > { %2267 = vmatprep.mubr.msk.f32.mxu0 %vm3066_vm1, %v3067_v13 }
 0x7bb   : > { %v965_v46 = vpop.f32.mrb[6].mxu0 }
 0x7bc   : > { %969 = vst.msk [vmem:[#allocation2] sm:$0xff] %vm617_vm0, %v965_v46  ;;  %v2259_v47 = vpop.f32.mrb[7].mxu0 }
 0x7bf   : > { %v1044_v48 = vpop.f32.mrb[8].mxu0 }
 0x7c0   : > { %v2264_v49 = vpop.f32.mrb[9].mxu0  ;;  %v1048_v50 = vsel %vm733_vm2, %v1044_v48, -inf }
 0x7c1   : > { %1049 = vmax.xlane.f32.xlu1 %v1048_v50  ;;  %v2173_v49 = vld [vmem:[#allocation14] ss:$0 sm:$0xff] }
 0x7c3   : > { %v1209_v14 = vld [vmem:[#allocation2] sm:$0xff] }
 0x7d2   : > { %1059 = vrot.lane.b32.xlu1 %v3574_v26, %s3072_s16 }
 0x7d6   : > { %1214 = vrot.lane.b32.xlu1 %v3574_v26, %s3073_s22 }
 0x7da   : > { %1212 = vrot.lane.b32.xlu1 %v3574_v26, %s3074_s30  ;;  %s3780_s30 = sld [smem:[#allocation39_spill]] }
 0x84e   : > { %v1050_v51 = vpop.xlane.xlu1 %1049 }
 0x84f   : > { %v1051_v52 = vsub.f32 %v1044_v48, %v1050_v51 }
 0x851   : > { %v1052_v53 = vmul.f32 1.442695, %v1051_v52 }
 0x852   : > { %v1060_v54 = vpop.permute.xlu1 %1059 }
 0x853   : > { %2576 = vpow2.f32 %v1052_v53  ;;  %2266 = vmatpush3.msra.mxu0 %v1060_v54 }
 0x854   : > { %2275 = vmatprep.subr.mxu0 %v3067_v13 }
 0x856   : > { %v1215_v60 = vpop.permute.xlu1 %1214 }
 0x85a   : > { %v1213_v62 = vpop.permute.xlu1 %1212 }
 0x85d   : > { %v2577_v55 = vpop.eup %2576 }
 0x85e   : > { %v1054_v56 = vsel %vm733_vm2, %v2577_v55, 0.0 }
 0x85f   : > { %1055 = vadd.xlane.f32.xlu0 %v1054_v56 }
 0x875   : > { %1301 = vrot.lane.b32.xlu0 %v3574_v26, %s3075_s2  ;;  %s3676_s2 = scalar_lea.hbm %s3780_s30, %s2180_s20 }
 0x879   : > { %1456 = vrot.lane.b32.xlu0 %v3574_v26, %s3076_s17  ;;  %s1924_s17 = scalar_lea.sflag [#allocation5], %s3523_s19 }
 0x8ec   : > { %v1056_v58 = vpop.xlane.xlu0 %1055 }
 0x8ed   : > { %2578 = vrcp.f32 %v1056_v58  ;;  %v1736_v58 = vld [vmem:[#allocation18 + $0x8] sm:$0xff] }
 0x8f0   : > { %v1302_v1 = vpop.permute.xlu0 %1301 }
 0x8f4   : > { %v1457_v17 = vpop.permute.xlu0 %1456 }
 0x8f7   : > { %v2579_v59 = vpop.eup %2578 }
 0x8f8   : > { %v1058_v61 = vmul.f32 %v2579_v59, %v2577_v55  ;;  %v2358_v59 = vpack.c.bf16 %v1736_v58, %v1735_v57 }
 0x8fa   : > { %2268 = vmatmul.mubr.msk.f32.vlgmr.msra.gmra.mrb[10].mxu0 %vm733_vm2, %v1058_v61 }
 0x8fb   : > { %2276 = vmatpush3.xpose.msk.msra.mxu0 %vm733_vm2, %v1215_v60  ;;  %2277 = vmatprep.mubr.msk.f32.mxu0 %vm3066_vm1, %v3067_v13  ;;  %v1738_v60 = vld [vmem:[#allocation18 + $0x18] sm:$0xff] }
 0x8fc   : > { %2285 = vmatprep.subr.mxu0 %v3067_v13 }
 0x8fe   : > { %2278 = vmatmul.mubr.msk.f32.vlgmr.msra.gmra.mrb[12].mxu0 %vm733_vm2, %v1213_v62  ;;  %v1825_v62 = vld [vmem:[#allocation21] sm:$0xff] }
 0x8ff   : > { %2287 = vmatprep.mubr.msk.f32.mxu0 %vm3066_vm1, %v3067_v13  ;;  %2286 = vmatpush3.msra.mxu0 %v1377_v22  ;;  %v1833_v22 = vld [vmem:[#allocation21 + $0x40] sm:$0xff] }
 0x900   : > { %2295 = vmatprep.subr.mxu0 %v3067_v13 }
 0x9cd   : > { %v1131_v63 = vpop.f32.mrb[10].mxu0 }
 0x9ce   : > { %v2269_v2 = vpop.f32.mrb[11].mxu0  ;;  %2273 = vmatmul.mubr.msk.f32.vlgmr.msra.gmra.mrb[0].mxu1 %vm733_vm2, %v1131_v63  ;;  %v1826_v63 = vld [vmem:[#allocation21 + $0x8] sm:$0xff] }
 0x9cf   : > { %2281 = vmatpush3.msra.mxu1 %v1302_v1  ;;  %2282 = vmatprep.mubr.msk.f32.mxu1 %vm3066_vm1, %v3067_v13  ;;  %v1827_v1 = vld [vmem:[#allocation21 + $0x10] sm:$0xff]  ;;  %v2364_v2 = vpack.c.bf16 %v1826_v63, %v1825_v62 }
 0x9d0   : > { %2290 = vmatprep.subr.mxu1 %v3067_v13 }
 0x9d1   : > { %v1286_v3 = vpop.f32.mrb[12].mxu0 }
 0x9d2   : > { %v2279_v4 = vpop.f32.mrb[13].mxu0  ;;  %v1290_v5 = vsel %vm733_vm2, %v1286_v3, -inf }
 0x9d3   : > { %1291 = vmax.xlane.f32.xlu1 %v1290_v5  ;;  %v1829_v5 = vld [vmem:[#allocation21 + $0x20] sm:$0xff] }
 0xa60   : > { %v1292_v6 = vpop.xlane.xlu1 %1291 }
 0xa61   : > { %v1293_v7 = vsub.f32 %v1286_v3, %v1292_v6  ;;  %v1828_v3 = vld [vmem:[#allocation21 + $0x18] sm:$0xff]  ;;  %v1830_v6 = vld [vmem:[#allocation21 + $0x28] sm:$0xff] }
 0xa62   : > { %v2367_v4 = vpack.c.bf16 %v1828_v3, %v1827_v1 }
 0xa63   : > { %v1294_v8 = vmul.f32 1.442695, %v1293_v7  ;;  %v2370_v7 = vpack.c.bf16 %v1830_v6, %v1829_v5 }
 0xa65   : > { %2580 = vpow2.f32 %v1294_v8 }
 0xa6f   : > { %v2581_v9 = vpop.eup %2580 }
 0xa70   : > { %v1296_v11 = vsel %vm733_vm2, %v2581_v9, 0.0 }
 0xa71   : > { %1297 = vadd.xlane.f32.xlu0 %v1296_v11 }
 0xa87   : > { %1454 = vrot.lane.b32.xlu0 %v3574_v26, %s3077_s23  ;;  %s2962_s23 = sshll.u32 %s3079_s0, 4  ;;  %s2963_s23 = int_to_ptr.vmem [resolvable:$false] %s2962_s23 }
 0xa88   : > { %p2965_p12 = scmp.lt.s32.totalorder %s3678_s13, %s2963_s23 }
 0xaa1   : > { %v1205_v12 = vpop.f32.mrb[0].mxu1 }
 0xaa2   : > { %v1210_v15 = vadd.f32 %v1209_v14, %v1205_v12  ;;  %v2274_v16 = vpop.f32.mrb[1].mxu1  ;;  %v2174_v14 = vld [vmem:[#allocation15] ss:$0 sm:$0xff] }
 0xaa3   : > { %v2175_v16 = vld [vmem:[#allocation17] ss:$0 sm:$0xff] }
 0xaa4   : > { %1211 = vst.msk [vmem:[#allocation2] sm:$0xff] %vm617_vm0, %v1210_v15 }
 0xaab   : > { %v1451_v37 = vld [vmem:[#allocation2] sm:$0xff] }
 0xafe   : > { %v1298_v18 = vpop.xlane.xlu0 %1297 }
 0xaff   : > { %2582 = vrcp.f32 %v1298_v18 }
 0xb02   : > { %v1455_v21 = vpop.permute.xlu0 %1454 }
 0xb09   : > { %v2583_v19 = vpop.eup %2582 }
 0xb0a   : > { %v1300_v20 = vmul.f32 %v2583_v19, %v2581_v9  ;;  %v1831_v19 = vld [vmem:[#allocation21 + $0x30] sm:$0xff] }
 0xb0c   : > { %2283 = vmatmul.mubr.msk.f32.vlgmr.msra.gmra.mrb[2].mxu1 %vm733_vm2, %v1300_v20  ;;  %v1832_v20 = vld [vmem:[#allocation21 + $0x38] sm:$0xff] }
 0xb0d   : > { %2291 = vmatpush3.xpose.msk.msra.mxu1 %vm733_vm2, %v1457_v17  ;;  %2292 = vmatprep.mubr.msk.f32.mxu1 %vm3066_vm1, %v3067_v13 }
 0xb0e   : > { %2300 = vmatprep.subr.mxu1 %v3067_v13 }
 0xb10   : > { %2293 = vmatmul.mubr.msk.f32.vlgmr.msra.gmra.mrb[4].mxu1 %vm733_vm2, %v1455_v21  ;;  %v2373_v21 = vpack.c.bf16 %v1832_v20, %v1831_v19 }
 0xb11   : > { %2302 = vmatprep.mubr.msk.f32.mxu1 %vm3066_vm1, %v3067_v13  ;;  %2301 = vmatpush3.msra.mxu1 %v1619_v35  ;;  %v2176_v35 = vld [vmem:[#allocation20] ss:$0 sm:$0xff] }
 0xb12   : > { %2363 = vmatprep.subr.bf16.mxu1 %v3065_v10 }
 0xbdf   : > { %v1373_v23 = vpop.f32.mrb[2].mxu1 }
 0xbe0   : > { %v2284_v24 = vpop.f32.mrb[3].mxu1  ;;  %2288 = vmatmul.mubr.msk.f32.vlgmr.msra.gmra.mrb[14].mxu0 %vm733_vm2, %v1373_v23  ;;  %v1834_v23 = vld [vmem:[#allocation21 + $0x48] sm:$0xff] }
 0xbe1   : > { %2297 = vmatprep.mubr.msk.f32.mxu0 %vm3066_vm1, %v3067_v13  ;;  %v2376_v24 = vpack.c.bf16 %v1834_v23, %v1833_v22 }
 0xbe3   : > { %v1528_v25 = vpop.f32.mrb[4].mxu1 }
 0xbe4   : > { %v2294_v27 = vpop.f32.mrb[5].mxu1  ;;  %v1532_v28 = vsel %vm733_vm2, %v1528_v25, -inf }
 0xbe5   : > { %1533 = vmax.xlane.f32.xlu1 %v1532_v28  ;;  %v1836_v27 = vld [vmem:[#allocation21 + $0x58] sm:$0xff] }
 0xbf6   : > { %1543 = vrot.lane.b32.xlu1 %v3574_v26, %s3078_s24  ;;  %s2964_s24 = scalar_lea.vmem %s2963_s23, 256 }
 0xbf7   : > { %p2966_p8 = scmp.lt.s32.totalorder %s2964_s24, %s2958_s15 }
 0xbf9   : > { %p2967_p5 = por %p2966_p8, %p2965_p12 }
 0xbfb   : > { %p2968_p7 = pnand %p2967_p5, %p2961_p11 }
 0xc72   : > { %v1534_v29 = vpop.xlane.xlu1 %1533 }
 0xc73   : > { %v1535_v30 = vsub.f32 %v1528_v25, %v1534_v29  ;;  %v1835_v25 = vld [vmem:[#allocation21 + $0x50] sm:$0xff]  ;;  %v1837_v29 = vld [vmem:[#allocation21 + $0x60] sm:$0xff] }
 0xc74   : > { %v2379_v28 = vpack.c.bf16 %v1836_v27, %v1835_v25 }
 0xc75   : > { %v1536_v31 = vmul.f32 1.442695, %v1535_v30  ;;  %v1838_v30 = vld [vmem:[#allocation21 + $0x68] sm:$0xff] }
 0xc76   : > { %v1544_v32 = vpop.permute.xlu1 %1543 }
 0xc77   : > { %2584 = vpow2.f32 %v1536_v31  ;;  %2296 = vmatpush3.msra.mxu0 %v1544_v32  ;;  %v2382_v31 = vpack.c.bf16 %v1838_v30, %v1837_v29  ;;  %v1839_v32 = vld [vmem:[#allocation21 + $0x70] sm:$0xff] }
 0xc78   : > { %2357 = vmatprep.subr.bf16.mxu0 %v3065_v10 }
 0xc81   : > { %v2585_v33 = vpop.eup %2584 }
 0xc82   : > { %v1538_v34 = vsel %vm733_vm2, %v2585_v33, 0.0 }
 0xc83   : > { %1539 = vadd.xlane.f32.xlu0 %v1538_v34 }
 0xcb3   : > { %v1447_v36 = vpop.f32.mrb[14].mxu0 }
 0xcb4   : > { %v1452_v38 = vadd.f32 %v1451_v37, %v1447_v36  ;;  %v2289_v26 = vpop.f32.mrb[15].mxu0 }
 0xcb6   : > { %1453 = vst.msk [vmem:[#allocation2] sm:$0xff] %vm617_vm0, %v1452_v38 }
 0xcbd   : > { %v1693_v45 = vld [vmem:[#allocation2] sm:$0xff] }
 0xd10   : > { %v1540_v39 = vpop.xlane.xlu0 %1539 }
 0xd11   : > { %2586 = vrcp.f32 %v1540_v39 }
 0xd1b   : > { %v2587_v40 = vpop.eup %2586 }
 0xd1c   : > { %v1542_v41 = vmul.f32 %v2587_v40, %v2585_v33  ;;  %v1840_v33 = vld [vmem:[#allocation21 + $0x78] sm:$0xff] }
 0xd1d   : > { %v2385_v34 = vpack.c.bf16 %v1840_v33, %v1839_v32 }
 0xd1e   : > { %2298 = vmatmul.mubr.msk.f32.vlgmr.msra.gmra.mrb[16].mxu0 %vm733_vm2, %v1542_v41 }
 0xd1f   : > { %2313 = vmatprep.mubr.msk.f32.mxu0 %vm3066_vm1, %v3067_v13  ;;  %2359 = vmatpush3.bf16.msra.mxu0 %v2358_v59 }
 0xd20   : > { %2360 = vmatprep.subr.bf16.mxu0 %v3065_v10 }
 0xdf1   : > { %v1615_v42 = vpop.f32.mrb[16].mxu0 }
 0xdf2   : > { %v2299_v43 = vpop.f32.mrb[17].mxu0  ;;  %2303 = vmatmul.mubr.msk.f32.vlgmr.msra.gmra.mrb[6].mxu1 %vm733_vm2, %v1615_v42 }
 0xdf3   : > { %2348 = vmatprep.mubr.msk.f32.mxu1 %vm3066_vm1, %v3067_v13  ;;  %2365 = vmatpush3.bf16.msra.mxu1 %v2364_v2 }
 0xdf4   : > { %2366 = vmatprep.subr.bf16.mxu1 %v3065_v10 }
 0xdf7   : > { %2368 = vmatpush3.bf16.msra.mxu1 %v2367_v4 }
 0xdf8   : > { %2369 = vmatprep.subr.bf16.mxu1 %v3065_v10 }
 0xdfb   : > { %2371 = vmatpush3.bf16.msra.mxu1 %v2370_v7 }
 0xdfc   : > { %2372 = vmatprep.subr.bf16.mxu1 %v3065_v10 }
 0xdff   : > { %2374 = vmatpush3.bf16.msra.mxu1 %v2373_v21 }
 0xe00   : > { %2375 = vmatprep.subr.bf16.mxu1 %v3065_v10 }
 0xe03   : > { %2377 = vmatpush3.bf16.msra.mxu1 %v2376_v24 }
 0xe04   : > { %2378 = vmatprep.subr.bf16.mxu1 %v3065_v10 }
 0xe07   : > { %2380 = vmatpush3.bf16.msra.mxu1 %v2379_v28 }
 0xe08   : > { %2381 = vmatprep.subr.bf16.mxu1 %v3065_v10 }
 0xe0b   : > { %2383 = vmatpush3.bf16.msra.mxu1 %v2382_v31 }
 0xe0c   : > { %2384 = vmatprep.subr.bf16.mxu1 %v3065_v10 }
 0xe0f   : > { %2386 = vmatpush3.bf16.msra.mxu1 %v2385_v34 }
 0xec5   : > { %v1689_v44 = vpop.f32.mrb[6].mxu1 }
 0xec6   : > { %v1694_v46 = vadd.f32 %v1693_v45, %v1689_v44  ;;  %v2304_v47 = vpop.f32.mrb[7].mxu1  ;;  %v2178_v45 = vld [vmem:[#allocation23] ss:$0 sm:$0xff] }
 0xec8   : > { %1695 = vst.msk [vmem:[#allocation2] sm:$0xff] %vm617_vm0, %v1694_v46 }
 0xecf   : > { %v1696_v48 = vld [vmem:[#allocation2] sm:$0xff] }
 0xed0   : > { %v1697_v50 = vadd.f32 %v1696_v48, %v3557_v0  ;;  %v1737_v0 = vld [vmem:[#allocation18 + $0x10] sm:$0xff] }
 0xed1   : > { %v2361_v61 = vpack.c.bf16 %v1738_v60, %v1737_v0 }
 0xed2   : > { %v3653_v51 = vadd.f32 %v2173_v49, %v1697_v50 }
 0xed3   : > { %2362 = vmatpush3.bf16.msra.mxu0 %v2361_v61 }
 0xed4   : > { %v1708_v52 = vsel %vm617_vm0, %v3653_v51, 0.0 }
 0xed5   : > { %1709 = vadd.xlane.f32.xlu1 %v1708_v52 }
 0xf62   : > { %v1710_v53 = vpop.xlane.xlu1 %1709 }
 0xf63   : > { %v1711_v54 = vmul.f32 0.03125, %v1710_v53 }
 0xf65   : > { %v1712_v13 = vsub.f32 %v3653_v51, %v1711_v54 }
 0xf67   : > { %v1713_v55 = vmul.f32 %v1712_v13, %v1712_v13 }
 0xf69   : > { %v1714_v56 = vsel %vm617_vm0, %v1713_v55, 0.0 }
 0xf6a   : > { %1715 = vadd.xlane.f32.xlu0 %v1714_v56 }
 0xff7   : > { %v1716_v8 = vpop.xlane.xlu0 %1715 }
 0xff8   : > { %v1717_v9 = vmul.f32 0.03125, %v1716_v8 }
 0xffa   : > { %v1718_v11 = vadd.f32 1e-05, %v1717_v9 }
 0xffc   : > { %2588 = vrsqrt.f32 %v1718_v11 }
0x1006   : > { %v2589_v12 = vpop.eup %2588 }
0x1007   : > { %v1720_v15 = vmul.f32 %v2589_v12, %v1712_v13 }
0x1009   : > { %v1727_v17 = vmul.f32 %v2174_v14, %v1720_v15 }
0x100b   : > { %v1734_v18 = vadd.f32 %v2175_v16, %v1727_v17 }
0x100d   : > { %2314 = vmatmul.mubr.msk.f32.vlgmr.msra.gmra.mrb[18].mxu0 %vm617_vm0, %v1734_v18 }
0x10e0   : > { %v1815_v36 = vpop.f32.mrb[18].mxu0 }
0x10e1   : > { %v1816_v37 = vadd.f32 %v2176_v35, %v1815_v36  ;;  %v2315_v38 = vpop.f32.mrb[19].mxu0 }
0x10e3   : > { %v1821_v26 = vmul.f32 0.70710677, %v1816_v37  ;;  %v1819_v40 = vmul.f32 0.5, %v1816_v37 }
0x10e5   : > { %2590 = verf.f32 %v1821_v26 }
0x10ef   : > { %v2591_v39 = vpop.eup %2590 }
0x10f0   : > { %v1823_v41 = vadd.f32 1.0, %v2591_v39 }
0x10f2   : > { %v1824_v42 = vmul.f32 %v1823_v41, %v1819_v40 }
0x10f4   : > { %2349 = vmatmul.mubr.f32.vlgmr.msra.gmra.mrb[8].mxu1 %v1824_v42 }
0x11c7   : > { %v1907_v43 = vpop.f32.mrb[8].mxu1 }
0x11c8   : > { %1911 = vst.msk [vmem:[#allocation2] sm:$0xff] %vm617_vm0, %v1907_v43  ;;  %v2350_v10 = vpop.f32.mrb[9].mxu1 }
0x11cf   : > { %v1912_v44 = vld [vmem:[#allocation2] sm:$0xff] }
0x11d0   : > { %v1913_v46 = vadd.f32 %v1912_v44, %v3653_v51 }
0x11d2   : > { %v1921_v47 = vadd.f32 %v2178_v45, %v1913_v46 }
0x11d4   : > { %1922 = vst.msk [vmem:[%s613_s14] sm:$0xff] %vm617_vm0, %v1921_v47 }
0x11d5   : > { %2971 = shalt.err (!%p2968_p7)
}
0x11d6   : > { %s2972_s19 = scalar_lea.hbm %s3676_s2, 128  ;;  %s2976_s16 = scalar_lea.hbm %s3780_s30, 256 }
0x11d7   : > { %p2973_p6 = scmp.ne.s32.totalorder %s3676_s2, %s2972_s19  ;;  %p2977_p13 = scmp.lt.u32.totalorder %s3676_s2, %s3780_s30 }
0x11d8   : > { %p2978_p1 = scmp.lt.u32.totalorder %s2976_s16, %s2972_s19  ;;  %p2980_p2 = scmp.lt.u32.totalorder %s2972_s19, %s3676_s2 }
0x11d9   : > { %p2974_p9 = pnand %p2973_p6, %p3781_p0 }
0x11da   : > { %p2979_p3 = por %p2978_p1, %p2977_p13 }
0x11db   : > { %p2975_p4 = pneg %p2974_p9 }
0x11dc   : > { %p2981_p10 = por %p2980_p2, %p2979_p3 }
0x11de   : > { %p2982_p11 = pnand %p2981_p10, %p2975_p4 }
0x11e0   : > { %2985 = shalt.err (!%p2982_p11)
}
0x11e1   : > { %2437 = dma.vmem_to_hbm [thread:$0]  (%p3781_p0), %s3678_s13, 128, %s3676_s2, %s1924_s17  }
0x11e2 PF: > { %s1949_s15 = sand.u32 1, %s3036_s25   ;;  %p3782_p12 = scmp.ne.s32.totalorder %s3762_s21, 0 }
0x11e3   : > { %p3783_p8 = scmp.ge.s32.totalorder %s3048_s28, 2  ;;  %s1950_s23 = scalar_lea.sflag [#allocation5], %s1949_s15 }
0x11e5   : > { %p2481_p5 = pnand %p3783_p8, %p3782_p12 }
0x11e7   : > { %3031 = dma.done.wait (!%p2481_p5), %s1950_s23, 128  }
0x11e8   : > { %3033 = vsyncadd (!%p2481_p5), %s1950_s23, 4294967168  ;;  %p32_p7 = scmp.ge.s32.totalorder %s3447_s18, 4   ;;  %s3784_s25 = smov %s3040_s26 }
0x11e9   : > { %s3785_s26 = smov %s3044_s27  ;;  %s3786_s27 = smov %s3458_s29 }
0x11ea   : > { %s3787_s28 = smov %s3447_s18  ;;  %34 = sbr.rel (!%p32_p7) target bundleno = 17 (0x11), region = 165 }
0x11f1   :  { %1955 = vsyncpa [#allocation4], 1 }
0x11f2   :  { %1957 = vsyncpa [#allocation4 + $0x1], 1 }
0x11f3   :  { %1958 = vsyncpa [#allocation7], 1 }
0x11f4   :  { %1959 = vsyncpa [#allocation10], 1 }
0x11f5   :  { %1960 = vsyncpa [#allocation13], 1 }
0x11f6   :  { %1961 = vsyncpa [#allocation16], 1 }
0x11f7   :  { %1962 = vsyncpa [#allocation19], 1 }
0x11f8   :  { %1963 = vsyncpa [#allocation22], 1 }
0x11f9   :  { %1964 = vsyncpa [#allocation5], 1 }
0x11fa   :  { %1966 = vsyncpa [#allocation5 + $0x1], 1 }

// kernel: tpu_custom_call.1
= control target key start
LH: loop header
LB: loop body
LE: loop exit
PB: predicated region body
PF: predicated region fallthrough
CT: control target
= control target key end

     0   :  { %s3721_s0 = inlined_call_operand.hbm [shape: f32[2,8,32], index: 0, kind: input, shape index: {}]   ;;  %s3722_s1 = inlined_call_operand.hbm [shape: f32[1,32], index: 1, kind: input, shape index: {}]   ;;  %s3723_s2 = inlined_call_operand.hbm [shape: f32[1,32], index: 2, kind: input, shape index: {}]   ;;  %s3724_s3 = inlined_call_operand.hbm [shape: f32[32,96], index: 3, kind: input, shape index: {}]   ;;  %s3725_s4 = inlined_call_operand.hbm [shape: f32[1,96], index: 4, kind: input, shape index: {}]   ;;  %s3726_s5 = inlined_call_operand.hbm [shape: f32[32,32], index: 5, kind: input, shape index: {}]   ;;  %s3727_s6 = inlined_call_operand.hbm [shape: f32[1,32], index: 6, kind: input, shape index: {}]   ;;  %s3728_s7 = inlined_call_operand.hbm [shape: f32[1,32], index: 7, kind: input, shape index: {}]   ;;  %s3729_s8 = inlined_call_operand.hbm [shape: f32[1,32], index: 8, kind: input, shape index: {}]   ;;  %s3730_s9 = inlined_call_operand.hbm [shape: f32[32,128], index: 9, kind: input, shape index: {}]   ;;  %s3731_s10 = inlined_call_operand.hbm [shape: f32[1,128], index: 10, kind: input, shape index: {}]   ;;  %s3732_s11 = inlined_call_operand.hbm [shape: f32[128,32], index: 11, kind: input, shape index: {}]   ;;  %s3733_s12 = inlined_call_operand.hbm [shape: f32[1,32], index: 12, kind: input, shape index: {}]   ;;  %s3734_s13 = inlined_call_operand.hbm [shape: f32[2,8,32], index: 13, kind: output, shape index: {}]  }
   0x1   :  { %3744 = sst [smem:[#allocation35_spill]] %s3721_s0 }
   0x2   :  { %3745 = sst [smem:[#allocation36_spill]] %s3722_s1 }
   0x3   :  { %3746 = sst [smem:[#allocation37_spill]] %s3723_s2 }
   0x4   :  { %3747 = sst [smem:[#allocation38_spill]] %s3724_s3 }
   0x5   :  { %3748 = sst [smem:[#allocation39_spill]] %s3734_s13 }
   0x6   :  { %18 = vsyncpa [#allocation4], 0 }
   0x7   :  { %20 = vsyncpa [#allocation4 + $0x1], 0 }
   0x8   :  { %21 = vsyncpa [#allocation7], 0 }
   0x9   :  { %22 = vsyncpa [#allocation10], 0 }
   0xa   :  { %23 = vsyncpa [#allocation13], 0 }
   0xb   :  { %24 = vsyncpa [#allocation16], 0 }
   0xc   :  { %25 = vsyncpa [#allocation19], 0 }
   0xd   :  { %26 = vsyncpa [#allocation22], 0 }
   0xe   :  { %27 = vsyncpa [#allocation5], 0 }
   0xf   :  { %29 = vsyncpa [#allocation5 + $0x1], 0  ;;  %s3150_s25 = smov 0   ;;  %s3152_s26 = smov 0  }
  0x10   :  { %s3154_s27 = smov 0   ;;  %s3156_s28 = smov 0  }
  0x11 LB: > { %s3050_s29 = smov [#allocation6]   ;;  %s3171_s14 = sadd.s32 4294967295, %s3048_s28   ;;  %s3048_s28 = sphi %s3156_s28, %s3787_s28   ;;  %s3044_s27 = sphi %s3154_s27, %s3786_s27   ;;  %s3040_s26 = sphi %s3152_s26, %s3785_s26   ;;  %s3036_s25 = sphi %s3150_s25, %s3784_s25  }
  0x12   : > { %s357_s30 = sshll.u32 %s3050_s29, 4  ;;  %3749 = sst [smem:[#allocation33_spill]] %s3171_s14  ;;  %s3176_s30 = int_to_ptr.vmem [resolvable:$true] %s357_s30 }
  0x13   : > { %p2122_p0 = scmp.ge.s32.totalorder %s3048_s28, 1  ;;  %p3741_p1 = scmp.eq.s32.totalorder %s3171_s14, 0 }
  0x14   : > { %p344_p2 = scmp.lt.s32.totalorder %s3048_s28, 3  ;;  %s3051_s16 = smov [#allocation9]  }
  0x15   : > { %s378_s17 = sshll.u32 %s3051_s16, 4  ;;  %s3052_s19 = smov [#allocation12]   ;;  %s3185_s17 = int_to_ptr.vmem [resolvable:$true] %s378_s17 }
  0x16   : > { %p3178_p3 = pnand %p2122_p0, %p344_p2  ;;  %s402_s20 = sshll.u32 %s3052_s19, 4  ;;  %s3193_s20 = int_to_ptr.vmem [resolvable:$true] %s402_s20 }
  0x17   : > { %s3753_s1 = sld [smem:[#allocation36_spill]] }
  0x18   : > { %s3750_s15 = scalar_select %p3178_p3, 1, 0 }
  0x19   : > { %p2439_p5 = pneg %p3178_p3 }
  0x1a   : > { %3751 = sst [smem:[#allocation34_spill]] %s3750_s15 }
  0x1b   : > { %p3189_p6 = pnand %p2439_p5, %p3741_p1 }
  0x1d   : > { %s2592_s23 = scalar_lea.hbm %s3753_s1, 16  ;;  %p3203_p8 = pneg %p3189_p6 }
  0x1e   : > { %p2593_p7 = scmp.ne.s32.totalorder %s3753_s1, %s2592_s23  ;;  %p2599_p11 = scmp.lt.u32.totalorder %s2592_s23, %s3753_s1 }
  0x20   : > { %p2595_p9 = pnand %p3203_p8, %p2593_p7 }
  0x22   : > { %p2596_p10 = pneg %p2595_p9 }
  0x24   : > { %p2601_p12 = pnand %p2599_p11, %p2596_p10 }
  0x26   : > { %2604 = shalt.err (!%p2601_p12)
}
  0x27   : > { %s2605_s21 = scalar_lea.vmem %s3176_s30, 16  ;;  %s2612_s22 = scalar_lea.vmem %s3176_s30, 32 }
  0x28   : > { %p2606_p13 = scmp.ne.s32.totalorder %s3176_s30, %s2605_s21  ;;  %p2613_p5 = scmp.lt.s32.totalorder %s3176_s30, %s3176_s30 }
  0x29   : > { %p2614_p7 = scmp.lt.s32.totalorder %s2612_s22, %s2605_s21 }
  0x2a   : > { %p2608_p0 = pnand %p2606_p13, %p3203_p8 }
  0x2b   : > { %p2615_p9 = por %p2614_p7, %p2613_p5 }
  0x2c   : > { %p2609_p2 = pneg %p2608_p0 }
  0x2e   : > { %p2616_p4 = pnand %p2615_p9, %p2609_p2 }
  0x30   : > { %2619 = shalt.err (!%p2616_p4)
}
  0x31   : > { %2442 = dma.hbm_to_vmem [thread:$0]  (!%p3189_p6), %s3753_s1, 16, %s3176_s30, [#allocation7]  }
  0x32   : > { %s3755_s3 = sld [smem:[#allocation38_spill]] }
  0x38   : > { %s2620_s19 = scalar_lea.hbm %s3755_s3, 512 }
  0x39   : > { %p2621_p10 = scmp.ne.s32.totalorder %s3755_s3, %s2620_s19  ;;  %p2627_p4 = scmp.lt.u32.totalorder %s2620_s19, %s3755_s3 }
  0x3b   : > { %p2623_p11 = pnand %p2621_p10, %p3203_p8 }
  0x3d   : > { %p2624_p12 = pneg %p2623_p11 }
  0x3f   : > { %p2629_p13 = pnand %p2627_p4, %p2624_p12 }
  0x41   : > { %2632 = shalt.err (!%p2629_p13)
}
  0x42   : > { %s2633_s30 = scalar_lea.vmem %s3185_s17, 512  ;;  %p2641_p7 = scmp.lt.s32.totalorder %s3185_s17, %s3185_s17 }
  0x43   : > { %p2634_p0 = scmp.ne.s32.totalorder %s3185_s17, %s2633_s30  ;;  %p2642_p9 = scmp.lt.s32.totalorder %s2633_s30, %s2633_s30 }
  0x45   : > { %p2636_p2 = pnand %p2634_p0, %p3203_p8  ;;  %p2643_p10 = por %p2642_p9, %p2641_p7 }
  0x47   : > { %p2637_p5 = pneg %p2636_p2 }
  0x49   : > { %p2644_p11 = pnand %p2643_p10, %p2637_p5 }
  0x4b   : > { %2647 = shalt.err (!%p2644_p11)
}
  0x4c   : > { %s3053_s0 = smov 128   ;;  %s3054_s15 = smov 8  }
  0x4d   : > { %2448 = dma.hbm_to_vmem [thread:$0]  (!%p3189_p6), %s3755_s3, 512, %s3185_s17, [#allocation10], %s3053_s0, %s3053_s0, %s3054_s15  }
  0x4e   : > { %s2648_s19 = scalar_lea.hbm %s3726_s5, 512 }
  0x4f   : > { %p2649_p12 = scmp.ne.s32.totalorder %s3726_s5, %s2648_s19  ;;  %p2655_p0 = scmp.lt.u32.totalorder %s2648_s19, %s3726_s5 }
  0x51   : > { %p2651_p4 = pnand %p2649_p12, %p3203_p8 }
  0x53   : > { %p2652_p13 = pneg %p2651_p4 }
  0x55   : > { %p2657_p2 = pnand %p2655_p0, %p2652_p13 }
  0x57   : > { %2660 = shalt.err (!%p2657_p2)
}
  0x58   : > { %s2661_s17 = scalar_lea.vmem %s3193_s20, 512  ;;  %p2669_p10 = scmp.lt.s32.totalorder %s3193_s20, %s3193_s20 }
  0x59   : > { %p2662_p5 = scmp.ne.s32.totalorder %s3193_s20, %s2661_s17  ;;  %p2670_p11 = scmp.lt.s32.totalorder %s2661_s17, %s2661_s17 }
  0x5b   : > { %p2664_p7 = pnand %p2662_p5, %p3203_p8  ;;  %p2671_p12 = por %p2670_p11, %p2669_p10 }
  0x5d   : > { %p2665_p9 = pneg %p2664_p7 }
  0x5f   : > { %p2672_p4 = pnand %p2671_p12, %p2665_p9 }
  0x61   : > { %2675 = shalt.err (!%p2672_p4)
}
  0x62   : > { %2454 = dma.hbm_to_vmem [thread:$0]  (!%p3189_p6), %s3726_s5, 512, %s3193_s20, [#allocation13], %s3053_s0, %s3053_s0, %s3054_s15  }
  0x63   : > { %s3055_s23 = smov [#allocation15]   ;;  %s3056_s29 = smov [#allocation18]  }
  0x64   : > { %s427_s24 = sshll.u32 %s3055_s23, 4  ;;  %s448_s19 = sshll.u32 %s3056_s29, 4  ;;  %s428_s24 = int_to_ptr.vmem [resolvable:$true] %s427_s24  ;;  %s449_s19 = int_to_ptr.vmem [resolvable:$true] %s448_s19 }
  0x65   : > { %s2676_s30 = scalar_lea.hbm %s3728_s7, 16 }
  0x66   : > { %p2677_p13 = scmp.ne.s32.totalorder %s3728_s7, %s2676_s30  ;;  %p2683_p5 = scmp.lt.u32.totalorder %s2676_s30, %s3728_s7 }
  0x68   : > { %p2679_p0 = pnand %p2677_p13, %p3203_p8 }
  0x6a   : > { %p2680_p2 = pneg %p2679_p0 }
  0x6c   : > { %p2685_p7 = pnand %p2683_p5, %p2680_p2 }
  0x6e   : > { %2688 = shalt.err (!%p2685_p7)
}
  0x6f   : > { %s2689_s20 = scalar_lea.vmem %s428_s24, 16  ;;  %s2696_s13 = scalar_lea.vmem %s428_s24, 32 }
  0x70   : > { %p2690_p9 = scmp.ne.s32.totalorder %s428_s24, %s2689_s20  ;;  %p2697_p12 = scmp.lt.s32.totalorder %s428_s24, %s428_s24 }
  0x71   : > { %p2698_p4 = scmp.lt.s32.totalorder %s2696_s13, %s2689_s20 }
  0x72   : > { %p2692_p10 = pnand %p2690_p9, %p3203_p8 }
  0x73   : > { %p2699_p1 = por %p2698_p4, %p2697_p12 }
  0x74   : > { %p2693_p11 = pneg %p2692_p10 }
  0x76   : > { %p2700_p3 = pnand %p2699_p1, %p2693_p11 }
  0x78   : > { %2703 = shalt.err (!%p2700_p3)
}
  0x79   : > { %2460 = dma.hbm_to_vmem [thread:$0]  (!%p3189_p6), %s3728_s7, 16, %s428_s24, [#allocation16]  }
  0x7a   : > { %s2704_s21 = scalar_lea.hbm %s3730_s9, 512 }
  0x7b   : > { %p2705_p13 = scmp.ne.s32.totalorder %s3730_s9, %s2704_s21  ;;  %p2711_p3 = scmp.lt.u32.totalorder %s2704_s21, %s3730_s9 }
  0x7d   : > { %p2707_p0 = pnand %p2705_p13, %p3203_p8 }
  0x7f   : > { %p2708_p1 = pneg %p2707_p0 }
  0x81   : > { %p2713_p2 = pnand %p2711_p3, %p2708_p1 }
  0x83   : > { %2716 = shalt.err (!%p2713_p2)
}
  0x84   : > { %s2717_s20 = scalar_lea.vmem %s449_s19, 512  ;;  %p2725_p10 = scmp.lt.s32.totalorder %s449_s19, %s449_s19 }
  0x85   : > { %p2718_p5 = scmp.ne.s32.totalorder %s449_s19, %s2717_s20  ;;  %p2726_p11 = scmp.lt.s32.totalorder %s2717_s20, %s2717_s20 }
  0x87   : > { %p2720_p7 = pnand %p2718_p5, %p3203_p8  ;;  %p2727_p12 = por %p2726_p11, %p2725_p10 }
  0x89   : > { %p2721_p9 = pneg %p2720_p7 }
  0x8b   : > { %p2728_p4 = pnand %p2727_p12, %p2721_p9 }
  0x8d   : > { %2731 = shalt.err (!%p2728_p4)
}
  0x8e   : > { %2466 = dma.hbm_to_vmem [thread:$0]  (!%p3189_p6), %s3730_s9, 512, %s449_s19, [#allocation19], %s3053_s0, %s3053_s0, %s3054_s15  }
  0x8f   : > { %s3057_s3 = smov [#allocation21]   ;;  %s3058_s14 = smov [#allocation8]  }
  0x90   : > { %s472_s23 = sshll.u32 %s3057_s3, 4  ;;  %s368_s29 = sshll.u32 %s3058_s14, 4  ;;  %s473_s23 = int_to_ptr.vmem [resolvable:$true] %s472_s23  ;;  %s369_s29 = int_to_ptr.vmem [resolvable:$true] %s368_s29 }
  0x91   : > { %s2732_s30 = scalar_lea.hbm %s3732_s11, 2048 }
  0x92   : > { %p2733_p13 = scmp.ne.s32.totalorder %s3732_s11, %s2732_s30  ;;  %p2739_p3 = scmp.lt.u32.totalorder %s2732_s30, %s3732_s11 }
  0x94   : > { %p2735_p0 = pnand %p2733_p13, %p3203_p8 }
  0x96   : > { %p2736_p1 = pneg %p2735_p0 }
  0x98   : > { %p2741_p2 = pnand %p2739_p3, %p2736_p1 }
  0x9a   : > { %2744 = shalt.err (!%p2741_p2)
}
  0x9b   : > { %s2745_s19 = scalar_lea.vmem %s473_s23, 2048  ;;  %p2753_p10 = scmp.lt.s32.totalorder %s473_s23, %s473_s23 }
  0x9c   : > { %p2746_p5 = scmp.ne.s32.totalorder %s473_s23, %s2745_s19  ;;  %p2754_p11 = scmp.lt.s32.totalorder %s2745_s19, %s2745_s19 }
  0x9e   : > { %p2748_p7 = pnand %p2746_p5, %p3203_p8  ;;  %p2755_p12 = por %p2754_p11, %p2753_p10 }
  0xa0   : > { %p2749_p9 = pneg %p2748_p7 }
  0xa2   : > { %p2756_p4 = pnand %p2755_p12, %p2749_p9 }
  0xa4   : > { %2759 = shalt.err (!%p2756_p4)
}
  0xa5   : > { %2472 = dma.hbm_to_vmem [thread:$0]  (!%p3189_p6), %s3732_s11, 2048, %s473_s23, [#allocation22], %s3053_s0, %s3053_s0, %s3054_s15  }
  0xa6   : > { %s3756_s2 = sld [smem:[#allocation37_spill]] }
  0xac   : > { %s2760_s22 = scalar_lea.hbm %s3756_s2, 16 }
  0xad   : > { %p2761_p13 = scmp.ne.s32.totalorder %s3756_s2, %s2760_s22  ;;  %p2767_p3 = scmp.lt.u32.totalorder %s2760_s22, %s3756_s2 }
  0xaf   : > { %p2763_p0 = pnand %p2761_p13, %p3203_p8 }
  0xb1   : > { %p2764_p1 = pneg %p2763_p0 }
  0xb3   : > { %p2769_p2 = pnand %p2767_p3, %p2764_p1 }
  0xb5   : > { %2772 = shalt.err (!%p2769_p2)
}
  0xb6   : > { %s2773_s24 = scalar_lea.vmem %s369_s29, 16  ;;  %s2780_s0 = scalar_lea.vmem %s369_s29, 32 }
  0xb7   : > { %p2774_p5 = scmp.ne.s32.totalorder %s369_s29, %s2773_s24  ;;  %p2781_p10 = scmp.lt.s32.totalorder %s369_s29, %s369_s29 }
  0xb8   : > { %p2782_p11 = scmp.lt.s32.totalorder %s2780_s0, %s2773_s24 }
  0xb9   : > { %p2776_p7 = pnand %p2774_p5, %p3203_p8 }
  0xba   : > { %p2783_p12 = por %p2782_p11, %p2781_p10 }
  0xbb   : > { %p2777_p9 = pneg %p2776_p7 }
  0xbd   : > { %p2784_p4 = pnand %p2783_p12, %p2777_p9 }
  0xbf   : > { %2787 = shalt.err (!%p2784_p4)
}
  0xc0   : > { %2445 = dma.hbm_to_vmem [thread:$0]  (!%p3189_p6), %s3756_s2, 16, %s369_s29, [#allocation7]  }
  0xc1   : > { %s3059_s19 = smov [#allocation11]   ;;  %s3060_s3 = smov [#allocation14]  }
  0xc2   : > { %s392_s13 = sshll.u32 %s3059_s19, 4  ;;  %s416_s14 = sshll.u32 %s3060_s3, 4  ;;  %s393_s13 = int_to_ptr.vmem [resolvable:$true] %s392_s13  ;;  %s417_s14 = int_to_ptr.vmem [resolvable:$true] %s416_s14 }
  0xc3   : > { %s2788_s30 = scalar_lea.hbm %s3725_s4, 16 }
  0xc4   : > { %p2789_p13 = scmp.ne.s32.totalorder %s3725_s4, %s2788_s30  ;;  %p2795_p3 = scmp.lt.u32.totalorder %s2788_s30, %s3725_s4 }
  0xc6   : > { %p2791_p0 = pnand %p2789_p13, %p3203_p8 }
  0xc8   : > { %p2792_p1 = pneg %p2791_p0 }
  0xca   : > { %p2797_p2 = pnand %p2795_p3, %p2792_p1 }
  0xcc   : > { %2800 = shalt.err (!%p2797_p2)
}
  0xcd   : > { %s2801_s29 = scalar_lea.vmem %s393_s13, 16  ;;  %s2808_s0 = scalar_lea.vmem %s393_s13, 32 }
  0xce   : > { %p2802_p5 = scmp.ne.s32.totalorder %s393_s13, %s2801_s29  ;;  %p2809_p10 = scmp.lt.s32.totalorder %s393_s13, %s393_s13 }
  0xcf   : > { %p2810_p11 = scmp.lt.s32.totalorder %s2808_s0, %s2801_s29 }
  0xd0   : > { %p2804_p7 = pnand %p2802_p5, %p3203_p8 }
  0xd1   : > { %p2811_p12 = por %p2810_p11, %p2809_p10 }
  0xd2   : > { %p2805_p9 = pneg %p2804_p7 }
  0xd4   : > { %p2812_p4 = pnand %p2811_p12, %p2805_p9 }
  0xd6   : > { %2815 = shalt.err (!%p2812_p4)
}
  0xd7   : > { %2451 = dma.hbm_to_vmem [thread:$0]  (!%p3189_p6), %s3725_s4, 16, %s393_s13, [#allocation10]  }
  0xd8   : > { %s2816_s21 = scalar_lea.hbm %s3727_s6, 16 }
  0xd9   : > { %p2817_p13 = scmp.ne.s32.totalorder %s3727_s6, %s2816_s21  ;;  %p2823_p3 = scmp.lt.u32.totalorder %s2816_s21, %s3727_s6 }
  0xdb   : > { %p2819_p0 = pnand %p2817_p13, %p3203_p8 }
  0xdd   : > { %p2820_p1 = pneg %p2819_p0 }
  0xdf   : > { %p2825_p2 = pnand %p2823_p3, %p2820_p1 }
  0xe1   : > { %2828 = shalt.err (!%p2825_p2)
}
  0xe2   : > { %s2829_s20 = scalar_lea.vmem %s417_s14, 16  ;;  %s2836_s13 = scalar_lea.vmem %s417_s14, 32 }
  0xe3   : > { %p2830_p5 = scmp.ne.s32.totalorder %s417_s14, %s2829_s20  ;;  %p2837_p10 = scmp.lt.s32.totalorder %s417_s14, %s417_s14 }
  0xe4   : > { %p2838_p11 = scmp.lt.s32.totalorder %s2836_s13, %s2829_s20 }
  0xe5   : > { %p2832_p7 = pnand %p2830_p5, %p3203_p8 }
  0xe6   : > { %p2839_p12 = por %p2838_p11, %p2837_p10 }
  0xe7   : > { %p2833_p9 = pneg %p2832_p7 }
  0xe9   : > { %p2840_p4 = pnand %p2839_p12, %p2833_p9 }
  0xeb   : > { %2843 = shalt.err (!%p2840_p4)
}
  0xec   : > { %2457 = dma.hbm_to_vmem [thread:$0]  (!%p3189_p6), %s3727_s6, 16, %s417_s14, [#allocation13]  }
  0xed   : > { %s3061_s0 = smov [#allocation17]   ;;  %s3062_s23 = smov [#allocation20]  }
  0xee   : > { %s438_s15 = sshll.u32 %s3061_s0, 4  ;;  %s462_s19 = sshll.u32 %s3062_s23, 4  ;;  %s439_s15 = int_to_ptr.vmem [resolvable:$true] %s438_s15  ;;  %s463_s19 = int_to_ptr.vmem [resolvable:$true] %s462_s19 }
  0xef   : > { %s2844_s22 = scalar_lea.hbm %s3729_s8, 16 }
  0xf0   : > { %p2845_p13 = scmp.ne.s32.totalorder %s3729_s8, %s2844_s22  ;;  %p2851_p3 = scmp.lt.u32.totalorder %s2844_s22, %s3729_s8 }
  0xf2   : > { %p2847_p0 = pnand %p2845_p13, %p3203_p8 }
  0xf4   : > { %p2848_p1 = pneg %p2847_p0 }
  0xf6   : > { %p2853_p2 = pnand %p2851_p3, %p2848_p1 }
  0xf8   : > { %2856 = shalt.err (!%p2853_p2)
}
  0xf9   : > { %s2857_s14 = scalar_lea.vmem %s439_s15, 16  ;;  %s2864_s13 = scalar_lea.vmem %s439_s15, 32 }
  0xfa   : > { %p2858_p5 = scmp.ne.s32.totalorder %s439_s15, %s2857_s14  ;;  %p2865_p10 = scmp.lt.s32.totalorder %s439_s15, %s439_s15 }
  0xfb   : > { %p2866_p11 = scmp.lt.s32.totalorder %s2864_s13, %s2857_s14 }
  0xfc   : > { %p2860_p7 = pnand %p2858_p5, %p3203_p8 }
  0xfd   : > { %p2867_p12 = por %p2866_p11, %p2865_p10 }
  0xfe   : > { %p2861_p9 = pneg %p2860_p7 }
 0x100   : > { %p2868_p4 = pnand %p2867_p12, %p2861_p9 }
 0x102   : > { %2871 = shalt.err (!%p2868_p4)
}
 0x103   : > { %2463 = dma.hbm_to_vmem [thread:$0]  (!%p3189_p6), %s3729_s8, 16, %s439_s15, [#allocation16]  }
 0x104   : > { %s2872_s3 = scalar_lea.hbm %s3731_s10, 16 }
 0x105   : > { %p2873_p13 = scmp.ne.s32.totalorder %s3731_s10, %s2872_s3  ;;  %p2879_p3 = scmp.lt.u32.totalorder %s2872_s3, %s3731_s10 }
 0x107   : > { %p2875_p0 = pnand %p2873_p13, %p3203_p8 }
 0x109   : > { %p2876_p1 = pneg %p2875_p0 }
 0x10b   : > { %p2881_p2 = pnand %p2879_p3, %p2876_p1 }
 0x10d   : > { %2884 = shalt.err (!%p2881_p2)
}
 0x10e   : > { %s2885_s1 = scalar_lea.vmem %s463_s19, 16  ;;  %s2892_s15 = scalar_lea.vmem %s463_s19, 32 }
 0x10f   : > { %p2886_p5 = scmp.ne.s32.totalorder %s463_s19, %s2885_s1  ;;  %p2893_p10 = scmp.lt.s32.totalorder %s463_s19, %s463_s19 }
 0x110   : > { %p2894_p11 = scmp.lt.s32.totalorder %s2892_s15, %s2885_s1 }
 0x111   : > { %p2888_p7 = pnand %p2886_p5, %p3203_p8 }
 0x112   : > { %p2895_p12 = por %p2894_p11, %p2893_p10 }
 0x113   : > { %p2889_p9 = pneg %p2888_p7 }
 0x115   : > { %p2896_p4 = pnand %p2895_p12, %p2889_p9 }
 0x117   : > { %2899 = shalt.err (!%p2896_p4)
}
 0x118   : > { %2469 = dma.hbm_to_vmem [thread:$0]  (!%p3189_p6), %s3731_s10, 16, %s463_s19, [#allocation19]  }
 0x119   : > { %s3063_s13 = smov [#allocation23]   ;;  %s2900_s23 = scalar_lea.hbm %s3733_s12, 16 }
 0x11a   : > { %s486_s24 = sshll.u32 %s3063_s13, 4  ;;  %p2901_p13 = scmp.ne.s32.totalorder %s3733_s12, %s2900_s23  ;;  %s487_s24 = int_to_ptr.vmem [resolvable:$true] %s486_s24 }
 0x11b   : > { %p2907_p3 = scmp.lt.u32.totalorder %s2900_s23, %s3733_s12 }
 0x11c   : > { %p2903_p0 = pnand %p2901_p13, %p3203_p8 }
 0x11e   : > { %p2904_p1 = pneg %p2903_p0 }
 0x120   : > { %p2909_p2 = pnand %p2907_p3, %p2904_p1 }
 0x122   : > { %2912 = shalt.err (!%p2909_p2)
}
 0x123   : > { %s2913_s19 = scalar_lea.vmem %s487_s24, 16  ;;  %s2920_s17 = scalar_lea.vmem %s487_s24, 32 }
 0x124   : > { %p2914_p5 = scmp.ne.s32.totalorder %s487_s24, %s2913_s19  ;;  %p2921_p10 = scmp.lt.s32.totalorder %s487_s24, %s487_s24 }
 0x125   : > { %p2922_p11 = scmp.lt.s32.totalorder %s2920_s17, %s2913_s19 }
 0x126   : > { %p2916_p7 = pnand %p2914_p5, %p3203_p8 }
 0x127   : > { %p2923_p12 = por %p2922_p11, %p2921_p10 }
 0x128   : > { %p2917_p9 = pneg %p2916_p7 }
 0x12a   : > { %p2924_p4 = pnand %p2923_p12, %p2917_p9 }
 0x12c   : > { %2927 = shalt.err (!%p2924_p4)
}
 0x12d   : > { %s3757_s16 = sld [smem:[#allocation33_spill]]  ;;  %s2121_s20 = sadd.s32 4294967294, %s3048_s28  }
 0x12e   : > { %2475 = dma.hbm_to_vmem [thread:$0]  (!%p3189_p6), %s3733_s12, 16, %s487_s24, [#allocation22]  }
 0x12f   : > { %s3447_s18 = sadd.s32 1, %s3048_s28   ;;  %s42_s13 = sadd.s32 1, %s3044_s27 }
 0x130   : > { %s39_s14 = ssub.s32 %s3048_s28, %s3447_s18  ;;  %p49_p13 = scmp.ne.s32.totalorder %s3044_s27, %s3040_s26 }
 0x131   : > { %p40_p8 = scmp.eq.s32.totalorder %s39_s14, 0  ;;  %p50_p0 = scmp.eq.s32.totalorder %s3048_s28, 0 }
 0x132   : > { %p55_p1 = scmp.ne.s32.totalorder %s3040_s26, %s3036_s25  ;;  %p337_p7 = scmp.eq.s32.totalorder %s2121_s20, 1 }
 0x133   : > { %s3458_s29 = scalar_select %p40_p8, %s3044_s27, %s42_s13  }
 0x134   : > { %p3460_p3 = por %p50_p0, %p49_p13  ;;  %p3759_p2 = scmp.eq.s32.totalorder %s3757_s16, 0 }
 0x135   : > { %p331_p5 = scmp.eq.s32.totalorder %s3757_s16, 1  ;;  %p2496_p9 = scmp.lt.s32.totalorder %s3048_s28, 2 }
 0x136   : > { %p3466_p6 = por %p3759_p2, %p55_p1  ;;  %s497_s23 = sand.u32 1, %s3044_s27  }
 0x137   : > { %p3473_p10 = por %p331_p5, %p49_p13  ;;  %p3477_p11 = por %p337_p7, %p55_p1 }
 0x138   : > { %s2136_s22 = sshll.u32 %s497_s23, 3  ;;  %s2137_s30 = sshll.u32 %s3048_s28, 7 }
 0x139   : > { %s3761_s3 = scalar_select %p3473_p10, 1, 0 }
 0x13a   : > { %s3762_s21 = scalar_select %p3477_p11, 1, 0 }
 0x13b   : > { %s3763_s1 = sld [smem:[#allocation35_spill]]  ;;  %s501_s16 = scalar_lea.vmem [#allocation3], %s2136_s22 }
 0x13c   : > { %s508_s20 = sshll.u32 %s501_s16, 4  ;;  %p3491_p12 = pnand %p2496_p9, %p3460_p3  ;;  %s3487_s20 = int_to_ptr.vmem [resolvable:$true] %s508_s20 }
 0x13d   : > { %s498_s13 = scalar_lea.sflag [#allocation4], %s497_s23 }
 0x13e   : > { %p2930_p8 = pneg %p3491_p12 }
 0x141   : > { %s3485_s15 = scalar_lea.hbm %s3763_s1, %s2137_s30  ;;  %s2933_s19 = scalar_lea.hbm %s3763_s1, 256 }
 0x142   : > { %s2928_s2 = scalar_lea.hbm %s3485_s15, 128  ;;  %p2934_p1 = scmp.lt.u32.totalorder %s3485_s15, %s3763_s1 }
 0x143   : > { %p2929_p4 = scmp.ne.s32.totalorder %s3485_s15, %s2928_s2  ;;  %p2935_p3 = scmp.lt.u32.totalorder %s2933_s19, %s2928_s2 }
 0x144   : > { %p2937_p5 = scmp.lt.u32.totalorder %s2928_s2, %s3485_s15 }
 0x145   : > { %p2931_p13 = pnand %p2930_p8, %p2929_p4  ;;  %p2936_p2 = por %p2935_p3, %p2934_p1 }
 0x147   : > { %p2932_p0 = pneg %p2931_p13  ;;  %p2938_p7 = por %p2937_p5, %p2936_p2 }
 0x149   : > { %p2939_p9 = pnand %p2938_p7, %p2932_p0 }
 0x14b   : > { %2942 = shalt.err (!%p2939_p9)
}
 0x14c   : > { %s2943_s23 = scalar_lea.vmem %s3487_s20, 128  ;;  %s3064_s16 = smov [#allocation3]  }
 0x14d   : > { %p2944_p4 = scmp.ne.s32.totalorder %s3487_s20, %s2943_s23  ;;  %s2948_s22 = sshll.u32 %s3064_s16, 4  ;;  %s2949_s22 = int_to_ptr.vmem [resolvable:$false] %s2948_s22 }
 0x14e   : > { %s2950_s30 = scalar_lea.vmem %s2949_s22, 256  ;;  %p2951_p10 = scmp.lt.s32.totalorder %s3487_s20, %s2949_s22 }
 0x14f   : > { %p2946_p13 = pnand %p2944_p4, %p2930_p8  ;;  %p2952_p1 = scmp.lt.s32.totalorder %s2950_s30, %s2943_s23 }
 0x151   : > { %p2947_p11 = pneg %p2946_p13  ;;  %p2953_p3 = por %p2952_p1, %p2951_p10 }
 0x153   : > { %p2954_p2 = pnand %p2953_p3, %p2947_p11 }
 0x155   : > { %2957 = shalt.err (!%p2954_p2)
}
 0x156   : > { %2479 = dma.hbm_to_vmem [thread:$0]  (!%p3491_p12), %s3485_s15, 128, %s3487_s20, %s498_s13  }
 0x157   : > { %s3765_s2 = sld [smem:[#allocation34_spill]] }
 0x15d   : > { %p3766_p0 = scmp.ne.s32.totalorder %s3765_s2, 0 }
 0x15e   : > { %s3523_s19 = sand.u32 (!%p3766_p0), 1, %s3040_s26  }
 0x15f   : > { %517 = sbr.rel (%p3766_p0) target bundleno = 4578 (0x11e2), region = 72  ;;  %s2139_s0 = sshll.u32 (!%p3766_p0), %s3523_s19, 3 }
 0x160   : > { %s520_s17 = scalar_lea.sflag (!%p3766_p0), [#allocation4], %s3523_s19  ;;  %s523_s23 = scalar_lea.vmem (!%p3766_p0), [#allocation3], %s2139_s0 }
 0x166   : > { %3003 = dma.done.wait (%p3466_p6), %s520_s17, 128  }
 0x167   : > { %3005 = vsyncadd (%p3466_p6), %s520_s17, 4294967168  ;;  %s3767_s15 = sld [smem:[#allocation33_spill]] }
 0x16d   : > { %p3768_p10 = scmp.eq.s32.totalorder %s3767_s15, 0 }
 0x16f   : > { %3007 = dma.done.wait (%p3768_p10), [#allocation7], 32   ;;  %p3769_p11 = pmov %p3768_p10 }
 0x170   : > { %p3770_p12 = pmov %p3768_p10 }
 0x171   : > { %3009 = vsyncadd (%p3769_p11), [#allocation7], 4294967264 }
 0x172   : > { %3011 = dma.done.wait (%p3770_p12), [#allocation10], 528   ;;  %p3771_p8 = pmov %p3768_p10 }
 0x174   : > { %3013 = vsyncadd (%p3771_p8), [#allocation10], 4294966768  ;;  %p3772_p5 = pmov %p3771_p8 }
 0x176   : > { %3015 = dma.done.wait (%p3772_p5), [#allocation13], 528   ;;  %p3773_p7 = pmov %p3772_p5 }
 0x177   : > { %p3774_p6 = pmov %p3772_p5 }
 0x178   : > { %3017 = vsyncadd (%p3773_p7), [#allocation13], 4294966768 }
 0x179   : > { %3019 = dma.done.wait (%p3774_p6), [#allocation16], 32   ;;  %p3775_p9 = pmov %p3772_p5 }
 0x17a   : > { %p3776_p4 = pmov %p3772_p5 }
 0x17b   : > { %3021 = vsyncadd (%p3775_p9), [#allocation16], 4294967264 }
 0x17c   : > { %3023 = dma.done.wait (%p3776_p4), [#allocation19], 528   ;;  %p3777_p13 = pmov %p3776_p4 }
 0x17d   : > { %p3778_p1 = pmov %p3776_p4 }
 0x17e   : > { %3025 = vsyncadd (%p3777_p13), [#allocation19], 4294966768 }
 0x17f   : > { %3027 = dma.done.wait (%p3778_p1), [#allocation22], 2064   ;;  %p3779_p3 = pmov %p3778_p1 }
 0x180   : > { %vm617_vm0 = vcmask 261120   ;;  %v3557_v0 = vld [vmem:[%s523_s23] sm:$0xff]  ;;  %v646_v7 = vld [vmem:[#allocation9] sm:$0xff]  ;;  %v3065_v10 = vmov 0.0|0.0   ;;  %vm3066_vm1 = vmmov 0   ;;  %v3067_v13 = vmov 0.0  }
 0x181   : > { %3029 = vsyncadd (%p3779_p3), [#allocation22], 4294965232  ;;  %v618_v1 = vsel %vm617_vm0, %v3557_v0, 0.0  ;;  %v647_v8 = vld [vmem:[#allocation9 + $0x8] sm:$0xff]  ;;  %v648_v9 = vld [vmem:[#allocation9 + $0x10] sm:$0xff]  ;;  %2351 = vmatprep.subr.bf16.mxu0 %v3065_v10  ;;  %2242 = vmatprep.mubr.msk.f32.mxu0 %vm3066_vm1, %v3067_v13  ;;  %s3068_s24 = smov 96  }
 0x182   : > { %619 = vadd.xlane.f32.xlu0 %v618_v1  ;;  %v2352_v11 = vpack.c.bf16 %v647_v8, %v646_v7  ;;  %v649_v12 = vld [vmem:[#allocation9 + $0x18] sm:$0xff]  ;;  %2270 = vmatprep.subr.mxu1 %v3067_v13  ;;  %v2155_v24 = vld [vmem:[#allocation11] ss:$0 sm:$0xff]  ;;  %vm733_vm2 = vcmask 64512   ;;  %s3069_s20 = smov 64   ;;  %s3070_s14 = smov 88  }
 0x183   : > { %2272 = vmatprep.mubr.msk.f32.mxu1 %vm3066_vm1, %v3067_v13  ;;  %v2355_v14 = vpack.c.bf16 %v649_v12, %v648_v9  ;;  %v2153_v19 = vld [vmem:[#allocation6] ss:$0 sm:$0xff]  ;;  %v2154_v21 = vld [vmem:[#allocation8] ss:$0 sm:$0xff]  ;;  %s3071_s13 = smov 120   ;;  %v895_v41 = vld [vmem:[#allocation12] sm:$0xff] }
 0x184   : > { %2353 = vmatpush3.bf16.msra.mxu0 %v2352_v11  ;;  %s3072_s16 = smov 56   ;;  %s3073_s22 = smov 80   ;;  %v1135_v57 = vld [vmem:[#allocation12 + $0x8] sm:$0xff] }
 0x185   : > { %2354 = vmatprep.subr.bf16.mxu0 %v3065_v10  ;;  %s3074_s30 = smov 112   ;;  %s3075_s2 = smov 48   ;;  %2271 = vmatpush3.msra.mxu1 %v1135_v57  ;;  %v1735_v57 = vld [vmem:[#allocation18] sm:$0xff] }
 0x186   : > { %s3076_s17 = smov 72   ;;  %2280 = vmatprep.subr.mxu1 %v3067_v13  ;;  %s3077_s23 = smov 104  }
 0x187   : > { %p3781_p0 = scmp.ne.s32.totalorder %s3761_s3, 0 }
 0x188   : > { %2356 = vmatpush3.bf16.msra.mxu0 %v2355_v14 }
 0x189   : > { %2245 = vmatprep.subr.mxu0 %v3067_v13 }
 0x20f   : > { %v620_v2 = vpop.xlane.xlu0 %619 }
 0x210   : > { %v622_v3 = vmul.f32 0.03125, %v620_v2 }
 0x212   : > { %v623_v4 = vsub.f32 %v3557_v0, %v622_v3 }
 0x214   : > { %v624_v5 = vmul.f32 %v623_v4, %v623_v4 }
 0x216   : > { %v625_v6 = vsel %vm617_vm0, %v624_v5, 0.0 }
 0x217   : > { %626 = vadd.xlane.f32.xlu0 %v625_v6 }
 0x2a4   : > { %v627_v15 = vpop.xlane.xlu0 %626 }
 0x2a5   : > { %v628_v16 = vmul.f32 0.03125, %v627_v15 }
 0x2a7   : > { %v629_v17 = vadd.f32 1e-05, %v628_v16 }
 0x2a9   : > { %2570 = vrsqrt.f32 %v629_v17 }
 0x2b3   : > { %v2571_v18 = vpop.eup %2570 }
 0x2b4   : > { %v631_v20 = vmul.f32 %v2571_v18, %v623_v4 }
 0x2b6   : > { %v638_v22 = vmul.f32 %v2153_v19, %v631_v20 }
 0x2b8   : > { %v645_v23 = vadd.f32 %v2154_v21, %v638_v22  ;;  %v1377_v22 = vld [vmem:[#allocation12 + $0x10] sm:$0xff] }
 0x2ba   : > { %2243 = vmatmul.mubr.msk.f32.vlgmr.msra.gmra.mrb[0].mxu0 %vm617_vm0, %v645_v23 }
 0x2bb   : > { %2247 = vmatprep.mubr.msk.f32.mxu0 %vm3066_vm1, %v3067_v13 }
 0x38d   : > { %v726_v25 = vpop.f32.mrb[0].mxu0 }
 0x38e   : > { %v3574_v26 = vadd.f32 %v2155_v24, %v726_v25  ;;  %v2244_v27 = vpop.f32.mrb[1].mxu0 }
 0x390   : > { %731 = vrot.lane.b32.xlu1 %v3574_v26, %s3068_s24  ;;  %s3078_s24 = smov 40  }
 0x402   : > { %v732_v28 = vpop.permute.xlu1 %731 }
 0x403   : > { %2246 = vmatpush3.xpose.msk.msra.mxu0 %vm733_vm2, %v732_v28 }
 0x404   : > { %2250 = vmatprep.subr.mxu0 %v3067_v13 }
 0x406   : > { %2248 = vmatmul.mubr.msk.f32.vlgmr.msra.gmra.mrb[2].mxu0 %vm733_vm2, %v3574_v26 }
 0x407   : > { %2252 = vmatprep.mubr.msk.f32.mxu0 %vm3066_vm1, %v3067_v13 }
 0x4d9   : > { %v804_v29 = vpop.f32.mrb[2].mxu0 }
 0x4da   : > { %v2249_v30 = vpop.f32.mrb[3].mxu0  ;;  %v808_v31 = vsel %vm733_vm2, %v804_v29, -inf }
 0x4db   : > { %809 = vmax.xlane.f32.xlu1 %v808_v31 }
 0x568   : > { %v810_v32 = vpop.xlane.xlu1 %809 }
 0x569   : > { %v811_v33 = vsub.f32 %v804_v29, %v810_v32 }
 0x56b   : > { %v812_v34 = vmul.f32 1.442695, %v811_v33 }
 0x56d   : > { %2572 = vpow2.f32 %v812_v34 }
 0x577   : > { %v2573_v35 = vpop.eup %2572 }
 0x578   : > { %v814_v36 = vsel %vm733_vm2, %v2573_v35, 0.0 }
 0x579   : > { %815 = vadd.xlane.f32.xlu0 %v814_v36 }
 0x58f   : > { %819 = vrot.lane.b32.xlu0 %v3574_v26, %s3069_s20  ;;  %s2180_s20 = sshll.u32 %s3767_s15, 7 }
 0x593   : > { %972 = vrot.lane.b32.xlu0 %v3574_v26, %s3070_s14  ;;  %s613_s14 = scalar_lea.vmem [#allocation24], %s2139_s0  ;;  %s3079_s0 = smov [#allocation24]  }
 0x597   : > { %970 = vrot.lane.b32.xlu0 %v3574_v26, %s3071_s13  ;;  %s1937_s13 = sshll.u32 %s613_s14, 4  ;;  %s3678_s13 = int_to_ptr.vmem [resolvable:$true] %s1937_s13 }
 0x598   : > { %s2958_s15 = scalar_lea.vmem %s3678_s13, 128 }
 0x599   : > { %p2959_p2 = scmp.ne.s32.totalorder %s3678_s13, %s2958_s15 }
 0x59b   : > { %p2960_p10 = pnand %p2959_p2, %p3781_p0 }
 0x59d   : > { %p2961_p11 = pneg %p2960_p10 }
 0x606   : > { %v816_v37 = vpop.xlane.xlu0 %815 }
 0x607   : > { %2574 = vrcp.f32 %v816_v37 }
 0x60a   : > { %v820_v38 = vpop.permute.xlu0 %819 }
 0x60b   : > { %2251 = vmatpush3.msra.mxu0 %v820_v38 }
 0x60c   : > { %2255 = vmatprep.subr.mxu0 %v3067_v13 }
 0x60e   : > { %v973_v42 = vpop.permute.xlu0 %972 }
 0x611   : > { %v2575_v39 = vpop.eup %2574 }
 0x612   : > { %v818_v40 = vmul.f32 %v2575_v39, %v2573_v35  ;;  %v971_v45 = vpop.permute.xlu0 %970  ;;  %v1619_v35 = vld [vmem:[#allocation12 + $0x18] sm:$0xff] }
 0x614   : > { %2253 = vmatmul.mubr.msk.f32.vlgmr.msra.gmra.mrb[4].mxu0 %vm733_vm2, %v818_v40 }
 0x615   : > { %2256 = vmatpush3.msra.mxu0 %v895_v41  ;;  %2257 = vmatprep.mubr.msk.f32.mxu0 %vm3066_vm1, %v3067_v13 }
 0x616   : > { %2260 = vmatprep.subr.mxu0 %v3067_v13 }
 0x6e7   : > { %v891_v43 = vpop.f32.mrb[4].mxu0 }
 0x6e8   : > { %v2254_v44 = vpop.f32.mrb[5].mxu0  ;;  %2258 = vmatmul.mubr.msk.f32.vlgmr.msra.gmra.mrb[6].mxu0 %vm733_vm2, %v891_v43 }
 0x6e9   : > { %2261 = vmatpush3.xpose.msk.msra.mxu0 %vm733_vm2, %v973_v42  ;;  %2262 = vmatprep.mubr.msk.f32.mxu0 %vm3066_vm1, %v3067_v13 }
 0x6ea   : > { %2265 = vmatprep.subr.mxu0 %v3067_v13 }
 0x6ec   : > { %2263 = vmatmul.mubr.msk.f32.vlgmr.msra.gmra.mrb[8].mxu0 %vm733_vm2, %v971_v45 }
 0x6ed   : > { %2267 = vmatprep.mubr.msk.f32.mxu0 %vm3066_vm1, %v3067_v13 }
 0x7bb   : > { %v965_v46 = vpop.f32.mrb[6].mxu0 }
 0x7bc   : > { %969 = vst.msk [vmem:[#allocation2] sm:$0xff] %vm617_vm0, %v965_v46  ;;  %v2259_v47 = vpop.f32.mrb[7].mxu0 }
 0x7bf   : > { %v1044_v48 = vpop.f32.mrb[8].mxu0 }
 0x7c0   : > { %v2264_v49 = vpop.f32.mrb[9].mxu0  ;;  %v1048_v50 = vsel %vm733_vm2, %v1044_v48, -inf }
 0x7c1   : > { %1049 = vmax.xlane.f32.xlu1 %v1048_v50  ;;  %v2173_v49 = vld [vmem:[#allocation14] ss:$0 sm:$0xff] }
 0x7c3   : > { %v1209_v14 = vld [vmem:[#allocation2] sm:$0xff] }
 0x7d2   : > { %1059 = vrot.lane.b32.xlu1 %v3574_v26, %s3072_s16 }
 0x7d6   : > { %1214 = vrot.lane.b32.xlu1 %v3574_v26, %s3073_s22 }
 0x7da   : > { %1212 = vrot.lane.b32.xlu1 %v3574_v26, %s3074_s30  ;;  %s3780_s30 = sld [smem:[#allocation39_spill]] }
 0x84e   : > { %v1050_v51 = vpop.xlane.xlu1 %1049 }
 0x84f   : > { %v1051_v52 = vsub.f32 %v1044_v48, %v1050_v51 }
 0x851   : > { %v1052_v53 = vmul.f32 1.442695, %v1051_v52 }
 0x852   : > { %v1060_v54 = vpop.permute.xlu1 %1059 }
 0x853   : > { %2576 = vpow2.f32 %v1052_v53  ;;  %2266 = vmatpush3.msra.mxu0 %v1060_v54 }
 0x854   : > { %2275 = vmatprep.subr.mxu0 %v3067_v13 }
 0x856   : > { %v1215_v60 = vpop.permute.xlu1 %1214 }
 0x85a   : > { %v1213_v62 = vpop.permute.xlu1 %1212 }
 0x85d   : > { %v2577_v55 = vpop.eup %2576 }
 0x85e   : > { %v1054_v56 = vsel %vm733_vm2, %v2577_v55, 0.0 }
 0x85f   : > { %1055 = vadd.xlane.f32.xlu0 %v1054_v56 }
 0x875   : > { %1301 = vrot.lane.b32.xlu0 %v3574_v26, %s3075_s2  ;;  %s3676_s2 = scalar_lea.hbm %s3780_s30, %s2180_s20 }
 0x879   : > { %1456 = vrot.lane.b32.xlu0 %v3574_v26, %s3076_s17  ;;  %s1924_s17 = scalar_lea.sflag [#allocation5], %s3523_s19 }
 0x8ec   : > { %v1056_v58 = vpop.xlane.xlu0 %1055 }
 0x8ed   : > { %2578 = vrcp.f32 %v1056_v58  ;;  %v1736_v58 = vld [vmem:[#allocation18 + $0x8] sm:$0xff] }
 0x8f0   : > { %v1302_v1 = vpop.permute.xlu0 %1301 }
 0x8f4   : > { %v1457_v17 = vpop.permute.xlu0 %1456 }
 0x8f7   : > { %v2579_v59 = vpop.eup %2578 }
 0x8f8   : > { %v1058_v61 = vmul.f32 %v2579_v59, %v2577_v55  ;;  %v2358_v59 = vpack.c.bf16 %v1736_v58, %v1735_v57 }
 0x8fa   : > { %2268 = vmatmul.mubr.msk.f32.vlgmr.msra.gmra.mrb[10].mxu0 %vm733_vm2, %v1058_v61 }
 0x8fb   : > { %2276 = vmatpush3.xpose.msk.msra.mxu0 %vm733_vm2, %v1215_v60  ;;  %2277 = vmatprep.mubr.msk.f32.mxu0 %vm3066_vm1, %v3067_v13  ;;  %v1738_v60 = vld [vmem:[#allocation18 + $0x18] sm:$0xff] }
 0x8fc   : > { %2285 = vmatprep.subr.mxu0 %v3067_v13 }
 0x8fe   : > { %2278 = vmatmul.mubr.msk.f32.vlgmr.msra.gmra.mrb[12].mxu0 %vm733_vm2, %v1213_v62  ;;  %v1825_v62 = vld [vmem:[#allocation21] sm:$0xff] }
 0x8ff   : > { %2287 = vmatprep.mubr.msk.f32.mxu0 %vm3066_vm1, %v3067_v13  ;;  %2286 = vmatpush3.msra.mxu0 %v1377_v22  ;;  %v1833_v22 = vld [vmem:[#allocation21 + $0x40] sm:$0xff] }
 0x900   : > { %2295 = vmatprep.subr.mxu0 %v3067_v13 }
 0x9cd   : > { %v1131_v63 = vpop.f32.mrb[10].mxu0 }
 0x9ce   : > { %v2269_v2 = vpop.f32.mrb[11].mxu0  ;;  %2273 = vmatmul.mubr.msk.f32.vlgmr.msra.gmra.mrb[0].mxu1 %vm733_vm2, %v1131_v63  ;;  %v1826_v63 = vld [vmem:[#allocation21 + $0x8] sm:$0xff] }
 0x9cf   : > { %2281 = vmatpush3.msra.mxu1 %v1302_v1  ;;  %2282 = vmatprep.mubr.msk.f32.mxu1 %vm3066_vm1, %v3067_v13  ;;  %v1827_v1 = vld [vmem:[#allocation21 + $0x10] sm:$0xff]  ;;  %v2364_v2 = vpack.c.bf16 %v1826_v63, %v1825_v62 }
 0x9d0   : > { %2290 = vmatprep.subr.mxu1 %v3067_v13 }
 0x9d1   : > { %v1286_v3 = vpop.f32.mrb[12].mxu0 }
 0x9d2   : > { %v2279_v4 = vpop.f32.mrb[13].mxu0  ;;  %v1290_v5 = vsel %vm733_vm2, %v1286_v3, -inf }
 0x9d3   : > { %1291 = vmax.xlane.f32.xlu1 %v1290_v5  ;;  %v1829_v5 = vld [vmem:[#allocation21 + $0x20] sm:$0xff] }
 0xa60   : > { %v1292_v6 = vpop.xlane.xlu1 %1291 }
 0xa61   : > { %v1293_v7 = vsub.f32 %v1286_v3, %v1292_v6  ;;  %v1828_v3 = vld [vmem:[#allocation21 + $0x18] sm:$0xff]  ;;  %v1830_v6 = vld [vmem:[#allocation21 + $0x28] sm:$0xff] }
 0xa62   : > { %v2367_v4 = vpack.c.bf16 %v1828_v3, %v1827_v1 }
 0xa63   : > { %v1294_v8 = vmul.f32 1.442695, %v1293_v7  ;;  %v2370_v7 = vpack.c.bf16 %v1830_v6, %v1829_v5 }
 0xa65   : > { %2580 = vpow2.f32 %v1294_v8 }
 0xa6f   : > { %v2581_v9 = vpop.eup %2580 }
 0xa70   : > { %v1296_v11 = vsel %vm733_vm2, %v2581_v9, 0.0 }
 0xa71   : > { %1297 = vadd.xlane.f32.xlu0 %v1296_v11 }
 0xa87   : > { %1454 = vrot.lane.b32.xlu0 %v3574_v26, %s3077_s23  ;;  %s2962_s23 = sshll.u32 %s3079_s0, 4  ;;  %s2963_s23 = int_to_ptr.vmem [resolvable:$false] %s2962_s23 }
 0xa88   : > { %p2965_p12 = scmp.lt.s32.totalorder %s3678_s13, %s2963_s23 }
 0xaa1   : > { %v1205_v12 = vpop.f32.mrb[0].mxu1 }
 0xaa2   : > { %v1210_v15 = vadd.f32 %v1209_v14, %v1205_v12  ;;  %v2274_v16 = vpop.f32.mrb[1].mxu1  ;;  %v2174_v14 = vld [vmem:[#allocation15] ss:$0 sm:$0xff] }
 0xaa3   : > { %v2175_v16 = vld [vmem:[#allocation17] ss:$0 sm:$0xff] }
 0xaa4   : > { %1211 = vst.msk [vmem:[#allocation2] sm:$0xff] %vm617_vm0, %v1210_v15 }
 0xaab   : > { %v1451_v37 = vld [vmem:[#allocation2] sm:$0xff] }
 0xafe   : > { %v1298_v18 = vpop.xlane.xlu0 %1297 }
 0xaff   : > { %2582 = vrcp.f32 %v1298_v18 }
 0xb02   : > { %v1455_v21 = vpop.permute.xlu0 %1454 }
 0xb09   : > { %v2583_v19 = vpop.eup %2582 }
 0xb0a   : > { %v1300_v20 = vmul.f32 %v2583_v19, %v2581_v9  ;;  %v1831_v19 = vld [vmem:[#allocation21 + $0x30] sm:$0xff] }
 0xb0c   : > { %2283 = vmatmul.mubr.msk.f32.vlgmr.msra.gmra.mrb[2].mxu1 %vm733_vm2, %v1300_v20  ;;  %v1832_v20 = vld [vmem:[#allocation21 + $0x38] sm:$0xff] }
 0xb0d   : > { %2291 = vmatpush3.xpose.msk.msra.mxu1 %vm733_vm2, %v1457_v17  ;;  %2292 = vmatprep.mubr.msk.f32.mxu1 %vm3066_vm1, %v3067_v13 }
 0xb0e   : > { %2300 = vmatprep.subr.mxu1 %v3067_v13 }
 0xb10   : > { %2293 = vmatmul.mubr.msk.f32.vlgmr.msra.gmra.mrb[4].mxu1 %vm733_vm2, %v1455_v21  ;;  %v2373_v21 = vpack.c.bf16 %v1832_v20, %v1831_v19 }
 0xb11   : > { %2302 = vmatprep.mubr.msk.f32.mxu1 %vm3066_vm1, %v3067_v13  ;;  %2301 = vmatpush3.msra.mxu1 %v1619_v35  ;;  %v2176_v35 = vld [vmem:[#allocation20] ss:$0 sm:$0xff] }
 0xb12   : > { %2363 = vmatprep.subr.bf16.mxu1 %v3065_v10 }
 0xbdf   : > { %v1373_v23 = vpop.f32.mrb[2].mxu1 }
 0xbe0   : > { %v2284_v24 = vpop.f32.mrb[3].mxu1  ;;  %2288 = vmatmul.mubr.msk.f32.vlgmr.msra.gmra.mrb[14].mxu0 %vm733_vm2, %v1373_v23  ;;  %v1834_v23 = vld [vmem:[#allocation21 + $0x48] sm:$0xff] }
 0xbe1   : > { %2297 = vmatprep.mubr.msk.f32.mxu0 %vm3066_vm1, %v3067_v13  ;;  %v2376_v24 = vpack.c.bf16 %v1834_v23, %v1833_v22 }
 0xbe3   : > { %v1528_v25 = vpop.f32.mrb[4].mxu1 }
 0xbe4   : > { %v2294_v27 = vpop.f32.mrb[5].mxu1  ;;  %v1532_v28 = vsel %vm733_vm2, %v1528_v25, -inf }
 0xbe5   : > { %1533 = vmax.xlane.f32.xlu1 %v1532_v28  ;;  %v1836_v27 = vld [vmem:[#allocation21 + $0x58] sm:$0xff] }
 0xbf6   : > { %1543 = vrot.lane.b32.xlu1 %v3574_v26, %s3078_s24  ;;  %s2964_s24 = scalar_lea.vmem %s2963_s23, 256 }
 0xbf7   : > { %p2966_p8 = scmp.lt.s32.totalorder %s2964_s24, %s2958_s15 }
 0xbf9   : > { %p2967_p5 = por %p2966_p8, %p2965_p12 }
 0xbfb   : > { %p2968_p7 = pnand %p2967_p5, %p2961_p11 }
 0xc72   : > { %v1534_v29 = vpop.xlane.xlu1 %1533 }
 0xc73   : > { %v1535_v30 = vsub.f32 %v1528_v25, %v1534_v29  ;;  %v1835_v25 = vld [vmem:[#allocation21 + $0x50] sm:$0xff]  ;;  %v1837_v29 = vld [vmem:[#allocation21 + $0x60] sm:$0xff] }
 0xc74   : > { %v2379_v28 = vpack.c.bf16 %v1836_v27, %v1835_v25 }
 0xc75   : > { %v1536_v31 = vmul.f32 1.442695, %v1535_v30  ;;  %v1838_v30 = vld [vmem:[#allocation21 + $0x68] sm:$0xff] }
 0xc76   : > { %v1544_v32 = vpop.permute.xlu1 %1543 }
 0xc77   : > { %2584 = vpow2.f32 %v1536_v31  ;;  %2296 = vmatpush3.msra.mxu0 %v1544_v32  ;;  %v2382_v31 = vpack.c.bf16 %v1838_v30, %v1837_v29  ;;  %v1839_v32 = vld [vmem:[#allocation21 + $0x70] sm:$0xff] }
 0xc78   : > { %2357 = vmatprep.subr.bf16.mxu0 %v3065_v10 }
 0xc81   : > { %v2585_v33 = vpop.eup %2584 }
 0xc82   : > { %v1538_v34 = vsel %vm733_vm2, %v2585_v33, 0.0 }
 0xc83   : > { %1539 = vadd.xlane.f32.xlu0 %v1538_v34 }
 0xcb3   : > { %v1447_v36 = vpop.f32.mrb[14].mxu0 }
 0xcb4   : > { %v1452_v38 = vadd.f32 %v1451_v37, %v1447_v36  ;;  %v2289_v26 = vpop.f32.mrb[15].mxu0 }
 0xcb6   : > { %1453 = vst.msk [vmem:[#allocation2] sm:$0xff] %vm617_vm0, %v1452_v38 }
 0xcbd   : > { %v1693_v45 = vld [vmem:[#allocation2] sm:$0xff] }
 0xd10   : > { %v1540_v39 = vpop.xlane.xlu0 %1539 }
 0xd11   : > { %2586 = vrcp.f32 %v1540_v39 }
 0xd1b   : > { %v2587_v40 = vpop.eup %2586 }
 0xd1c   : > { %v1542_v41 = vmul.f32 %v2587_v40, %v2585_v33  ;;  %v1840_v33 = vld [vmem:[#allocation21 + $0x78] sm:$0xff] }
 0xd1d   : > { %v2385_v34 = vpack.c.bf16 %v1840_v33, %v1839_v32 }
 0xd1e   : > { %2298 = vmatmul.mubr.msk.f32.vlgmr.msra.gmra.mrb[16].mxu0 %vm733_vm2, %v1542_v41 }
 0xd1f   : > { %2313 = vmatprep.mubr.msk.f32.mxu0 %vm3066_vm1, %v3067_v13  ;;  %2359 = vmatpush3.bf16.msra.mxu0 %v2358_v59 }
 0xd20   : > { %2360 = vmatprep.subr.bf16.mxu0 %v3065_v10 }
 0xdf1   : > { %v1615_v42 = vpop.f32.mrb[16].mxu0 }
 0xdf2   : > { %v2299_v43 = vpop.f32.mrb[17].mxu0  ;;  %2303 = vmatmul.mubr.msk.f32.vlgmr.msra.gmra.mrb[6].mxu1 %vm733_vm2, %v1615_v42 }
 0xdf3   : > { %2348 = vmatprep.mubr.msk.f32.mxu1 %vm3066_vm1, %v3067_v13  ;;  %2365 = vmatpush3.bf16.msra.mxu1 %v2364_v2 }
 0xdf4   : > { %2366 = vmatprep.subr.bf16.mxu1 %v3065_v10 }
 0xdf7   : > { %2368 = vmatpush3.bf16.msra.mxu1 %v2367_v4 }
 0xdf8   : > { %2369 = vmatprep.subr.bf16.mxu1 %v3065_v10 }
 0xdfb   : > { %2371 = vmatpush3.bf16.msra.mxu1 %v2370_v7 }
 0xdfc   : > { %2372 = vmatprep.subr.bf16.mxu1 %v3065_v10 }
 0xdff   : > { %2374 = vmatpush3.bf16.msra.mxu1 %v2373_v21 }
 0xe00   : > { %2375 = vmatprep.subr.bf16.mxu1 %v3065_v10 }
 0xe03   : > { %2377 = vmatpush3.bf16.msra.mxu1 %v2376_v24 }
 0xe04   : > { %2378 = vmatprep.subr.bf16.mxu1 %v3065_v10 }
 0xe07   : > { %2380 = vmatpush3.bf16.msra.mxu1 %v2379_v28 }
 0xe08   : > { %2381 = vmatprep.subr.bf16.mxu1 %v3065_v10 }
 0xe0b   : > { %2383 = vmatpush3.bf16.msra.mxu1 %v2382_v31 }
 0xe0c   : > { %2384 = vmatprep.subr.bf16.mxu1 %v3065_v10 }
 0xe0f   : > { %2386 = vmatpush3.bf16.msra.mxu1 %v2385_v34 }
 0xec5   : > { %v1689_v44 = vpop.f32.mrb[6].mxu1 }
 0xec6   : > { %v1694_v46 = vadd.f32 %v1693_v45, %v1689_v44  ;;  %v2304_v47 = vpop.f32.mrb[7].mxu1  ;;  %v2178_v45 = vld [vmem:[#allocation23] ss:$0 sm:$0xff] }
 0xec8   : > { %1695 = vst.msk [vmem:[#allocation2] sm:$0xff] %vm617_vm0, %v1694_v46 }
 0xecf   : > { %v1696_v48 = vld [vmem:[#allocation2] sm:$0xff] }
 0xed0   : > { %v1697_v50 = vadd.f32 %v1696_v48, %v3557_v0  ;;  %v1737_v0 = vld [vmem:[#allocation18 + $0x10] sm:$0xff] }
 0xed1   : > { %v2361_v61 = vpack.c.bf16 %v1738_v60, %v1737_v0 }
 0xed2   : > { %v3653_v51 = vadd.f32 %v2173_v49, %v1697_v50 }
 0xed3   : > { %2362 = vmatpush3.bf16.msra.mxu0 %v2361_v61 }
 0xed4   : > { %v1708_v52 = vsel %vm617_vm0, %v3653_v51, 0.0 }
 0xed5   : > { %1709 = vadd.xlane.f32.xlu1 %v1708_v52 }
 0xf62   : > { %v1710_v53 = vpop.xlane.xlu1 %1709 }
 0xf63   : > { %v1711_v54 = vmul.f32 0.03125, %v1710_v53 }
 0xf65   : > { %v1712_v13 = vsub.f32 %v3653_v51, %v1711_v54 }
 0xf67   : > { %v1713_v55 = vmul.f32 %v1712_v13, %v1712_v13 }
 0xf69   : > { %v1714_v56 = vsel %vm617_vm0, %v1713_v55, 0.0 }
 0xf6a   : > { %1715 = vadd.xlane.f32.xlu0 %v1714_v56 }
 0xff7   : > { %v1716_v8 = vpop.xlane.xlu0 %1715 }
 0xff8   : > { %v1717_v9 = vmul.f32 0.03125, %v1716_v8 }
 0xffa   : > { %v1718_v11 = vadd.f32 1e-05, %v1717_v9 }
 0xffc   : > { %2588 = vrsqrt.f32 %v1718_v11 }
0x1006   : > { %v2589_v12 = vpop.eup %2588 }
0x1007   : > { %v1720_v15 = vmul.f32 %v2589_v12, %v1712_v13 }
0x1009   : > { %v1727_v17 = vmul.f32 %v2174_v14, %v1720_v15 }
0x100b   : > { %v1734_v18 = vadd.f32 %v2175_v16, %v1727_v17 }
0x100d   : > { %2314 = vmatmul.mubr.msk.f32.vlgmr.msra.gmra.mrb[18].mxu0 %vm617_vm0, %v1734_v18 }
0x10e0   : > { %v1815_v36 = vpop.f32.mrb[18].mxu0 }
0x10e1   : > { %v1816_v37 = vadd.f32 %v2176_v35, %v1815_v36  ;;  %v2315_v38 = vpop.f32.mrb[19].mxu0 }
0x10e3   : > { %v1821_v26 = vmul.f32 0.70710677, %v1816_v37  ;;  %v1819_v40 = vmul.f32 0.5, %v1816_v37 }
0x10e5   : > { %2590 = verf.f32 %v1821_v26 }
0x10ef   : > { %v2591_v39 = vpop.eup %2590 }
0x10f0   : > { %v1823_v41 = vadd.f32 1.0, %v2591_v39 }
0x10f2   : > { %v1824_v42 = vmul.f32 %v1823_v41, %v1819_v40 }
0x10f4   : > { %2349 = vmatmul.mubr.f32.vlgmr.msra.gmra.mrb[8].mxu1 %v1824_v42 }
0x11c7   : > { %v1907_v43 = vpop.f32.mrb[8].mxu1 }
0x11c8   : > { %1911 = vst.msk [vmem:[#allocation2] sm:$0xff] %vm617_vm0, %v1907_v43  ;;  %v2350_v10 = vpop.f32.mrb[9].mxu1 }
0x11cf   : > { %v1912_v44 = vld [vmem:[#allocation2] sm:$0xff] }
0x11d0   : > { %v1913_v46 = vadd.f32 %v1912_v44, %v3653_v51 }
0x11d2   : > { %v1921_v47 = vadd.f32 %v2178_v45, %v1913_v46 }
0x11d4   : > { %1922 = vst.msk [vmem:[%s613_s14] sm:$0xff] %vm617_vm0, %v1921_v47 }
0x11d5   : > { %2971 = shalt.err (!%p2968_p7)
}
0x11d6   : > { %s2972_s19 = scalar_lea.hbm %s3676_s2, 128  ;;  %s2976_s16 = scalar_lea.hbm %s3780_s30, 256 }
0x11d7   : > { %p2973_p6 = scmp.ne.s32.totalorder %s3676_s2, %s2972_s19  ;;  %p2977_p13 = scmp.lt.u32.totalorder %s3676_s2, %s3780_s30 }
0x11d8   : > { %p2978_p1 = scmp.lt.u32.totalorder %s2976_s16, %s2972_s19  ;;  %p2980_p2 = scmp.lt.u32.totalorder %s2972_s19, %s3676_s2 }
0x11d9   : > { %p2974_p9 = pnand %p2973_p6, %p3781_p0 }
0x11da   : > { %p2979_p3 = por %p2978_p1, %p2977_p13 }
0x11db   : > { %p2975_p4 = pneg %p2974_p9 }
0x11dc   : > { %p2981_p10 = por %p2980_p2, %p2979_p3 }
0x11de   : > { %p2982_p11 = pnand %p2981_p10, %p2975_p4 }
0x11e0   : > { %2985 = shalt.err (!%p2982_p11)
}
0x11e1   : > { %2437 = dma.vmem_to_hbm [thread:$0]  (%p3781_p0), %s3678_s13, 128, %s3676_s2, %s1924_s17  }
0x11e2 PF: > { %s1949_s15 = sand.u32 1, %s3036_s25   ;;  %p3782_p12 = scmp.ne.s32.totalorder %s3762_s21, 0 }
0x11e3   : > { %p3783_p8 = scmp.ge.s32.totalorder %s3048_s28, 2  ;;  %s1950_s23 = scalar_lea.sflag [#allocation5], %s1949_s15 }
0x11e5   : > { %p2481_p5 = pnand %p3783_p8, %p3782_p12 }
0x11e7   : > { %3031 = dma.done.wait (!%p2481_p5), %s1950_s23, 128  }
0x11e8   : > { %3033 = vsyncadd (!%p2481_p5), %s1950_s23, 4294967168  ;;  %p32_p7 = scmp.ge.s32.totalorder %s3447_s18, 4   ;;  %s3784_s25 = smov %s3040_s26 }
0x11e9   : > { %s3785_s26 = smov %s3044_s27  ;;  %s3786_s27 = smov %s3458_s29 }
0x11ea   : > { %s3787_s28 = smov %s3447_s18  ;;  %34 = sbr.rel (!%p32_p7) target bundleno = 17 (0x11), region = 165 }
0x11f1   :  { %1955 = vsyncpa [#allocation4], 1 }
0x11f2   :  { %1957 = vsyncpa [#allocation4 + $0x1], 1 }
0x11f3   :  { %1958 = vsyncpa [#allocation7], 1 }
0x11f4   :  { %1959 = vsyncpa [#allocation10], 1 }
0x11f5   :  { %1960 = vsyncpa [#allocation13], 1 }
0x11f6   :  { %1961 = vsyncpa [#allocation16], 1 }
0x11f7   :  { %1962 = vsyncpa [#allocation19], 1 }
0x11f8   :  { %1963 = vsyncpa [#allocation22], 1 }
0x11f9   :  { %1964 = vsyncpa [#allocation5], 1 }
0x11fa   :  { %1966 = vsyncpa [#allocation5 + $0x1], 1 }

</bundles_post_ra>
